<compile_context>
chip_gen: v7x
topology: tpu7x:2x2x1
jax: 0.10.0
libtpu: 0.0.40
codegen_flags: <defaults>
</compile_context>

<pallas_src>
import jax
import jax.numpy as jnp
from jax.experimental import pallas as pl
from jax.experimental.pallas import tpu as pltpu

C_IN, C_MID, C_OUT = 1536, 192, 512


def _round_up(a, b):
    return ((a + b - 1) // b) * b


def _vmem_budget():
    """Return (vmem_limit_bytes, max lane-tile width) sized per TPU generation."""
    try:
        cap = pltpu.get_tpu_info().vmem_capacity_bytes
    except Exception:
        cap = 0  # unknown -> be conservative (safe on every generation)
    if cap > 64 * 1024 * 1024:            # v5e / v6e: 128 MiB VMEM per core
        return 96 * 1024 * 1024, 2048
    return 48 * 1024 * 1024, 1024         # v7x: 64 MiB per TensorCore (or unknown)


def _lane_efficiency(t):
    # Measured fraction of HBM roofline vs. lane-tile width (tiled-add curve).
    if t >= 512:
        return 0.86
    if t >= 384:
        return 0.75
    if t >= 256:
        return 0.63
    return 0.29


def _pick_thw(hw, thw_cap, n_batch):
    """Choose the spatial (lane) tile width and number of spatial blocks."""
    if hw <= thw_cap:
        # Full-extent lane block (always a legal block shape: equals array dim).
        thw = hw
    else:
        # Multiple of 128 minimising padded work weighted by DMA-row efficiency.
        best_t, best_score = 128, None
        for t in range(128, thw_cap + 1, 128):
            score = _round_up(hw, t) / _lane_efficiency(t)
            if best_score is None or score <= best_score:   # ties -> larger tile
                best_score, best_t = score, t
        thw = best_t
    n_s = pl.cdiv(hw, thw)
    # v7x has 2 TensorCores: keep >= 2 grid programs whenever there is enough work.
    if n_batch * n_s < 2 and hw > 128:
        thw = max(128, _round_up(pl.cdiv(hw, 2), 128))
        n_s = pl.cdiv(hw, thw)
    return thw, n_s


def _make_kernel(precision):
    """Kernel for one (C_IN, thw) NCHW tile: y = W2 @ relu(W1 @ x + b1) + b2 + x0."""

    def kernel(x_ref, w1_ref, b1_ref, w2_ref, b2_ref, x0_ref, o_ref):
        xb = x_ref[...].astype(w1_ref.dtype)                  # MXU operand dtype
        h = jnp.dot(w1_ref[...], xb,
                    preferred_element_type=jnp.float32,
                    precision=precision)                       # (192, thw)
        h = jnp.maximum(h + b1_ref[...], 0.0)
        y = jnp.dot(w2_ref[...], h.astype(w2_ref.dtype),
                    preferred_element_type=jnp.float32,
                    precision=precision)                       # (512, thw)
        o_ref[...] = (y + b2_ref[...] + x0_ref[...].astype(jnp.float32)
                      ).astype(o_ref.dtype)

    return kernel


def update_resnet512_pallas(x, x0, w1, b1, w2, b2, *, precise=False):
    """UpdateResNet512.forward(x, x0).

    x : (N, 1536, H, W), x0 : (N, 512, H, W)  (f32 or bf16, consumed as-is).
    w1: (192, 1536, 1, 1), b1: (192,), w2: (512, 192, 1, 1), b2: (512,).
    precise=False: bf16 MXU operands, f32 accumulation (~1e-2 rel error).
    precise=True : f32 weights + Precision.HIGHEST matmuls (bit-close escape hatch).
    """
    N, c_in, H, W = x.shape
    assert c_in == C_IN and x0.shape == (N, C_OUT, H, W)
    HW = H * W

    if precise:
        w_dtype, precision = jnp.float32, jax.lax.Precision.HIGHEST
    else:
        w_dtype, precision = jnp.bfloat16, None
    w1_m = w1.reshape(C_MID, C_IN).astype(w_dtype)     # (192, 1536), <0.6 MiB
    w2_m = w2.reshape(C_OUT, C_MID).astype(w_dtype)    # (512, 192)
    b1_c = b1.reshape(C_MID, 1).astype(jnp.float32)
    b2_c = b2.reshape(C_OUT, 1).astype(jnp.float32)

    vmem_limit, thw_cap = _vmem_budget()
    thw, n_s = _pick_thw(HW, thw_cap, N)

    # Free reshapes (trailing dims contiguous): no HBM layout copies.
    x3 = x.reshape(N, C_IN, HW)
    x03 = x0.reshape(N, C_OUT, HW)
    out_dtype = jnp.promote_types(x.dtype, x0.dtype)

    cost = pl.CostEstimate(
        flops=2 * N * HW * (C_IN * C_MID + C_MID * C_OUT),
        transcendentals=0,
        bytes_accessed=int(
            x3.size * x3.dtype.itemsize
            + x03.size * x03.dtype.itemsize
            + N * C_OUT * HW * jnp.dtype(out_dtype).itemsize
            + w1_m.size * w1_m.dtype.itemsize
            + w2_m.size * w2_m.dtype.itemsize
            + (C_MID + C_OUT) * 4))

    out3 = pl.pallas_call(
        _make_kernel(precision),
        out_shape=jax.ShapeDtypeStruct((N, C_OUT, HW), out_dtype),
        grid_spec=pltpu.PrefetchScalarGridSpec(
            num_scalar_prefetch=0,
            grid=(N, n_s),                # last spatial block may be partial (masked)
            in_specs=[
                pl.BlockSpec((None, C_IN, thw), lambda n, s: (n, 0, s)),   # x
                pl.BlockSpec((C_MID, C_IN), lambda n, s: (0, 0)),          # W1
                pl.BlockSpec((C_MID, 1), lambda n, s: (0, 0)),             # b1
                pl.BlockSpec((C_OUT, C_MID), lambda n, s: (0, 0)),         # W2
                pl.BlockSpec((C_OUT, 1), lambda n, s: (0, 0)),             # b2
                pl.BlockSpec((None, C_OUT, thw), lambda n, s: (n, 0, s)),  # x0
            ],
            out_specs=pl.BlockSpec((None, C_OUT, thw), lambda n, s: (n, 0, s)),
        ),
        compiler_params=pltpu.CompilerParams(
            dimension_semantics=("parallel", "parallel"),
            vmem_limit_bytes=vmem_limit),
        cost_estimate=cost,
    )(x3, w1_m, b1_c, w2_m, b2_c, x03)

    return out3.reshape(N, C_OUT, H, W)


def _reference(x_nchw, x0_nchw, w1, b1, w2, b2):
    # Pure-JAX f32 reference of the 1x1-conv MLP (HIGHEST precision matmuls).
    N, _, H, W = x_nchw.shape
    hp = jax.lax.Precision.HIGHEST
    x = jnp.transpose(x_nchw, (0, 2, 3, 1)).reshape(-1, C_IN)
    h = jnp.maximum(jnp.dot(x, w1.reshape(C_MID, C_IN).T, precision=hp) + b1, 0.0)
    y = jnp.dot(h, w2.reshape(C_OUT, C_MID).T, precision=hp) + b2
    y = y.reshape(N, H, W, C_OUT).transpose(0, 3, 1, 2)
    return y + x0_nchw


if __name__ == "__main__":
    key = jax.random.PRNGKey(0)
    ks = jax.random.split(key, 10)

    # Parameters (shapes from Conv2d(1536,192,1), Conv2d(192,512,1)).
    w1 = jax.random.normal(ks[0], (C_MID, C_IN, 1, 1), dtype=jnp.float32) * 0.02
    b1 = jax.random.normal(ks[1], (C_MID,), dtype=jnp.float32) * 0.02
    w2 = jax.random.normal(ks[2], (C_OUT, C_MID, 1, 1), dtype=jnp.float32) * 0.02
    b2 = jax.random.normal(ks[3], (C_OUT,), dtype=jnp.float32) * 0.02

    fwd = jax.jit(update_resnet512_pallas, static_argnames=("precise",))

    def _check(name, n, h, w, kx, kx0, precise=False, tol=3e-2):
        x = jax.random.normal(kx, (n, C_IN, h, w), dtype=jnp.float32)
        x0 = jax.random.normal(kx0, (n, C_OUT, h, w), dtype=jnp.float32)
        out = fwd(x, x0, w1, b1, w2, b2, precise=precise)
        jax.block_until_ready(out)
        ref = _reference(x, x0, w1, b1, w2, b2)
        assert out.shape == (n, C_OUT, h, w), f"shape mismatch: {name}"
        assert jnp.allclose(out, ref, atol=tol, rtol=tol), f"value mismatch: {name}"

    # Case 1: tiny ragged template (4x4) -> single full-extent 16-lane block.
    _check("4x4 bf16", 2, 4, 4, ks[4], ks[5])
    # Case 2: 16x16 -> HW=256 split to two 128-lane blocks (>=2 grid programs).
    _check("16x16 bf16", 1, 16, 16, ks[6], ks[7])
    # Case 3: 12x12 -> HW=144, thw=128, masked partial last lane block.
    _check("12x12 bf16", 1, 12, 12, ks[8], ks[9])
    # Case 4: f32 escape hatch (Precision.HIGHEST matmuls).
    _check("4x4 f32", 2, 4, 4, ks[4], ks[5], precise=True, tol=1e-3)

    print("KERNEL_OK")
</pallas_src>

<mosaic_0001>
module attributes {stable_mosaic.version = 11 : i64} {
  func.func @kernel(%arg0: i32, %arg1: i32, %arg2: memref<1x1536x16xf32, #tpu.memory_space<vmem>>, %arg3: memref<192x1536xbf16, #tpu.memory_space<vmem>>, %arg4: memref<192x1xf32, #tpu.memory_space<vmem>>, %arg5: memref<512x192xbf16, #tpu.memory_space<vmem>>, %arg6: memref<512x1xf32, #tpu.memory_space<vmem>>, %arg7: memref<1x512x16xf32, #tpu.memory_space<vmem>>, %arg8: memref<1x512x16xf32, #tpu.memory_space<vmem>>) attributes {dimension_semantics = [#tpu.dimension_semantics<parallel>, #tpu.dimension_semantics<parallel>], iteration_bounds = array<i64: 2, 1>, scalar_prefetch = 0 : i64, scratch_operands = 0 : i64, tpu.core_type = #tpu.core_type<tc>, window_params = [{transform_indices = @transform_0, window_bounds = array<i64: 1, 1536, 16>}, {pipeline_mode = #tpu.pipeline_mode<synchronous>, transform_indices = @transform_1, window_bounds = array<i64: 192, 1536>}, {pipeline_mode = #tpu.pipeline_mode<synchronous>, transform_indices = @transform_2, window_bounds = array<i64: 192, 1>}, {pipeline_mode = #tpu.pipeline_mode<synchronous>, transform_indices = @transform_3, window_bounds = array<i64: 512, 192>}, {pipeline_mode = #tpu.pipeline_mode<synchronous>, transform_indices = @transform_4, window_bounds = array<i64: 512, 1>}, {transform_indices = @transform_5, window_bounds = array<i64: 1, 512, 16>}, {transform_indices = @transform_6, window_bounds = array<i64: 1, 512, 16>}]} {
    %c0 = arith.constant 0 : index
    %c0_0 = arith.constant 0 : index
    %c0_1 = arith.constant 0 : index
    %0 = vector.load %arg2[%c0, %c0_0, %c0_1] : memref<1x1536x16xf32, #tpu.memory_space<vmem>>, vector<1x1536x16xf32>
    %1 = vector.shape_cast %0 : vector<1x1536x16xf32> to vector<1536x16xf32>
    %2 = arith.truncf %1 : vector<1536x16xf32> to vector<1536x16xbf16>
    %c0_2 = arith.constant 0 : index
    %c0_3 = arith.constant 0 : index
    %3 = vector.load %arg3[%c0_2, %c0_3] : memref<192x1536xbf16, #tpu.memory_space<vmem>>, vector<192x1536xbf16>
    %cst = arith.constant dense<0.000000e+00> : vector<192x16xf32>
    %4 = tpu.matmul %3, %2, %cst {dimension_numbers = #tpu.dot_dimension_numbers<[1], [0], [0], [1], [0, 0, 1, 1], [], []>} : vector<192x1536xbf16>, vector<1536x16xbf16>, vector<192x16xf32> -> vector<192x16xf32>
    %c0_4 = arith.constant 0 : index
    %c0_5 = arith.constant 0 : index
    %5 = vector.load %arg4[%c0_4, %c0_5] : memref<192x1xf32, #tpu.memory_space<vmem>>, vector<192x1xf32>
    %6 = vector.broadcast %5 : vector<192x1xf32> to vector<192x16xf32>
    %7 = arith.addf %4, %6 : vector<192x16xf32>
    %cst_6 = arith.constant 0.000000e+00 : f32
    %8 = vector.broadcast %cst_6 : f32 to vector<192x16xf32>
    %9 = arith.maximumf %7, %8 : vector<192x16xf32>
    %c0_7 = arith.constant 0 : index
    %c0_8 = arith.constant 0 : index
    %10 = vector.load %arg5[%c0_7, %c0_8] : memref<512x192xbf16, #tpu.memory_space<vmem>>, vector<512x192xbf16>
    %11 = arith.truncf %9 : vector<192x16xf32> to vector<192x16xbf16>
    %cst_9 = arith.constant dense<0.000000e+00> : vector<512x16xf32>
    %12 = tpu.matmul %10, %11, %cst_9 {dimension_numbers = #tpu.dot_dimension_numbers<[1], [0], [0], [1], [0, 0, 1, 1], [], []>} : vector<512x192xbf16>, vector<192x16xbf16>, vector<512x16xf32> -> vector<512x16xf32>
    %c0_10 = arith.constant 0 : index
    %c0_11 = arith.constant 0 : index
    %13 = vector.load %arg6[%c0_10, %c0_11] : memref<512x1xf32, #tpu.memory_space<vmem>>, vector<512x1xf32>
    %14 = vector.broadcast %13 : vector<512x1xf32> to vector<512x16xf32>
    %15 = arith.addf %12, %14 : vector<512x16xf32>
    %c0_12 = arith.constant 0 : index
    %c0_13 = arith.constant 0 : index
    %c0_14 = arith.constant 0 : index
    %16 = vector.load %arg7[%c0_12, %c0_13, %c0_14] : memref<1x512x16xf32, #tpu.memory_space<vmem>>, vector<1x512x16xf32>
    %17 = vector.shape_cast %16 : vector<1x512x16xf32> to vector<512x16xf32>
    %18 = arith.addf %15, %17 : vector<512x16xf32>
    %c0_15 = arith.constant 0 : index
    %c0_16 = arith.constant 0 : index
    %c0_17 = arith.constant 0 : index
    %19 = vector.load %arg8[%c0_15, %c0_16, %c0_17] : memref<1x512x16xf32, #tpu.memory_space<vmem>>, vector<1x512x16xf32>
    %20 = vector.shape_cast %19 : vector<1x512x16xf32> to vector<512x16xf32>
    %21 = vector.shape_cast %18 : vector<512x16xf32> to vector<1x512x16xf32>
    tpu.vector_store %arg8[%c0_15, %c0_16, %c0_17], %21 {strides = array<i32>} : memref<1x512x16xf32, #tpu.memory_space<vmem>>, vector<1x512x16xf32>,
    return
  }
  func.func @transform_0(%arg0: i32, %arg1: i32) -> (i32, i32, i32) {
    %c0_i32 = arith.constant 0 : i32
    %c0_i32_0 = arith.constant 0 : i32
    return %arg0, %c0_i32, %arg1 : i32, i32, i32
  }
  func.func @transform_1(%arg0: i32, %arg1: i32) -> (i32, i32) {
    %c0_i32 = arith.constant 0 : i32
    %c0_i32_0 = arith.constant 0 : i32
    %c0_i32_1 = arith.constant 0 : i32
    return %c0_i32, %c0_i32_0 : i32, i32
  }
  func.func @transform_2(%arg0: i32, %arg1: i32) -> (i32, i32) {
    %c0_i32 = arith.constant 0 : i32
    %c0_i32_0 = arith.constant 0 : i32
    %c0_i32_1 = arith.constant 0 : i32
    return %c0_i32, %c0_i32_0 : i32, i32
  }
  func.func @transform_3(%arg0: i32, %arg1: i32) -> (i32, i32) {
    %c0_i32 = arith.constant 0 : i32
    %c0_i32_0 = arith.constant 0 : i32
    %c0_i32_1 = arith.constant 0 : i32
    return %c0_i32, %c0_i32_0 : i32, i32
  }
  func.func @transform_4(%arg0: i32, %arg1: i32) -> (i32, i32) {
    %c0_i32 = arith.constant 0 : i32
    %c0_i32_0 = arith.constant 0 : i32
    %c0_i32_1 = arith.constant 0 : i32
    return %c0_i32, %c0_i32_0 : i32, i32
  }
  func.func @transform_5(%arg0: i32, %arg1: i32) -> (i32, i32, i32) {
    %c0_i32 = arith.constant 0 : i32
    %c0_i32_0 = arith.constant 0 : i32
    return %arg0, %c0_i32, %arg1 : i32, i32, i32
  }
  func.func @transform_6(%arg0: i32, %arg1: i32) -> (i32, i32, i32) {
    %c0_i32 = arith.constant 0 : i32
    %c0_i32_0 = arith.constant 0 : i32
    return %arg0, %c0_i32, %arg1 : i32, i32, i32
  }
}

</mosaic_0001>

<bundles_post_ra>
// kernel: update_resnet512_pallas.1
= control target key start
LH: loop header
LB: loop body
LE: loop exit
PB: predicated region body
PF: predicated region fallthrough
CT: control target
= control target key end

     0   :  { %s5043_s21 = smov 0   ;;  %s5045_s22 = smov 0   ;;  %s6653_s0 = inlined_call_operand.vmem [shape: f32[2,1536,16], index: 0, kind: input, shape index: {}]   ;;  %s6654_s1 = inlined_call_operand.vmem [shape: bf16[192,1536], index: 1, kind: input, shape index: {}]   ;;  %s6655_s2 = inlined_call_operand.vmem [shape: f32[192,1], index: 2, kind: input, shape index: {}]   ;;  %s6656_s3 = inlined_call_operand.vmem [shape: bf16[512,192], index: 3, kind: input, shape index: {}]   ;;  %s6657_s4 = inlined_call_operand.vmem [shape: f32[512,1], index: 4, kind: input, shape index: {}]   ;;  %s6658_s5 = inlined_call_operand.vmem [shape: f32[2,512,16], index: 5, kind: input, shape index: {}]   ;;  %s6659_s6 = inlined_call_operand.vmem [shape: f32[2,512,16], index: 6, kind: output, shape index: {}]  }
   0x1   :  { %s5047_s23 = smov 0  }
   0x2 LB: > { %s28_s24 = sadd.s32 1, %s5001_s22  ;;  %p3841_p0 = scmp.ge.s32.totalorder %s5005_s23, 1  ;;  %s5005_s23 = sphi %s5047_s23, %s16_s23   ;;  %s5001_s22 = sphi %s5045_s22, %s6661_s22   ;;  %s4997_s21 = sphi %s5043_s21, %s6660_s21  }
   0x3   : > { %p30_p1 = scmp.ge.s32.totalorder %s28_s24, 2  ;;  %p246_p2 = scmp.lt.s32.totalorder %s5005_s23, 3 }
   0x5   : > { %s6663_s24 = smov (%p30_p1, %s28_s24), 0  ;;  %p247_p3 = pnand %p3841_p0, %p246_p2 }
   0x6   : > { %p290_p4 = scmp.lt.s32.totalorder (!%p247_p3), %s4997_s21, 1  ;;  %v4673_v0 = vld [vmem:[%s6654_s1 + $0x4] ss:$48 sps:$4 sm:$0xff] (!%p247_p3)   ;;  %v5007_v1 = vmov (!%p247_p3), 0   ;;  %v4676_v2 = vld [vmem:[%s6654_s1 + $0xc] ss:$48 sps:$4 sm:$0xff] (!%p247_p3)  }
   0x7   : > { %250 = sbr.rel (%p247_p3) target bundleno = 901 (0x385), region = 44  ;;  %4669 = vset.pattern.permute.xlu0 (!%p247_p3), %v5007_v1  ;;  %4670 = vset.pattern.permute.xlu1 (!%p247_p3), %v5007_v1  ;;  %vm3157_vm0 = vcmask (!%p247_p3), 523264   ;;  %vm3671_vm1 = vcmask (!%p247_p3), 130048  }
   0x8   : > { %1643 = vmatprep.mubr.bf16.mxu0 (!%p247_p3), %v4673_v0  ;;  %1772 = vmatprep.mubr.bf16.mxu1 (!%p247_p3), %v4676_v2 }
   0xe   : > { %s6665_s21 = smov (!%p290_p4, %s4997_s21), 1 }
   0xf   : > { %s4643_s29 = smul.u32 1536, %s6665_s21  ;;  %s4089_s7 = sshll.u32 %s6665_s21, 9 }
  0x10   : > { %s6415_s11 = scalar_lea.vmem %s6658_s5, %s4089_s7  ;;  %s6422_s12 = scalar_lea.vmem %s6659_s6, %s4089_s7 }
  0x11   : > { %s5075_s8 = scalar_lea.vmem %s6653_s0, %s4643_s29 }
  0x12   : > { %v331_v3 = vld [vmem:[%s5075_s8 + $0x80] sm:$0xff]  ;;  %v332_v4 = vld [vmem:[%s5075_s8 + $0x88] sm:$0xff]  ;;  %v333_v14 = vld [vmem:[%s5075_s8 + $0x90] sm:$0xff] }
  0x13   : > { %v363_v5 = vld [vmem:[%s5075_s8 + $0x180] sm:$0xff]  ;;  %v515_v6 = vpack.c.bf16 %v332_v4, %v331_v3  ;;  %v364_v7 = vld [vmem:[%s5075_s8 + $0x188] sm:$0xff]  ;;  %v334_v16 = vld [vmem:[%s5075_s8 + $0x98] sm:$0xff] }
  0x14   : > { %v315_v8 = vld [vmem:[%s5075_s8] sm:$0xff]  ;;  %v316_v9 = vld [vmem:[%s5075_s8 + $0x8] sm:$0xff]  ;;  %v531_v10 = vpack.c.bf16 %v364_v7, %v363_v5  ;;  %v365_v17 = vld [vmem:[%s5075_s8 + $0x190] sm:$0xff]  ;;  %v516_v19 = vpack.c.bf16 %v334_v16, %v333_v14 }
  0x15   : > { %v507_v11 = vpack.c.bf16 %v316_v9, %v315_v8  ;;  %v347_v12 = vld [vmem:[%s5075_s8 + $0x100] sm:$0xff]  ;;  %v348_v13 = vld [vmem:[%s5075_s8 + $0x108] sm:$0xff]  ;;  %4091 = vmatprep.subr.bf16.mxu0 %v515_v6  ;;  %v366_v18 = vld [vmem:[%s5075_s8 + $0x198] sm:$0xff] }
  0x16   : > { %v523_v15 = vpack.c.bf16 %v348_v13, %v347_v12  ;;  %4179 = vmatprep.subr.bf16.mxu1 %v531_v10  ;;  %v532_v20 = vpack.c.bf16 %v366_v18, %v365_v17  ;;  %v317_v21 = vld [vmem:[%s5075_s8 + $0x10] sm:$0xff]  ;;  %v318_v22 = vld [vmem:[%s5075_s8 + $0x18] sm:$0xff]  ;;  %v335_v26 = vld [vmem:[%s5075_s8 + $0xa0] sm:$0xff] }
  0x17   : > { %4092 = vmatpush3.bf16.msra.mxu0 %v507_v11  ;;  %v349_v23 = vld [vmem:[%s5075_s8 + $0x110] sm:$0xff]  ;;  %v508_v24 = vpack.c.bf16 %v318_v22, %v317_v21  ;;  %v350_v25 = vld [vmem:[%s5075_s8 + $0x118] sm:$0xff]  ;;  %v336_v27 = vld [vmem:[%s5075_s8 + $0xa8] sm:$0xff] }
  0x18   : > { %4180 = vmatpush3.bf16.msra.mxu1 %v523_v15  ;;  %4093 = vmatprep.subr.bf16.mxu0 %v516_v19  ;;  %v524_v28 = vpack.c.bf16 %v350_v25, %v349_v23  ;;  %v517_v29 = vpack.c.bf16 %v336_v27, %v335_v26  ;;  %v367_v30 = vld [vmem:[%s5075_s8 + $0x1a0] sm:$0xff]  ;;  %v368_v31 = vld [vmem:[%s5075_s8 + $0x1a8] sm:$0xff]  ;;  %v337_v38 = vld [vmem:[%s5075_s8 + $0xb0] sm:$0xff] }
  0x19   : > { %4181 = vmatprep.subr.bf16.mxu1 %v532_v20  ;;  %v319_v32 = vld [vmem:[%s5075_s8 + $0x20] sm:$0xff]  ;;  %v533_v33 = vpack.c.bf16 %v368_v31, %v367_v30  ;;  %v320_v34 = vld [vmem:[%s5075_s8 + $0x28] sm:$0xff]  ;;  %v338_v39 = vld [vmem:[%s5075_s8 + $0xb8] sm:$0xff] }
  0x1a   : > { %v351_v35 = vld [vmem:[%s5075_s8 + $0x120] sm:$0xff]  ;;  %v352_v36 = vld [vmem:[%s5075_s8 + $0x128] sm:$0xff]  ;;  %v509_v37 = vpack.c.bf16 %v320_v34, %v319_v32  ;;  %v369_v40 = vld [vmem:[%s5075_s8 + $0x1b0] sm:$0xff]  ;;  %v518_v42 = vpack.c.bf16 %v338_v39, %v337_v38 }
  0x1b   : > { %4094 = vmatpush3.bf16.msra.mxu0 %v508_v24  ;;  %v525_v41 = vpack.c.bf16 %v352_v36, %v351_v35  ;;  %v370_v43 = vld [vmem:[%s5075_s8 + $0x1b8] sm:$0xff]  ;;  %v321_v44 = vld [vmem:[%s5075_s8 + $0x30] sm:$0xff]  ;;  %v339_v49 = vld [vmem:[%s5075_s8 + $0xc0] sm:$0xff] }
  0x1c   : > { %4182 = vmatpush3.bf16.msra.mxu1 %v524_v28  ;;  %4095 = vmatprep.subr.bf16.mxu0 %v517_v29  ;;  %v322_v45 = vld [vmem:[%s5075_s8 + $0x38] sm:$0xff]  ;;  %v534_v46 = vpack.c.bf16 %v370_v43, %v369_v40  ;;  %v353_v47 = vld [vmem:[%s5075_s8 + $0x130] sm:$0xff]  ;;  %v340_v50 = vld [vmem:[%s5075_s8 + $0xc8] sm:$0xff] }
  0x1d   : > { %4183 = vmatprep.subr.bf16.mxu1 %v533_v33  ;;  %v354_v48 = vld [vmem:[%s5075_s8 + $0x138] sm:$0xff]  ;;  %v371_v51 = vld [vmem:[%s5075_s8 + $0x1c0] sm:$0xff]  ;;  %v372_v52 = vld [vmem:[%s5075_s8 + $0x1c8] sm:$0xff]  ;;  %v510_v53 = vpack.c.bf16 %v322_v45, %v321_v44  ;;  %v519_v55 = vpack.c.bf16 %v340_v50, %v339_v49 }
  0x1e   : > { %v526_v54 = vpack.c.bf16 %v354_v48, %v353_v47  ;;  %v323_v56 = vld [vmem:[%s5075_s8 + $0x40] sm:$0xff]  ;;  %v324_v57 = vld [vmem:[%s5075_s8 + $0x48] sm:$0xff]  ;;  %v535_v59 = vpack.c.bf16 %v372_v52, %v371_v51  ;;  %v341_v61 = vld [vmem:[%s5075_s8 + $0xd0] sm:$0xff] }
  0x1f   : > { %4096 = vmatpush3.bf16.msra.mxu0 %v509_v37  ;;  %v355_v58 = vld [vmem:[%s5075_s8 + $0x140] sm:$0xff]  ;;  %v356_v60 = vld [vmem:[%s5075_s8 + $0x148] sm:$0xff]  ;;  %v342_v62 = vld [vmem:[%s5075_s8 + $0xd8] sm:$0xff]  ;;  %v511_v2 = vpack.c.bf16 %v324_v57, %v323_v56 }
  0x20   : > { %4184 = vmatpush3.bf16.msra.mxu1 %v525_v41  ;;  %4097 = vmatprep.subr.bf16.mxu0 %v518_v42  ;;  %v373_v63 = vld [vmem:[%s5075_s8 + $0x1d0] sm:$0xff]  ;;  %v374_v0 = vld [vmem:[%s5075_s8 + $0x1d8] sm:$0xff]  ;;  %v527_v3 = vpack.c.bf16 %v356_v60, %v355_v58  ;;  %v520_v4 = vpack.c.bf16 %v342_v62, %v341_v61  ;;  %v343_v10 = vld [vmem:[%s5075_s8 + $0xe0] sm:$0xff] }
  0x21   : > { %4185 = vmatprep.subr.bf16.mxu1 %v534_v46  ;;  %v325_v5 = vld [vmem:[%s5075_s8 + $0x50] sm:$0xff]  ;;  %v326_v6 = vld [vmem:[%s5075_s8 + $0x58] sm:$0xff]  ;;  %v536_v8 = vpack.c.bf16 %v374_v0, %v373_v63  ;;  %v344_v11 = vld [vmem:[%s5075_s8 + $0xe8] sm:$0xff] }
  0x22   : > { %v357_v7 = vld [vmem:[%s5075_s8 + $0x150] sm:$0xff]  ;;  %v358_v9 = vld [vmem:[%s5075_s8 + $0x158] sm:$0xff]  ;;  %v375_v12 = vld [vmem:[%s5075_s8 + $0x1e0] sm:$0xff]  ;;  %v512_v14 = vpack.c.bf16 %v326_v6, %v325_v5  ;;  %v521_v16 = vpack.c.bf16 %v344_v11, %v343_v10 }
  0x23   : > { %4098 = vmatpush3.bf16.msra.mxu0 %v510_v53  ;;  %v376_v13 = vld [vmem:[%s5075_s8 + $0x1e8] sm:$0xff]  ;;  %v528_v15 = vpack.c.bf16 %v358_v9, %v357_v7  ;;  %v327_v17 = vld [vmem:[%s5075_s8 + $0x60] sm:$0xff]  ;;  %v345_v22 = vld [vmem:[%s5075_s8 + $0xf0] sm:$0xff] }
  0x24   : > { %4186 = vmatpush3.bf16.msra.mxu1 %v526_v54  ;;  %4099 = vmatprep.subr.bf16.mxu0 %v519_v55  ;;  %v328_v18 = vld [vmem:[%s5075_s8 + $0x68] sm:$0xff]  ;;  %v359_v19 = vld [vmem:[%s5075_s8 + $0x160] sm:$0xff]  ;;  %v537_v20 = vpack.c.bf16 %v376_v13, %v375_v12  ;;  %v346_v23 = vld [vmem:[%s5075_s8 + $0xf8] sm:$0xff] }
  0x25   : > { %4187 = vmatprep.subr.bf16.mxu1 %v535_v59  ;;  %v360_v21 = vld [vmem:[%s5075_s8 + $0x168] sm:$0xff]  ;;  %v377_v24 = vld [vmem:[%s5075_s8 + $0x1f0] sm:$0xff]  ;;  %v378_v25 = vld [vmem:[%s5075_s8 + $0x1f8] sm:$0xff]  ;;  %v513_v26 = vpack.c.bf16 %v328_v18, %v327_v17  ;;  %v522_v28 = vpack.c.bf16 %v346_v23, %v345_v22 }
  0x26   : > { %v529_v27 = vpack.c.bf16 %v360_v21, %v359_v19  ;;  %v329_v29 = vld [vmem:[%s5075_s8 + $0x70] sm:$0xff]  ;;  %v330_v30 = vld [vmem:[%s5075_s8 + $0x78] sm:$0xff]  ;;  %v538_v32 = vpack.c.bf16 %v378_v25, %v377_v24  ;;  %v395_v34 = vld [vmem:[%s5075_s8 + $0x280] sm:$0xff] }
  0x27   : > { %4100 = vmatpush3.bf16.msra.mxu0 %v511_v2  ;;  %v361_v31 = vld [vmem:[%s5075_s8 + $0x170] sm:$0xff]  ;;  %v362_v33 = vld [vmem:[%s5075_s8 + $0x178] sm:$0xff]  ;;  %v396_v35 = vld [vmem:[%s5075_s8 + $0x288] sm:$0xff]  ;;  %v514_v38 = vpack.c.bf16 %v330_v30, %v329_v29 }
  0x28   : > { %4188 = vmatpush3.bf16.msra.mxu1 %v527_v3  ;;  %4101 = vmatprep.subr.bf16.mxu0 %v520_v4  ;;  %v427_v36 = vld [vmem:[%s5075_s8 + $0x380] sm:$0xff]  ;;  %v428_v37 = vld [vmem:[%s5075_s8 + $0x388] sm:$0xff]  ;;  %v530_v39 = vpack.c.bf16 %v362_v33, %v361_v31  ;;  %v547_v41 = vpack.c.bf16 %v396_v35, %v395_v34  ;;  %v397_v48 = vld [vmem:[%s5075_s8 + $0x290] sm:$0xff] }
  0x29   : > { %4189 = vmatprep.subr.bf16.mxu1 %v536_v8  ;;  %v4671_v40 = vld [vmem:[%s6654_s1] ss:$48 sps:$4 sm:$0xff]   ;;  %v380_v43 = vld [vmem:[%s5075_s8 + $0x208] sm:$0xff]  ;;  %v563_v45 = vpack.c.bf16 %v428_v37, %v427_v36  ;;  %v4677_v49 = vld [vmem:[%s6654_s1 + $0x64] ss:$48 sps:$4 sm:$0xff]  }
  0x2a   : > { %v379_v42 = vld [vmem:[%s5075_s8 + $0x200] sm:$0xff]  ;;  %v4674_v44 = vld [vmem:[%s6654_s1 + $0x8] ss:$48 sps:$4 sm:$0xff]   ;;  %v4679_v50 = vld [vmem:[%s6654_s1 + $0x6c] ss:$48 sps:$4 sm:$0xff]  }
  0x2b   : > { %4102 = vmatpush3.bf16.msra.mxu0 %v512_v14  ;;  %v411_v46 = vld [vmem:[%s5075_s8 + $0x300] sm:$0xff]  ;;  %v412_v47 = vld [vmem:[%s5075_s8 + $0x308] sm:$0xff]  ;;  %v398_v51 = vld [vmem:[%s5075_s8 + $0x298] sm:$0xff]  ;;  %v539_v54 = vpack.c.bf16 %v380_v43, %v379_v42 }
  0x2c   : > { %4190 = vmatpush3.bf16.msra.mxu1 %v528_v15  ;;  %4103 = vmatprep.subr.bf16.mxu0 %v521_v16  ;;  %v381_v52 = vld [vmem:[%s5075_s8 + $0x210] sm:$0xff]  ;;  %v430_v55 = vld [vmem:[%s5075_s8 + $0x398] sm:$0xff]  ;;  %v555_v57 = vpack.c.bf16 %v412_v47, %v411_v46  ;;  %v548_v58 = vpack.c.bf16 %v398_v51, %v397_v48  ;;  %v399_v60 = vld [vmem:[%s5075_s8 + $0x2a0] sm:$0xff] }
  0x2d   : > { %4191 = vmatprep.subr.bf16.mxu1 %v537_v20  ;;  %v429_v53 = vld [vmem:[%s5075_s8 + $0x390] sm:$0xff]  ;;  %v382_v56 = vld [vmem:[%s5075_s8 + $0x218] sm:$0xff]  ;;  %v400_v61 = vld [vmem:[%s5075_s8 + $0x2a8] sm:$0xff] }
  0x2e   : > { %v413_v59 = vld [vmem:[%s5075_s8 + $0x310] sm:$0xff]  ;;  %v564_v62 = vpack.c.bf16 %v430_v55, %v429_v53  ;;  %v414_v63 = vld [vmem:[%s5075_s8 + $0x318] sm:$0xff]  ;;  %v431_v0 = vld [vmem:[%s5075_s8 + $0x3a0] sm:$0xff]  ;;  %v540_v2 = vpack.c.bf16 %v382_v56, %v381_v52  ;;  %v549_v5 = vpack.c.bf16 %v400_v61, %v399_v60 }
  0x2f   : > { %4104 = vmatpush3.bf16.msra.mxu0 %v513_v26  ;;  %v432_v3 = vld [vmem:[%s5075_s8 + $0x3a8] sm:$0xff]  ;;  %v4681_v4 = vld [vmem:[%s6654_s1 + $0x60] ss:$48 sps:$4 sm:$0xff]   ;;  %v4683_v7 = vld [vmem:[%s6654_s1 + $0xc4] ss:$48 sps:$4 sm:$0xff]   ;;  %v556_v8 = vpack.c.bf16 %v414_v63, %v413_v59 }
  0x30   : > { %4192 = vmatpush3.bf16.msra.mxu1 %v529_v27  ;;  %4105 = vmatprep.subr.bf16.mxu0 %v522_v28  ;;  %v4682_v6 = vld [vmem:[%s6654_s1 + $0x68] ss:$48 sps:$4 sm:$0xff]   ;;  %v383_v9 = vld [vmem:[%s5075_s8 + $0x220] sm:$0xff]  ;;  %v565_v12 = vpack.c.bf16 %v432_v3, %v431_v0  ;;  %v401_v14 = vld [vmem:[%s5075_s8 + $0x2b0] sm:$0xff] }
  0x31   : > { %4193 = vmatprep.subr.bf16.mxu1 %v538_v32  ;;  %v384_v10 = vld [vmem:[%s5075_s8 + $0x228] sm:$0xff]  ;;  %v415_v11 = vld [vmem:[%s5075_s8 + $0x320] sm:$0xff]  ;;  %v402_v15 = vld [vmem:[%s5075_s8 + $0x2b8] sm:$0xff] }
  0x32   : > { %v416_v13 = vld [vmem:[%s5075_s8 + $0x328] sm:$0xff]  ;;  %v433_v17 = vld [vmem:[%s5075_s8 + $0x3b0] sm:$0xff]  ;;  %v434_v18 = vld [vmem:[%s5075_s8 + $0x3b8] sm:$0xff]  ;;  %v541_v19 = vpack.c.bf16 %v384_v10, %v383_v9  ;;  %v550_v22 = vpack.c.bf16 %v402_v15, %v401_v14 }
  0x33   : > { %4106 = vmatpush3.bf16.msra.mxu0 %v514_v38  ;;  %v4685_v16 = vld [vmem:[%s6654_s1 + $0xcc] ss:$48 sps:$4 sm:$0xff]   ;;  %v385_v20 = vld [vmem:[%s5075_s8 + $0x230] sm:$0xff]  ;;  %v557_v21 = vpack.c.bf16 %v416_v13, %v415_v11  ;;  %v566_v24 = vpack.c.bf16 %v434_v18, %v433_v17  ;;  %v403_v27 = vld [vmem:[%s5075_s8 + $0x2c0] sm:$0xff] }
  0x34   : > { %4194 = vmatpush3.bf16.msra.mxu1 %v530_v39  ;;  %4267 = vmatprep.subr.bf16.mxu0 %v547_v41  ;;  %v386_v23 = vld [vmem:[%s5075_s8 + $0x238] sm:$0xff]  ;;  %v417_v25 = vld [vmem:[%s5075_s8 + $0x330] sm:$0xff]  ;;  %v404_v28 = vld [vmem:[%s5075_s8 + $0x2c8] sm:$0xff] }
  0x35   : > { %4355 = vmatprep.subr.bf16.mxu1 %v563_v45  ;;  %v418_v26 = vld [vmem:[%s5075_s8 + $0x338] sm:$0xff]  ;;  %v387_v29 = vld [vmem:[%s5075_s8 + $0x240] sm:$0xff]  ;;  %v542_v30 = vpack.c.bf16 %v386_v23, %v385_v20  ;;  %v436_v32 = vld [vmem:[%s5075_s8 + $0x3c8] sm:$0xff]  ;;  %v551_v34 = vpack.c.bf16 %v404_v28, %v403_v27 }
  0x36   : > { %1644 = vmatmul.mubr.bf16.vlgmr.msra.gmra.mrb[0].mxu0 %v4671_v40  ;;  %v435_v31 = vld [vmem:[%s5075_s8 + $0x3c0] sm:$0xff]  ;;  %v558_v33 = vpack.c.bf16 %v418_v26, %v417_v25  ;;  %v388_v35 = vld [vmem:[%s5075_s8 + $0x248] sm:$0xff]  ;;  %v405_v45 = vld [vmem:[%s5075_s8 + $0x2d0] sm:$0xff] }
  0x37   : > { %1773 = vmatmul.mubr.bf16.vlgmr.msra.gmra.mrb[0].mxu1 %v4674_v44  ;;  %4268 = vmatpush3.bf16.msra.mxu0 %v539_v54  ;;  %v4687_v36 = vld [vmem:[%s6654_s1 + $0xc0] ss:$48 sps:$4 sm:$0xff]   ;;  %v567_v37 = vpack.c.bf16 %v436_v32, %v435_v31  ;;  %v4688_v39 = vld [vmem:[%s6654_s1 + $0xc8] ss:$48 sps:$4 sm:$0xff]   ;;  %v4689_v40 = vld [vmem:[%s6654_s1 + $0x124] ss:$48 sps:$4 sm:$0xff]   ;;  %v543_v43 = vpack.c.bf16 %v388_v35, %v387_v29 }
  0x38   : > { %1651 = vmatprep.mubr.bf16.mxu0 %v4677_v49  ;;  %1780 = vmatprep.mubr.bf16.mxu1 %v4679_v50  ;;  %v419_v38 = vld [vmem:[%s5075_s8 + $0x340] sm:$0xff]  ;;  %v420_v41 = vld [vmem:[%s5075_s8 + $0x348] sm:$0xff]  ;;  %v406_v46 = vld [vmem:[%s5075_s8 + $0x2d8] sm:$0xff] }
  0x39   : > { %4356 = vmatpush3.bf16.msra.mxu1 %v555_v57  ;;  %4269 = vmatprep.subr.bf16.mxu0 %v548_v58  ;;  %v4691_v42 = vld [vmem:[%s6654_s1 + $0x12c] ss:$48 sps:$4 sm:$0xff]   ;;  %v559_v44 = vpack.c.bf16 %v420_v41, %v419_v38  ;;  %v389_v47 = vld [vmem:[%s5075_s8 + $0x250] sm:$0xff]  ;;  %v552_v49 = vpack.c.bf16 %v406_v46, %v405_v45  ;;  %v4694_v58 = vld [vmem:[%s6654_s1 + $0x128] ss:$48 sps:$4 sm:$0xff]  }
  0x3a   : > { %4357 = vmatprep.subr.bf16.mxu1 %v564_v62  ;;  %v390_v48 = vld [vmem:[%s5075_s8 + $0x258] sm:$0xff]  ;;  %v437_v51 = vld [vmem:[%s5075_s8 + $0x3d0] sm:$0xff]  ;;  %v407_v61 = vld [vmem:[%s5075_s8 + $0x2e0] sm:$0xff] }
  0x3b   : > { %4270 = vmatpush3.bf16.msra.mxu0 %v540_v2  ;;  %v544_v50 = vpack.c.bf16 %v390_v48, %v389_v47  ;;  %v438_v52 = vld [vmem:[%s5075_s8 + $0x3d8] sm:$0xff]  ;;  %v421_v53 = vld [vmem:[%s5075_s8 + $0x350] sm:$0xff]  ;;  %v408_v62 = vld [vmem:[%s5075_s8 + $0x2e8] sm:$0xff] }
  0x3c   : > { %4271 = vmatprep.subr.bf16.mxu0 %v549_v5  ;;  %v568_v54 = vpack.c.bf16 %v438_v52, %v437_v51  ;;  %v422_v55 = vld [vmem:[%s5075_s8 + $0x358] sm:$0xff]  ;;  %v4693_v56 = vld [vmem:[%s6654_s1 + $0x120] ss:$48 sps:$4 sm:$0xff]   ;;  %v4695_v59 = vld [vmem:[%s6654_s1 + $0x184] ss:$48 sps:$4 sm:$0xff]   ;;  %v553_v0 = vpack.c.bf16 %v408_v62, %v407_v61 }
  0x3d   : > { %4358 = vmatpush3.bf16.msra.mxu1 %v556_v8  ;;  %v560_v57 = vpack.c.bf16 %v422_v55, %v421_v53  ;;  %v4697_v60 = vld [vmem:[%s6654_s1 + $0x18c] ss:$48 sps:$4 sm:$0xff]   ;;  %v391_v63 = vld [vmem:[%s5075_s8 + $0x260] sm:$0xff]  ;;  %v409_v15 = vld [vmem:[%s5075_s8 + $0x2f0] sm:$0xff] }
  0x3e   : > { %1652 = vmatmul.mubr.bf16.gmra.mrb[4].mxu0 %v4681_v4  ;;  %4359 = vmatprep.subr.bf16.mxu1 %v565_v12  ;;  %v392_v2 = vld [vmem:[%s5075_s8 + $0x268] sm:$0xff]  ;;  %v439_v3 = vld [vmem:[%s5075_s8 + $0x3e0] sm:$0xff]  ;;  %v394_v20 = vld [vmem:[%s5075_s8 + $0x278] sm:$0xff] }
  0x3f   : > { %1781 = vmatmul.mubr.bf16.gmra.mrb[4].mxu1 %v4682_v6  ;;  %1659 = vmatprep.mubr.bf16.mxu0 %v4683_v7  ;;  %v440_v4 = vld [vmem:[%s5075_s8 + $0x3e8] sm:$0xff]  ;;  %v545_v5 = vpack.c.bf16 %v392_v2, %v391_v63  ;;  %v423_v7 = vld [vmem:[%s5075_s8 + $0x360] sm:$0xff]  ;;  %v442_v23 = vld [vmem:[%s5075_s8 + $0x3f8] sm:$0xff] }
  0x40   : > { %1788 = vmatprep.mubr.bf16.mxu1 %v4685_v16  ;;  %4272 = vmatpush3.bf16.msra.mxu0 %v541_v19  ;;  %v569_v6 = vpack.c.bf16 %v440_v4, %v439_v3  ;;  %v424_v8 = vld [vmem:[%s5075_s8 + $0x368] sm:$0xff]  ;;  %v747_v10 = vld [vmem:[%s6655_s2] sm:$0xff]  ;;  %v410_v16 = vld [vmem:[%s5075_s8 + $0x2f8] sm:$0xff] }
  0x41   : > { %4360 = vmatpush3.bf16.msra.mxu1 %v557_v21  ;;  %4273 = vmatprep.subr.bf16.mxu0 %v550_v22  ;;  %v561_v9 = vpack.c.bf16 %v424_v8, %v423_v7  ;;  %v4699_v11 = vld [vmem:[%s6654_s1 + $0x180] ss:$48 sps:$4 sm:$0xff]   ;;  %v4700_v12 = vld [vmem:[%s6654_s1 + $0x188] ss:$48 sps:$4 sm:$0xff]   ;;  %v4701_v13 = vld [vmem:[%s6654_s1 + $0x1e4] ss:$48 sps:$4 sm:$0xff]   ;;  %v554_v17 = vpack.c.bf16 %v410_v16, %v409_v15 }
  0x42   : > { %4361 = vmatprep.subr.bf16.mxu1 %v566_v24  ;;  %773 = vperm.xlu0 %4669, %v747_v10   ;;  %v4703_v14 = vld [vmem:[%s6654_s1 + $0x1ec] ss:$48 sps:$4 sm:$0xff]   ;;  %v393_v19 = vld [vmem:[%s5075_s8 + $0x270] sm:$0xff]  ;;  %v459_v32 = vld [vmem:[%s5075_s8 + $0x480] sm:$0xff] }
  0x43   : > { %v748_v18 = vld [vmem:[%s6655_s2 + $0x8] sm:$0xff]  ;;  %v546_v21 = vpack.c.bf16 %v394_v20, %v393_v19  ;;  %v441_v22 = vld [vmem:[%s5075_s8 + $0x3f0] sm:$0xff]  ;;  %v426_v26 = vld [vmem:[%s5075_s8 + $0x378] sm:$0xff] }
  0x44   : > { %4274 = vmatpush3.bf16.msra.mxu0 %v542_v30  ;;  %v425_v24 = vld [vmem:[%s5075_s8 + $0x370] sm:$0xff]  ;;  %v570_v25 = vpack.c.bf16 %v442_v23, %v441_v22  ;;  %v4706_v30 = vld [vmem:[%s6654_s1 + $0x1e8] ss:$48 sps:$4 sm:$0xff]   ;;  %v4715_v46 = vld [vmem:[%s6654_s1 + $0x2ac] ss:$48 sps:$4 sm:$0xff]  }
  0x45   : > { %4362 = vmatpush3.bf16.msra.mxu1 %v558_v33  ;;  %4275 = vmatprep.subr.bf16.mxu0 %v551_v34  ;;  %v749_v27 = vld [vmem:[%s6655_s2 + $0x10] sm:$0xff]  ;;  %v562_v28 = vpack.c.bf16 %v426_v26, %v425_v24  ;;  %v4709_v33 = vld [vmem:[%s6654_s1 + $0x24c] ss:$48 sps:$4 sm:$0xff]   ;;  %v755_v48 = vld [vmem:[%s6655_s2 + $0x40] sm:$0xff] }
  0x46   : > { %1660 = vmatmul.mubr.bf16.gmra.mrb[8].mxu0 %v4687_v36  ;;  %4363 = vmatprep.subr.bf16.mxu1 %v567_v37  ;;  %v4705_v29 = vld [vmem:[%s6654_s1 + $0x1e0] ss:$48 sps:$4 sm:$0xff]   ;;  %v4707_v31 = vld [vmem:[%s6654_s1 + $0x244] ss:$48 sps:$4 sm:$0xff]   ;;  %v750_v34 = vld [vmem:[%s6655_s2 + $0x18] sm:$0xff] }
  0x47   : > { %1789 = vmatmul.mubr.bf16.gmra.mrb[8].mxu1 %v4688_v39  ;;  %1667 = vmatprep.mubr.bf16.mxu0 %v4689_v40  ;;  %v460_v35 = vld [vmem:[%s5075_s8 + $0x488] sm:$0xff]  ;;  %v491_v37 = vld [vmem:[%s5075_s8 + $0x580] sm:$0xff]  ;;  %v754_v47 = vld [vmem:[%s6655_s2 + $0x38] sm:$0xff] }
  0x48   : > { %1796 = vmatprep.mubr.bf16.mxu1 %v4691_v42  ;;  %4276 = vmatpush3.bf16.msra.mxu0 %v543_v43  ;;  %v579_v36 = vpack.c.bf16 %v460_v35, %v459_v32  ;;  %v492_v38 = vld [vmem:[%s5075_s8 + $0x588] sm:$0xff]  ;;  %v751_v39 = vld [vmem:[%s6655_s2 + $0x20] sm:$0xff]  ;;  %v753_v42 = vld [vmem:[%s6655_s2 + $0x30] sm:$0xff] }
  0x49   : > { %4364 = vmatpush3.bf16.msra.mxu1 %v559_v44  ;;  %4277 = vmatprep.subr.bf16.mxu0 %v552_v49  ;;  %v595_v40 = vpack.c.bf16 %v492_v38, %v491_v37  ;;  %v752_v41 = vld [vmem:[%s6655_s2 + $0x28] sm:$0xff]  ;;  %v4711_v43 = vld [vmem:[%s6654_s1 + $0x240] ss:$48 sps:$4 sm:$0xff]   ;;  %v4713_v45 = vld [vmem:[%s6654_s1 + $0x2a4] ss:$48 sps:$4 sm:$0xff]  }
  0x4a   : > { %4365 = vmatprep.subr.bf16.mxu1 %v568_v54  ;;  %778 = vperm.xlu0 %4669, %v748_v18   ;;  %v4712_v44 = vld [vmem:[%s6654_s1 + $0x248] ss:$48 sps:$4 sm:$0xff]   ;;  %v757_v49 = vld [vmem:[%s6655_s2 + $0x50] sm:$0xff]  ;;  %v759_v52 = vld [vmem:[%s6655_s2 + $0x60] sm:$0xff] }
  0x4b   : > { %783 = vperm.xlu1 %4670, %v749_v27   ;;  %v756_v51 = vld [vmem:[%s6655_s2 + $0x48] sm:$0xff]  ;;  %v4719_v54 = vld [vmem:[%s6654_s1 + $0x304] ss:$48 sps:$4 sm:$0xff]   ;;  %v4729_v4 = vld [vmem:[%s6654_s1 + $0x360] ss:$48 sps:$4 sm:$0xff]  }
  0x4c   : > { %4278 = vmatpush3.bf16.msra.mxu0 %v544_v50  ;;  %v4717_v50 = vld [vmem:[%s6654_s1 + $0x2a0] ss:$48 sps:$4 sm:$0xff]   ;;  %v4718_v53 = vld [vmem:[%s6654_s1 + $0x2a8] ss:$48 sps:$4 sm:$0xff]   ;;  %v4721_v55 = vld [vmem:[%s6654_s1 + $0x30c] ss:$48 sps:$4 sm:$0xff]  }
  0x4d   : > { %4366 = vmatpush3.bf16.msra.mxu1 %v560_v57  ;;  %4279 = vmatprep.subr.bf16.mxu0 %v553_v0  ;;  %v761_v57 = vld [vmem:[%s6655_s2 + $0x70] sm:$0xff]  ;;  %v763_v61 = vld [vmem:[%s6655_s2 + $0x80] sm:$0xff]  ;;  %v4727_v63 = vld [vmem:[%s6654_s1 + $0x36c] ss:$48 sps:$4 sm:$0xff]  }
  0x4e   : > { %1668 = vmatmul.mubr.bf16.gmra.mrb[12].mxu0 %v4693_v56  ;;  %4367 = vmatprep.subr.bf16.mxu1 %v569_v6  ;;  %v758_v56 = vld [vmem:[%s6655_s2 + $0x58] sm:$0xff]  ;;  %v4725_v62 = vld [vmem:[%s6654_s1 + $0x364] ss:$48 sps:$4 sm:$0xff]   ;;  %v764_v3 = vld [vmem:[%s6655_s2 + $0x88] sm:$0xff] }
  0x4f   : > { %1797 = vmatmul.mubr.bf16.gmra.mrb[12].mxu1 %v4694_v58  ;;  %1675 = vmatprep.mubr.bf16.mxu0 %v4695_v59  ;;  %v4723_v58 = vld [vmem:[%s6654_s1 + $0x300] ss:$48 sps:$4 sm:$0xff]   ;;  %v4724_v59 = vld [vmem:[%s6654_s1 + $0x308] ss:$48 sps:$4 sm:$0xff]   ;;  %v4731_v7 = vld [vmem:[%s6654_s1 + $0x3c4] ss:$48 sps:$4 sm:$0xff]  }
  0x50   : > { %1804 = vmatprep.mubr.bf16.mxu1 %v4697_v60  ;;  %4280 = vmatpush3.bf16.msra.mxu0 %v545_v5  ;;  %v760_v60 = vld [vmem:[%s6655_s2 + $0x68] sm:$0xff]  ;;  %v762_v0 = vld [vmem:[%s6655_s2 + $0x78] sm:$0xff]  ;;  %v765_v2 = vld [vmem:[%s6655_s2 + $0x90] sm:$0xff] }
  0x51   : > { %4368 = vmatpush3.bf16.msra.mxu1 %v561_v9  ;;  %4281 = vmatprep.subr.bf16.mxu0 %v554_v17  ;;  %v767_v5 = vld [vmem:[%s6655_s2 + $0xa0] sm:$0xff]  ;;  %v4730_v6 = vld [vmem:[%s6654_s1 + $0x368] ss:$48 sps:$4 sm:$0xff]   ;;  %v4733_v8 = vld [vmem:[%s6654_s1 + $0x3cc] ss:$48 sps:$4 sm:$0xff]  }
  0x52   : > { %4369 = vmatprep.subr.bf16.mxu1 %v570_v25  ;;  %793 = vperm.xlu0 %4669, %v751_v39   ;;  %v766_v9 = vld [vmem:[%s6655_s2 + $0x98] sm:$0xff]  ;;  %v769_v10 = vld [vmem:[%s6655_s2 + $0xb0] sm:$0xff]  ;;  %v2489_v22 = vld [vmem:[%s6657_s4 + $0x20] sm:$0xff] }
  0x53   : > { %788 = vperm.xlu1 %4670, %v750_v34   ;;  %v4737_v15 = vld [vmem:[%s6654_s1 + $0x424] ss:$48 sps:$4 sm:$0xff]   ;;  %v4739_v16 = vld [vmem:[%s6654_s1 + $0x42c] ss:$48 sps:$4 sm:$0xff]   ;;  %v4741_v19 = vld [vmem:[%s6654_s1 + $0x420] ss:$48 sps:$4 sm:$0xff]  }
  0x54   : > { %4282 = vmatpush3.bf16.msra.mxu0 %v546_v21  ;;  %v770_v17 = vld [vmem:[%s6655_s2 + $0xb8] sm:$0xff]  ;;  %v2487_v18 = vld [vmem:[%s6657_s4 + $0x10] sm:$0xff]  ;;  %v2486_v21 = vld [vmem:[%s6657_s4 + $0x8] sm:$0xff] }
  0x55   : > { %4370 = vmatpush3.bf16.msra.mxu1 %v562_v28  ;;  %4443 = vmatprep.subr.bf16.mxu0 %v579_v36  ;;  %v4742_v20 = vld [vmem:[%s6654_s1 + $0x428] ss:$48 sps:$4 sm:$0xff]   ;;  %v4745_v23 = vld [vmem:[%s6654_s1 + $0x14] ss:$48 sps:$4 sm:$0xff]   ;;  %v4748_v24 = vld [vmem:[%s6654_s1 + $0x1c] ss:$48 sps:$4 sm:$0xff]  }
  0x56   : > { %1676 = vmatmul.mubr.bf16.gmra.mrb[16].mxu0 %v4699_v11  ;;  %4531 = vmatprep.subr.bf16.mxu1 %v595_v40  ;;  %v768_v11 = vld [vmem:[%s6655_s2 + $0xa8] sm:$0xff]  ;;  %v2488_v25 = vld [vmem:[%s6657_s4 + $0x18] sm:$0xff]  ;;  %v2491_v26 = vld [vmem:[%s6657_s4 + $0x30] sm:$0xff] }
  0x57   : > { %1805 = vmatmul.mubr.bf16.gmra.mrb[16].mxu1 %v4700_v12  ;;  %1683 = vmatprep.mubr.bf16.mxu0 %v4701_v13  ;;  %v4735_v12 = vld [vmem:[%s6654_s1 + $0x3c0] ss:$48 sps:$4 sm:$0xff]   ;;  %v4736_v13 = vld [vmem:[%s6654_s1 + $0x3c8] ss:$48 sps:$4 sm:$0xff]   ;;  %v4749_v34 = vld [vmem:[%s6654_s1 + $0x74] ss:$48 sps:$4 sm:$0xff]  }
  0x58   : > { %1812 = vmatprep.mubr.bf16.mxu1 %v4703_v14  ;;  %803 = vperm.xlu0 %4669, %v753_v42   ;;  %v2485_v14 = vld [vmem:[%s6657_s4] sm:$0xff]  ;;  %v444_v28 = vld [vmem:[%s5075_s8 + $0x408] sm:$0xff]  ;;  %v461_v36 = vld [vmem:[%s5075_s8 + $0x490] sm:$0xff] }
  0x59   : > { %798 = vperm.xlu1 %4670, %v752_v41   ;;  %v443_v27 = vld [vmem:[%s5075_s8 + $0x400] sm:$0xff]  ;;  %v4746_v32 = vld [vmem:[%s6654_s1 + $0x18] ss:$48 sps:$4 sm:$0xff]   ;;  %v4751_v35 = vld [vmem:[%s6654_s1 + $0x7c] ss:$48 sps:$4 sm:$0xff]  }
  0x5a   : > { %v462_v37 = vld [vmem:[%s5075_s8 + $0x498] sm:$0xff]  ;;  %v2493_v38 = vld [vmem:[%s6657_s4 + $0x40] sm:$0xff]  ;;  %v571_v39 = vpack.c.bf16 %v444_v28, %v443_v27  ;;  %v445_v40 = vld [vmem:[%s5075_s8 + $0x410] sm:$0xff] }
  0x5b   : > { %v493_v41 = vld [vmem:[%s5075_s8 + $0x590] sm:$0xff]  ;;  %v494_v42 = vld [vmem:[%s5075_s8 + $0x598] sm:$0xff] }
  0x5c   : > { %813 = vperm.xlu0 %4669, %v755_v48   ;;  %v596_v48 = vpack.c.bf16 %v494_v42, %v493_v41 }
  0x5d   : > { %808 = vperm.xlu1 %4670, %v754_v47   ;;  %v464_v47 = vld [vmem:[%s5075_s8 + $0x4a8] sm:$0xff] }
  0x5e   : > { %1684 = vmatmul.mubr.bf16.gmra.mrb[20].mxu0 %v4705_v29  ;;  %v4743_v29 = vld [vmem:[%s6654_s1 + $0x10] ss:$48 sps:$4 sm:$0xff]  }
  0x5f   : > { %1813 = vmatmul.mubr.bf16.gmra.mrb[20].mxu1 %v4706_v30  ;;  %1691 = vmatprep.mubr.bf16.mxu0 %v4707_v31  ;;  %v475_v30 = vld [vmem:[%s5075_s8 + $0x500] sm:$0xff]  ;;  %v476_v31 = vld [vmem:[%s5075_s8 + $0x508] sm:$0xff] }
  0x60   : > { %1820 = vmatprep.mubr.bf16.mxu1 %v4709_v33  ;;  %823 = vperm.xlu0 %4669, %v757_v49   ;;  %v2490_v33 = vld [vmem:[%s6657_s4 + $0x28] sm:$0xff]  ;;  %v477_v49 = vld [vmem:[%s5075_s8 + $0x510] sm:$0xff] }
  0x61   : > { %818 = vperm.xlu1 %4670, %v756_v51  }
  0x64   : > { %833 = vperm.xlu0 %4669, %v759_v52   ;;  %v495_v52 = vld [vmem:[%s5075_s8 + $0x5a0] sm:$0xff] }
  0x65   : > { %828 = vperm.xlu1 %4670, %v758_v56  }
  0x66   : > { %1692 = vmatmul.mubr.bf16.gmra.mrb[24].mxu0 %v4711_v43  ;;  %v446_v43 = vld [vmem:[%s5075_s8 + $0x418] sm:$0xff] }
  0x67   : > { %1821 = vmatmul.mubr.bf16.gmra.mrb[24].mxu1 %v4712_v44  ;;  %1699 = vmatprep.mubr.bf16.mxu0 %v4713_v45  ;;  %v463_v44 = vld [vmem:[%s5075_s8 + $0x4a0] sm:$0xff]  ;;  %v587_v45 = vpack.c.bf16 %v476_v31, %v475_v30  ;;  %v572_v51 = vpack.c.bf16 %v446_v43, %v445_v40  ;;  %v484_v31 = vld [vmem:[%s5075_s8 + $0x548] sm:$0xff]  ;;  %v454_v40 = vld [vmem:[%s5075_s8 + $0x458] sm:$0xff] }
  0x68   : > { %1828 = vmatprep.mubr.bf16.mxu1 %v4715_v46  ;;  %843 = vperm.xlu0 %4669, %v761_v57   ;;  %v580_v46 = vpack.c.bf16 %v462_v37, %v461_v36  ;;  %v581_v56 = vpack.c.bf16 %v464_v47, %v463_v44  ;;  %v447_v57 = vld [vmem:[%s5075_s8 + $0x420] sm:$0xff]  ;;  %v501_v36 = vld [vmem:[%s5075_s8 + $0x5d0] sm:$0xff]  ;;  %v486_v44 = vld [vmem:[%s5075_s8 + $0x558] sm:$0xff] }
  0x69   : > { %838 = vperm.xlu1 %4670, %v760_v60   ;;  %v4755_v60 = vld [vmem:[%s6654_s1 + $0xd4] ss:$48 sps:$4 sm:$0xff]   ;;  %v472_v47 = vld [vmem:[%s5075_s8 + $0x4e8] sm:$0xff] }
  0x6a   : > { %v483_v30 = vld [vmem:[%s5075_s8 + $0x540] sm:$0xff]  ;;  %v453_v37 = vld [vmem:[%s5075_s8 + $0x450] sm:$0xff] }
  0x6b   : > { %v591_v41 = vpack.c.bf16 %v484_v31, %v483_v30  ;;  %v485_v43 = vld [vmem:[%s5075_s8 + $0x550] sm:$0xff]  ;;  %v4781_v30 = vld [vmem:[%s6654_s1 + $0x25c] ss:$48 sps:$4 sm:$0xff]  }
  0x6c   : > { %853 = vperm.xlu0 %4669, %v763_v61   ;;  %v2506_v31 = vld [vmem:[%s6657_s4 + $0xa8] sm:$0xff] }
  0x6d   : > { %848 = vperm.xlu1 %4670, %v762_v0   ;;  %v480_v0 = vld [vmem:[%s5075_s8 + $0x528] sm:$0xff] }
  0x6e   : > { %1700 = vmatmul.mubr.bf16.gmra.mrb[28].mxu0 %v4717_v50  ;;  %v478_v50 = vld [vmem:[%s5075_s8 + $0x518] sm:$0xff] }
  0x6f   : > { %1829 = vmatmul.mubr.bf16.gmra.mrb[28].mxu1 %v4718_v53  ;;  %1707 = vmatprep.mubr.bf16.mxu0 %v4719_v54  ;;  %v496_v53 = vld [vmem:[%s5075_s8 + $0x5a8] sm:$0xff]  ;;  %v2492_v54 = vld [vmem:[%s6657_s4 + $0x38] sm:$0xff]  ;;  %v588_v61 = vpack.c.bf16 %v478_v50, %v477_v49  ;;  %v503_v49 = vld [vmem:[%s5075_s8 + $0x5e0] sm:$0xff] }
  0x70   : > { %1836 = vmatprep.mubr.bf16.mxu1 %v4721_v55  ;;  %863 = vperm.xlu0 %4669, %v765_v2   ;;  %v4753_v55 = vld [vmem:[%s6654_s1 + $0x70] ss:$48 sps:$4 sm:$0xff]   ;;  %v4757_v2 = vld [vmem:[%s6654_s1 + $0xdc] ss:$48 sps:$4 sm:$0xff]  }
  0x71   : > { %858 = vperm.xlu1 %4670, %v764_v3   ;;  %v597_v3 = vpack.c.bf16 %v496_v53, %v495_v52  ;;  %v504_v50 = vld [vmem:[%s5075_s8 + $0x5e8] sm:$0xff]  ;;  %v576_v52 = vpack.c.bf16 %v454_v40, %v453_v37  ;;  %v2499_v53 = vld [vmem:[%s6657_s4 + $0x70] sm:$0xff]  ;;  %v2513_v40 = vld [vmem:[%s6657_s4 + $0xe0] sm:$0xff] }
  0x72   : > { %v2511_v37 = vld [vmem:[%s6657_s4 + $0xd0] sm:$0xff] }
  0x74   : > { %873 = vperm.xlu0 %4669, %v767_v5   ;;  %v466_v5 = vld [vmem:[%s5075_s8 + $0x4b8] sm:$0xff] }
  0x75   : > { %868 = vperm.xlu1 %4670, %v766_v9  }
  0x76   : > { %1708 = vmatmul.mubr.bf16.gmra.mrb[32].mxu0 %v4723_v58  ;;  %v2495_v58 = vld [vmem:[%s6657_s4 + $0x50] sm:$0xff] }
  0x77   : > { %1837 = vmatmul.mubr.bf16.gmra.mrb[32].mxu1 %v4724_v59  ;;  %1715 = vmatprep.mubr.bf16.mxu0 %v4725_v62  ;;  %v4754_v59 = vld [vmem:[%s6654_s1 + $0x78] ss:$48 sps:$4 sm:$0xff]  }
  0x78   : > { %1844 = vmatprep.mubr.bf16.mxu1 %v4727_v63  ;;  %883 = vperm.xlu0 %4669, %v769_v10   ;;  %v448_v62 = vld [vmem:[%s5075_s8 + $0x428] sm:$0xff]  ;;  %v479_v63 = vld [vmem:[%s5075_s8 + $0x520] sm:$0xff]  ;;  %v450_v10 = vld [vmem:[%s5075_s8 + $0x438] sm:$0xff] }
  0x79   : > { %878 = vperm.xlu1 %4670, %v768_v11   ;;  %v573_v9 = vpack.c.bf16 %v448_v62, %v447_v57  ;;  %v481_v11 = vld [vmem:[%s5075_s8 + $0x530] sm:$0xff]  ;;  %v601_v62 = vpack.c.bf16 %v504_v50, %v503_v49  ;;  %v2516_v50 = vld [vmem:[%s6657_s4 + $0xf8] sm:$0xff] }
  0x7a   : > { %v4795_v49 = vld [vmem:[%s6654_s1 + $0x310] ss:$48 sps:$4 sm:$0xff]  }
  0x7c   : > { %2551 = vperm.xlu0 %4669, %v2485_v14   ;;  %v482_v14 = vld [vmem:[%s5075_s8 + $0x538] sm:$0xff] }
  0x7d   : > { %888 = vperm.xlu1 %4670, %v770_v17   ;;  %v468_v17 = vld [vmem:[%s5075_s8 + $0x4c8] sm:$0xff]  ;;  %v590_v27 = vpack.c.bf16 %v482_v14, %v481_v11  ;;  %v489_v11 = vld [vmem:[%s5075_s8 + $0x570] sm:$0xff] }
  0x7e   : > { %1716 = vmatmul.mubr.bf16.gmra.mrb[36].mxu0 %v4729_v4  ;;  %v465_v4 = vld [vmem:[%s5075_s8 + $0x4b0] sm:$0xff] }
  0x7f   : > { %1845 = vmatmul.mubr.bf16.gmra.mrb[36].mxu1 %v4730_v6  ;;  %1723 = vmatprep.mubr.bf16.mxu0 %v4731_v7  ;;  %v497_v6 = vld [vmem:[%s5075_s8 + $0x5b0] sm:$0xff] }
  0x80   : > { %1852 = vmatprep.mubr.bf16.mxu1 %v4733_v8  ;;  %2561 = vperm.xlu0 %4669, %v2487_v18   ;;  %v449_v7 = vld [vmem:[%s5075_s8 + $0x430] sm:$0xff]  ;;  %v498_v8 = vld [vmem:[%s5075_s8 + $0x5b8] sm:$0xff]  ;;  %v499_v18 = vld [vmem:[%s5075_s8 + $0x5c0] sm:$0xff] }
  0x81   : > { %2556 = vperm.xlu1 %4670, %v2486_v21   ;;  %v2494_v21 = vld [vmem:[%s6657_s4 + $0x48] sm:$0xff] }
  0x84   : > { %2571 = vperm.xlu0 %4669, %v2489_v22   ;;  %v4759_v22 = vld [vmem:[%s6654_s1 + $0xd0] ss:$48 sps:$4 sm:$0xff]  }
  0x85   : > { %2566 = vperm.xlu1 %4670, %v2488_v25   ;;  %v4760_v25 = vld [vmem:[%s6654_s1 + $0xd8] ss:$48 sps:$4 sm:$0xff]  }
  0x86   : > { %1724 = vmatmul.mubr.bf16.gmra.mrb[40].mxu0 %v4735_v12  ;;  %v589_v12 = vpack.c.bf16 %v480_v0, %v479_v63  ;;  %v488_v63 = vld [vmem:[%s5075_s8 + $0x568] sm:$0xff]  ;;  %v473_v0 = vld [vmem:[%s5075_s8 + $0x4f0] sm:$0xff] }
  0x87   : > { %1853 = vmatmul.mubr.bf16.gmra.mrb[40].mxu1 %v4736_v13  ;;  %1731 = vmatprep.mubr.bf16.mxu0 %v4737_v15  ;;  %v582_v13 = vpack.c.bf16 %v466_v5, %v465_v4  ;;  %v467_v15 = vld [vmem:[%s5075_s8 + $0x4c0] sm:$0xff]  ;;  %v506_v5 = vld [vmem:[%s5075_s8 + $0x5f8] sm:$0xff] }
  0x88   : > { %1860 = vmatprep.mubr.bf16.mxu1 %v4739_v16  ;;  %2581 = vperm.xlu0 %4669, %v2491_v26   ;;  %v598_v16 = vpack.c.bf16 %v498_v8, %v497_v6  ;;  %v4761_v26 = vld [vmem:[%s6654_s1 + $0x134] ss:$48 sps:$4 sm:$0xff]   ;;  %v583_v28 = vpack.c.bf16 %v468_v17, %v467_v15  ;;  %v458_v8 = vld [vmem:[%s5075_s8 + $0x478] sm:$0xff] }
  0x89   : > { %2576 = vperm.xlu1 %4670, %v2490_v33  }
  0x8c   : > { %2591 = vperm.xlu0 %4669, %v2493_v38   ;;  %v502_v38 = vld [vmem:[%s5075_s8 + $0x5d8] sm:$0xff] }
  0x8d   : > { %2586 = vperm.xlu1 %4670, %v2492_v54   ;;  %v4766_v54 = vld [vmem:[%s6654_s1 + $0x138] ss:$48 sps:$4 sm:$0xff]  }
  0x8e   : > { %1732 = vmatmul.mubr.bf16.gmra.mrb[44].mxu0 %v4741_v19  ;;  %v500_v19 = vld [vmem:[%s5075_s8 + $0x5c8] sm:$0xff] }
  0x8f   : > { %1861 = vmatmul.mubr.bf16.gmra.mrb[44].mxu1 %v4742_v20  ;;  %1901 = vmatprep.mubr.bf16.mxu0 %v4745_v23  ;;  %v451_v20 = vld [vmem:[%s5075_s8 + $0x440] sm:$0xff]  ;;  %v574_v23 = vpack.c.bf16 %v450_v10, %v449_v7  ;;  %v599_v33 = vpack.c.bf16 %v500_v19, %v499_v18  ;;  %v457_v7 = vld [vmem:[%s5075_s8 + $0x470] sm:$0xff]  ;;  %v4772_v18 = vld [vmem:[%s6654_s1 + $0x198] ss:$48 sps:$4 sm:$0xff]  }
  0x90   : > { %2030 = vmatprep.mubr.bf16.mxu1 %v4748_v24  ;;  %2601 = vperm.xlu0 %4669, %v2495_v58   ;;  %v2497_v24 = vld [vmem:[%s6657_s4 + $0x60] sm:$0xff]  ;;  %v578_v15 = vpack.c.bf16 %v458_v8, %v457_v7  ;;  %v4811_v7 = vld [vmem:[%s6654_s1 + $0x43c] ss:$48 sps:$4 sm:$0xff]  }
  0x91   : > { %2596 = vperm.xlu1 %4670, %v2494_v21   ;;  %v455_v58 = vld [vmem:[%s5075_s8 + $0x460] sm:$0xff]  ;;  %v2503_v21 = vld [vmem:[%s6657_s4 + $0x90] sm:$0xff]  ;;  %v2526_v8 = vld [vmem:[%s6657_s4 + $0x148] sm:$0xff] }
  0x92   : > { %v4773_v19 = vld [vmem:[%s6654_s1 + $0x1f4] ss:$48 sps:$4 sm:$0xff]  }
  0x94   : > { %2611 = vperm.xlu0 %4669, %v2497_v24   ;;  %v2505_v24 = vld [vmem:[%s6657_s4 + $0xa0] sm:$0xff] }
  0x96   : > { %1902 = vmatmul.mubr.bf16.vlgmr.msra.gmra.mrb[48].mxu0 %v4743_v29  ;;  %v452_v29 = vld [vmem:[%s5075_s8 + $0x448] sm:$0xff] }
  0x97   : > { %2031 = vmatmul.mubr.bf16.vlgmr.msra.gmra.mrb[48].mxu1 %v4746_v32  ;;  %4444 = vmatpush3.bf16.msra.mxu0 %v571_v39  ;;  %v4763_v32 = vld [vmem:[%s6654_s1 + $0x13c] ss:$48 sps:$4 sm:$0xff]   ;;  %v575_v39 = vpack.c.bf16 %v452_v29, %v451_v20  ;;  %v2507_v29 = vld [vmem:[%s6657_s4 + $0xb0] sm:$0xff] }
  0x98   : > { %1909 = vmatprep.mubr.bf16.mxu0 %v4749_v34  ;;  %2038 = vmatprep.mubr.bf16.mxu1 %v4751_v35  ;;  %v469_v34 = vld [vmem:[%s5075_s8 + $0x4d0] sm:$0xff]  ;;  %v470_v35 = vld [vmem:[%s5075_s8 + $0x4d8] sm:$0xff] }
  0x99   : > { %4532 = vmatpush3.bf16.msra.mxu1 %v587_v45  ;;  %4445 = vmatprep.subr.bf16.mxu0 %v580_v46  ;;  %v584_v42 = vpack.c.bf16 %v470_v35, %v469_v34  ;;  %v471_v45 = vld [vmem:[%s5075_s8 + $0x4e0] sm:$0xff]  ;;  %v600_v46 = vpack.c.bf16 %v502_v38, %v501_v36  ;;  %v2500_v20 = vld [vmem:[%s6657_s4 + $0x78] sm:$0xff] }
  0x9a   : > { %4533 = vmatprep.subr.bf16.mxu1 %v596_v48  ;;  %v2496_v48 = vld [vmem:[%s6657_s4 + $0x58] sm:$0xff]  ;;  %v585_v57 = vpack.c.bf16 %v472_v47, %v471_v45  ;;  %2621 = vperm.xlu0 %4669, %v2499_v53   ;;  %v4785_v35 = vld [vmem:[%s6654_s1 + $0x2b4] ss:$48 sps:$4 sm:$0xff]   ;;  %v2514_v47 = vld [vmem:[%s6657_s4 + $0xe8] sm:$0xff] }
  0x9b   : > { %4446 = vmatpush3.bf16.msra.mxu0 %v572_v51  ;;  %v4765_v51 = vld [vmem:[%s6654_s1 + $0x130] ss:$48 sps:$4 sm:$0xff]   ;;  %2606 = vperm.xlu1 %4670, %v2496_v48   ;;  %v4784_v34 = vld [vmem:[%s6654_s1 + $0x258] ss:$48 sps:$4 sm:$0xff]   ;;  %v4787_v38 = vld [vmem:[%s6654_s1 + $0x2bc] ss:$48 sps:$4 sm:$0xff]  }
  0x9c   : > { %4447 = vmatprep.subr.bf16.mxu0 %v581_v56  ;;  %v592_v56 = vpack.c.bf16 %v486_v44, %v485_v43  ;;  %v2508_v36 = vld [vmem:[%s6657_s4 + $0xb8] sm:$0xff]  ;;  %v4791_v44 = vld [vmem:[%s6654_s1 + $0x314] ss:$48 sps:$4 sm:$0xff]  }
  0x9d   : > { %4534 = vmatpush3.bf16.msra.mxu1 %v588_v61  ;;  %v4769_v61 = vld [vmem:[%s6654_s1 + $0x19c] ss:$48 sps:$4 sm:$0xff]   ;;  %v4790_v43 = vld [vmem:[%s6654_s1 + $0x2b8] ss:$48 sps:$4 sm:$0xff]   ;;  %v2515_v45 = vld [vmem:[%s6657_s4 + $0xf0] sm:$0xff] }
  0x9e   : > { %1910 = vmatmul.mubr.bf16.gmra.mrb[52].mxu0 %v4753_v55  ;;  %4535 = vmatprep.subr.bf16.mxu1 %v597_v3  ;;  %v4767_v55 = vld [vmem:[%s6654_s1 + $0x194] ss:$48 sps:$4 sm:$0xff]  }
  0x9f   : > { %2039 = vmatmul.mubr.bf16.gmra.mrb[52].mxu1 %v4754_v59  ;;  %1917 = vmatprep.mubr.bf16.mxu0 %v4755_v60  ;;  %v456_v59 = vld [vmem:[%s5075_s8 + $0x468] sm:$0xff]  ;;  %v487_v60 = vld [vmem:[%s5075_s8 + $0x560] sm:$0xff]  ;;  %v505_v3 = vld [vmem:[%s5075_s8 + $0x5f0] sm:$0xff] }
  0xa0   : > { %2046 = vmatprep.mubr.bf16.mxu1 %v4757_v2  ;;  %4448 = vmatpush3.bf16.msra.mxu0 %v573_v9  ;;  %v474_v2 = vld [vmem:[%s5075_s8 + $0x4f8] sm:$0xff]  ;;  %v577_v4 = vpack.c.bf16 %v456_v59, %v455_v58  ;;  %v593_v6 = vpack.c.bf16 %v488_v63, %v487_v60  ;;  %v2498_v9 = vld [vmem:[%s6657_s4 + $0x68] sm:$0xff]  ;;  %v602_v14 = vpack.c.bf16 %v506_v5, %v505_v3  ;;  %v2517_v48 = vld [vmem:[%s6657_s4 + $0x100] sm:$0xff] }
  0xa1   : > { %4536 = vmatpush3.bf16.msra.mxu1 %v589_v12  ;;  %4449 = vmatprep.subr.bf16.mxu0 %v582_v13  ;;  %v586_v10 = vpack.c.bf16 %v474_v2, %v473_v0  ;;  %v490_v12 = vld [vmem:[%s5075_s8 + $0x578] sm:$0xff]  ;;  %v2501_v13 = vld [vmem:[%s6657_s4 + $0x80] sm:$0xff]  ;;  %v2519_v53 = vld [vmem:[%s6657_s4 + $0x110] sm:$0xff] }
  0xa2   : > { %4537 = vmatprep.subr.bf16.mxu1 %v598_v16  ;;  %v4771_v16 = vld [vmem:[%s6654_s1 + $0x190] ss:$48 sps:$4 sm:$0xff]   ;;  %2616 = vperm.xlu1 %4670, %v2498_v9   ;;  %v594_v17 = vpack.c.bf16 %v490_v12, %v489_v11  ;;  %v2520_v58 = vld [vmem:[%s6657_s4 + $0x118] sm:$0xff]  ;;  %v4803_v60 = vld [vmem:[%s6654_s1 + $0x3d4] ss:$48 sps:$4 sm:$0xff]  }
  0xa3   : > { %2631 = vperm.xlu0 %4669, %v2501_v13   ;;  %v4802_v59 = vld [vmem:[%s6654_s1 + $0x378] ss:$48 sps:$4 sm:$0xff]   ;;  %v2525_v0 = vld [vmem:[%s6657_s4 + $0x140] sm:$0xff] }
  0xa4   : > { %4450 = vmatpush3.bf16.msra.mxu0 %v574_v23  ;;  %v2502_v23 = vld [vmem:[%s6657_s4 + $0x88] sm:$0xff]  ;;  %v4807_v2 = vld [vmem:[%s6654_s1 + $0x3d0] ss:$48 sps:$4 sm:$0xff]   ;;  %v2524_v3 = vld [vmem:[%s6657_s4 + $0x138] sm:$0xff] }
  0xa5   : > { %4538 = vmatpush3.bf16.msra.mxu1 %v590_v27  ;;  %4451 = vmatprep.subr.bf16.mxu0 %v583_v28  ;;  %v4779_v27 = vld [vmem:[%s6654_s1 + $0x254] ss:$48 sps:$4 sm:$0xff]   ;;  %v2504_v28 = vld [vmem:[%s6657_s4 + $0x98] sm:$0xff]  ;;  %v2522_v63 = vld [vmem:[%s6657_s4 + $0x128] sm:$0xff] }
  0xa6   : > { %1918 = vmatmul.mubr.bf16.gmra.mrb[56].mxu0 %v4759_v22  ;;  %4539 = vmatprep.subr.bf16.mxu1 %v599_v33  ;;  %v4775_v22 = vld [vmem:[%s6654_s1 + $0x1fc] ss:$48 sps:$4 sm:$0xff]   ;;  %v4783_v33 = vld [vmem:[%s6654_s1 + $0x250] ss:$48 sps:$4 sm:$0xff]   ;;  %v4809_v5 = vld [vmem:[%s6654_s1 + $0x434] ss:$48 sps:$4 sm:$0xff]  }
  0xa7   : > { %2047 = vmatmul.mubr.bf16.gmra.mrb[56].mxu1 %v4760_v25  ;;  %1925 = vmatprep.mubr.bf16.mxu0 %v4761_v26  ;;  %v4777_v25 = vld [vmem:[%s6654_s1 + $0x1f0] ss:$48 sps:$4 sm:$0xff]   ;;  %v4778_v26 = vld [vmem:[%s6654_s1 + $0x1f8] ss:$48 sps:$4 sm:$0xff]   ;;  %v4817_v13 = vld [vmem:[%s6654_s1 + $0x24] ss:$48 sps:$4 sm:$0xff]  }
  0xa8   : > { %2054 = vmatprep.mubr.bf16.mxu1 %v4763_v32  ;;  %4452 = vmatpush3.bf16.msra.mxu0 %v575_v39  ;;  %v2509_v32 = vld [vmem:[%s6657_s4 + $0xc0] sm:$0xff]  ;;  %v2510_v39 = vld [vmem:[%s6657_s4 + $0xc8] sm:$0xff]  ;;  %v2528_v11 = vld [vmem:[%s6657_s4 + $0x158] sm:$0xff] }
  0xa9   : > { %4540 = vmatpush3.bf16.msra.mxu1 %v591_v41  ;;  %4453 = vmatprep.subr.bf16.mxu0 %v584_v42  ;;  %v4789_v41 = vld [vmem:[%s6654_s1 + $0x2b0] ss:$48 sps:$4 sm:$0xff]   ;;  %v2512_v42 = vld [vmem:[%s6657_s4 + $0xd8] sm:$0xff] }
  0xaa   : > { %4541 = vmatprep.subr.bf16.mxu1 %v600_v46  ;;  %2626 = vperm.xlu1 %4670, %v2500_v20   ;;  %v4793_v46 = vld [vmem:[%s6654_s1 + $0x31c] ss:$48 sps:$4 sm:$0xff]   ;;  %v2529_v9 = vld [vmem:[%s6657_s4 + $0x160] sm:$0xff]  ;;  %v4814_v12 = vld [vmem:[%s6654_s1 + $0x438] ss:$48 sps:$4 sm:$0xff]  }
  0xab   : > { %2641 = vperm.xlu0 %4669, %v2503_v21   ;;  %v4818_v20 = vld [vmem:[%s6654_s1 + $0x28] ss:$48 sps:$4 sm:$0xff]   ;;  %v4821_v21 = vld [vmem:[%s6654_s1 + $0x84] ss:$48 sps:$4 sm:$0xff]  }
  0xac   : > { %4454 = vmatpush3.bf16.msra.mxu0 %v576_v52  ;;  %v4797_v52 = vld [vmem:[%s6654_s1 + $0x374] ss:$48 sps:$4 sm:$0xff]  }
  0xad   : > { %4542 = vmatpush3.bf16.msra.mxu1 %v592_v56  ;;  %4455 = vmatprep.subr.bf16.mxu0 %v585_v57  ;;  %v2521_v56 = vld [vmem:[%s6657_s4 + $0x120] sm:$0xff] }
  0xae   : > { %1926 = vmatmul.mubr.bf16.gmra.mrb[60].mxu0 %v4765_v51  ;;  %4543 = vmatprep.subr.bf16.mxu1 %v601_v62  ;;  %v4796_v51 = vld [vmem:[%s6654_s1 + $0x318] ss:$48 sps:$4 sm:$0xff]   ;;  %v4801_v57 = vld [vmem:[%s6654_s1 + $0x370] ss:$48 sps:$4 sm:$0xff]   ;;  %v4805_v62 = vld [vmem:[%s6654_s1 + $0x3dc] ss:$48 sps:$4 sm:$0xff]  }
  0xaf   : > { %2055 = vmatmul.mubr.bf16.gmra.mrb[60].mxu1 %v4766_v54  ;;  %1933 = vmatprep.mubr.bf16.mxu0 %v4767_v55  ;;  %v4799_v54 = vld [vmem:[%s6654_s1 + $0x37c] ss:$48 sps:$4 sm:$0xff]  }
  0xb0   : > { %2062 = vmatprep.mubr.bf16.mxu1 %v4769_v61  ;;  %4456 = vmatpush3.bf16.msra.mxu0 %v577_v4  ;;  %v2518_v55 = vld [vmem:[%s6657_s4 + $0x108] sm:$0xff]  ;;  %v2523_v61 = vld [vmem:[%s6657_s4 + $0x130] sm:$0xff] }
  0xb1   : > { %4544 = vmatpush3.bf16.msra.mxu1 %v593_v6  ;;  %4457 = vmatprep.subr.bf16.mxu0 %v586_v10  ;;  %v4808_v4 = vld [vmem:[%s6654_s1 + $0x3d8] ss:$48 sps:$4 sm:$0xff]   ;;  %v2527_v6 = vld [vmem:[%s6657_s4 + $0x150] sm:$0xff] }
  0xb2   : > { %4545 = vmatprep.subr.bf16.mxu1 %v602_v14  ;;  %2636 = vperm.xlu1 %4670, %v2502_v23   ;;  %v4813_v10 = vld [vmem:[%s6654_s1 + $0x430] ss:$48 sps:$4 sm:$0xff]   ;;  %v4823_v23 = vld [vmem:[%s6654_s1 + $0x8c] ss:$48 sps:$4 sm:$0xff]  }
  0xb3   : > { %2651 = vperm.xlu0 %4669, %v2505_v24   ;;  %v2531_v14 = vld [vmem:[%s6657_s4 + $0x170] sm:$0xff]  ;;  %v2534_v24 = vld [vmem:[%s6657_s4 + $0x188] sm:$0xff] }
  0xb4   : > { %4458 = vmatpush3.bf16.msra.mxu0 %v578_v15  ;;  %v4820_v15 = vld [vmem:[%s6654_s1 + $0x2c] ss:$48 sps:$4 sm:$0xff]  }
  0xb5   : > { %4546 = vmatpush3.bf16.msra.mxu1 %v594_v17  ;;  %3254 = vmatprep.subr.bf16.mxu0 %v5007_v1  ;;  %v2533_v17 = vld [vmem:[%s6657_s4 + $0x180] sm:$0xff] }
  0xb6   : > { %1934 = vmatmul.mubr.bf16.gmra.mrb[64].mxu0 %v4771_v16  ;;  %4619 = vmatprep.subr.bf16.mxu1 %v5007_v1  ;;  %v2530_v16 = vld [vmem:[%s6657_s4 + $0x168] sm:$0xff] }
  0xb7   : > { %2063 = vmatmul.mubr.bf16.gmra.mrb[64].mxu1 %v4772_v18  ;;  %1941 = vmatprep.mubr.bf16.mxu0 %v4773_v19  ;;  %v4815_v18 = vld [vmem:[%s6654_s1 + $0x20] ss:$48 sps:$4 sm:$0xff]   ;;  %v2532_v19 = vld [vmem:[%s6657_s4 + $0x178] sm:$0xff] }
  0xb8   : > { %2070 = vmatprep.mubr.bf16.mxu1 %v4775_v22  ;;  %2646 = vperm.xlu1 %4670, %v2504_v28   ;;  %v2535_v22 = vld [vmem:[%s6657_s4 + $0x190] sm:$0xff]  ;;  %v4826_v28 = vld [vmem:[%s6654_s1 + $0x88] ss:$48 sps:$4 sm:$0xff]  }
  0xb9   : > { %2661 = vperm.xlu0 %4669, %v2507_v29   ;;  %v4827_v29 = vld [vmem:[%s6654_s1 + $0xe4] ss:$48 sps:$4 sm:$0xff]  }
  0xbc   : > { %2656 = vperm.xlu1 %4670, %v2506_v31   ;;  %v4829_v31 = vld [vmem:[%s6654_s1 + $0xec] ss:$48 sps:$4 sm:$0xff]  }
  0xbd   : > { %2671 = vperm.xlu0 %4669, %v2509_v32   ;;  %v2538_v32 = vld [vmem:[%s6657_s4 + $0x1a8] sm:$0xff] }
  0xbe   : > { %1942 = vmatmul.mubr.bf16.gmra.mrb[68].mxu0 %v4777_v25  ;;  %v2537_v25 = vld [vmem:[%s6657_s4 + $0x1a0] sm:$0xff] }
  0xbf   : > { %2071 = vmatmul.mubr.bf16.gmra.mrb[68].mxu1 %v4778_v26  ;;  %1949 = vmatprep.mubr.bf16.mxu0 %v4779_v27  ;;  %v4825_v26 = vld [vmem:[%s6654_s1 + $0x80] ss:$48 sps:$4 sm:$0xff]   ;;  %v2536_v27 = vld [vmem:[%s6657_s4 + $0x198] sm:$0xff] }
  0xc0   : > { %2078 = vmatprep.mubr.bf16.mxu1 %v4781_v30  ;;  %2666 = vperm.xlu1 %4670, %v2508_v36   ;;  %v2539_v30 = vld [vmem:[%s6657_s4 + $0x1b0] sm:$0xff]  ;;  %v2540_v36 = vld [vmem:[%s6657_s4 + $0x1b8] sm:$0xff] }
  0xc1   : > { %2681 = vperm.xlu0 %4669, %v2511_v37   ;;  %v4832_v37 = vld [vmem:[%s6654_s1 + $0xe8] ss:$48 sps:$4 sm:$0xff]  }
  0xc4   : > { %2676 = vperm.xlu1 %4670, %v2510_v39   ;;  %v2543_v39 = vld [vmem:[%s6657_s4 + $0x1d0] sm:$0xff] }
  0xc5   : > { %2691 = vperm.xlu0 %4669, %v2513_v40   ;;  %v4835_v40 = vld [vmem:[%s6654_s1 + $0x14c] ss:$48 sps:$4 sm:$0xff]  }
  0xc6   : > { %1950 = vmatmul.mubr.bf16.gmra.mrb[72].mxu0 %v4783_v33  ;;  %v2541_v33 = vld [vmem:[%s6657_s4 + $0x1c0] sm:$0xff] }
  0xc7   : > { %2079 = vmatmul.mubr.bf16.gmra.mrb[72].mxu1 %v4784_v34  ;;  %1957 = vmatprep.mubr.bf16.mxu0 %v4785_v35  ;;  %v4831_v34 = vld [vmem:[%s6654_s1 + $0xe0] ss:$48 sps:$4 sm:$0xff]   ;;  %v774_v35 = vpop.permute.xlu0 %773 }
  0xc8   : > { %2086 = vmatprep.mubr.bf16.mxu1 %v4787_v38  ;;  %2686 = vperm.xlu1 %4670, %v2512_v42   ;;  %v4833_v38 = vld [vmem:[%s6654_s1 + $0x144] ss:$48 sps:$4 sm:$0xff]  }
  0xc9   : > { %2701 = vperm.xlu0 %4669, %v2515_v45   ;;  %v2545_v42 = vld [vmem:[%s6657_s4 + $0x1e0] sm:$0xff] }
  0xca   : > { %v4837_v45 = vld [vmem:[%s6654_s1 + $0x140] ss:$48 sps:$4 sm:$0xff]  }
  0xcc   : > { %2696 = vperm.xlu1 %4670, %v2514_v47  }
  0xcd   : > { %2711 = vperm.xlu0 %4669, %v2517_v48  }
  0xce   : > { %1958 = vmatmul.mubr.bf16.gmra.mrb[76].mxu0 %v4789_v41  ;;  %v2542_v41 = vld [vmem:[%s6657_s4 + $0x1c8] sm:$0xff] }
  0xcf   : > { %2087 = vmatmul.mubr.bf16.gmra.mrb[76].mxu1 %v4790_v43  ;;  %1965 = vmatprep.mubr.bf16.mxu0 %v4791_v44  ;;  %v779_v43 = vpop.permute.xlu0 %778 }
  0xd0   : > { %2094 = vmatprep.mubr.bf16.mxu1 %v4793_v46  ;;  %2706 = vperm.xlu1 %4670, %v2516_v50   ;;  %v784_v46 = vpop.permute.xlu1 %783  ;;  %v2544_v50 = vld [vmem:[%s6657_s4 + $0x1d8] sm:$0xff] }
  0xd1   : > { %2721 = vperm.xlu0 %4669, %v2519_v53  }
  0xd4   : > { %2716 = vperm.xlu1 %4670, %v2518_v55   ;;  %v2547_v55 = vld [vmem:[%s6657_s4 + $0x1f0] sm:$0xff] }
  0xd5   : > { %2731 = vperm.xlu0 %4669, %v2521_v56  }
  0xd6   : > { %1966 = vmatmul.mubr.bf16.gmra.mrb[80].mxu0 %v4795_v49  ;;  %v4838_v49 = vld [vmem:[%s6654_s1 + $0x148] ss:$48 sps:$4 sm:$0xff]  }
  0xd7   : > { %2095 = vmatmul.mubr.bf16.gmra.mrb[80].mxu1 %v4796_v51  ;;  %1973 = vmatprep.mubr.bf16.mxu0 %v4797_v52 }
  0xd8   : > { %2102 = vmatprep.mubr.bf16.mxu1 %v4799_v54  ;;  %2726 = vperm.xlu1 %4670, %v2520_v58   ;;  %v4839_v54 = vld [vmem:[%s6654_s1 + $0x1a4] ss:$48 sps:$4 sm:$0xff]  }
  0xd9   : > { %2741 = vperm.xlu0 %4669, %v2523_v61  }
  0xdc   : > { %2736 = vperm.xlu1 %4670, %v2522_v63  }
  0xdd   : > { %2751 = vperm.xlu0 %4669, %v2525_v0   ;;  %v2546_v0 = vld [vmem:[%s6657_s4 + $0x1e8] sm:$0xff] }
  0xde   : > { %1974 = vmatmul.mubr.bf16.gmra.mrb[84].mxu0 %v4801_v57 }
  0xdf   : > { %2103 = vmatmul.mubr.bf16.gmra.mrb[84].mxu1 %v4802_v59  ;;  %1981 = vmatprep.mubr.bf16.mxu0 %v4803_v60  ;;  %v4841_v59 = vld [vmem:[%s6654_s1 + $0x1ac] ss:$48 sps:$4 sm:$0xff]  }
  0xe0   : > { %2110 = vmatprep.mubr.bf16.mxu1 %v4805_v62  ;;  %2746 = vperm.xlu1 %4670, %v2524_v3  }
  0xe1   : > { %2761 = vperm.xlu0 %4669, %v2527_v6   ;;  %v789_v6 = vpop.permute.xlu1 %788 }
  0xe4   : > { %2756 = vperm.xlu1 %4670, %v2526_v8  }
  0xe5   : > { %2771 = vperm.xlu0 %4669, %v2529_v9   ;;  %v4843_v9 = vld [vmem:[%s6654_s1 + $0x1a0] ss:$48 sps:$4 sm:$0xff]  }
  0xe6   : > { %1982 = vmatmul.mubr.bf16.gmra.mrb[88].mxu0 %v4807_v2 }
  0xe7   : > { %2111 = vmatmul.mubr.bf16.gmra.mrb[88].mxu1 %v4808_v4  ;;  %1989 = vmatprep.mubr.bf16.mxu0 %v4809_v5 }
  0xe8   : > { %2118 = vmatprep.mubr.bf16.mxu1 %v4811_v7  ;;  %2766 = vperm.xlu1 %4670, %v2528_v11  }
  0xe9   : > { %2781 = vperm.xlu0 %4669, %v2531_v14   ;;  %v4844_v14 = vld [vmem:[%s6654_s1 + $0x1a8] ss:$48 sps:$4 sm:$0xff]  }
  0xec   : > { %2776 = vperm.xlu1 %4670, %v2530_v16  }
  0xed   : > { %2791 = vperm.xlu0 %4669, %v2533_v17  }
  0xee   : > { %1990 = vmatmul.mubr.bf16.gmra.mrb[92].mxu0 %v4813_v10  ;;  %v2548_v10 = vld [vmem:[%s6657_s4 + $0x1f8] sm:$0xff] }
  0xef   : > { %2119 = vmatmul.mubr.bf16.gmra.mrb[92].mxu1 %v4814_v12  ;;  %2159 = vmatprep.mubr.bf16.mxu0 %v4817_v13 }
  0xf0   : > { %2288 = vmatprep.mubr.bf16.mxu1 %v4820_v15  ;;  %2786 = vperm.xlu1 %4670, %v2532_v19   ;;  %v4845_v15 = vld [vmem:[%s6654_s1 + $0x204] ss:$48 sps:$4 sm:$0xff]   ;;  %v4847_v19 = vld [vmem:[%s6654_s1 + $0x20c] ss:$48 sps:$4 sm:$0xff]  }
  0xf1   : > { %2801 = vperm.xlu0 %4669, %v2535_v22  }
  0xf4   : > { %2796 = vperm.xlu1 %4670, %v2534_v24  }
  0xf5   : > { %2811 = vperm.xlu0 %4669, %v2537_v25  }
  0xf6   : > { %2160 = vmatmul.mubr.bf16.vlgmr.msra.gmra.mrb[96].mxu0 %v4815_v18 }
  0xf7   : > { %2289 = vmatmul.mubr.bf16.vlgmr.msra.gmra.mrb[96].mxu1 %v4818_v20  ;;  %2167 = vmatprep.mubr.bf16.mxu0 %v4821_v21 }
  0xf8   : > { %2296 = vmatprep.mubr.bf16.mxu1 %v4823_v23  ;;  %2806 = vperm.xlu1 %4670, %v2536_v27  }
  0xf9   : > { %2821 = vperm.xlu0 %4669, %v2539_v30  }
  0xfc   : > { %2816 = vperm.xlu1 %4670, %v2538_v32   ;;  %v4849_v32 = vld [vmem:[%s6654_s1 + $0x200] ss:$48 sps:$4 sm:$0xff]  }
  0xfd   : > { %2831 = vperm.xlu0 %4669, %v2541_v33  }
  0xfe   : > { %2168 = vmatmul.mubr.bf16.gmra.mrb[100].mxu0 %v4825_v26  ;;  %v794_v26 = vpop.permute.xlu0 %793 }
  0xff   : > { %2297 = vmatmul.mubr.bf16.gmra.mrb[100].mxu1 %v4826_v28  ;;  %2175 = vmatprep.mubr.bf16.mxu0 %v4827_v29  ;;  %v799_v29 = vpop.permute.xlu1 %798 }
 0x100   : > { %2304 = vmatprep.mubr.bf16.mxu1 %v4829_v31  ;;  %2826 = vperm.xlu1 %4670, %v2540_v36   ;;  %v4850_v36 = vld [vmem:[%s6654_s1 + $0x208] ss:$48 sps:$4 sm:$0xff]  }
 0x101   : > { %2841 = vperm.xlu0 %4669, %v2543_v39  }
 0x104   : > { %2836 = vperm.xlu1 %4670, %v2542_v41   ;;  %v4853_v41 = vld [vmem:[%s6654_s1 + $0x26c] ss:$48 sps:$4 sm:$0xff]  }
 0x105   : > { %2851 = vperm.xlu0 %4669, %v2545_v42  }
 0x106   : > { %2176 = vmatmul.mubr.bf16.gmra.mrb[104].mxu0 %v4831_v34 }
 0x107   : > { %2305 = vmatmul.mubr.bf16.gmra.mrb[104].mxu1 %v4832_v37  ;;  %2183 = vmatprep.mubr.bf16.mxu0 %v4833_v38  ;;  %v4851_v37 = vld [vmem:[%s6654_s1 + $0x264] ss:$48 sps:$4 sm:$0xff]  }
 0x108   : > { %2312 = vmatprep.mubr.bf16.mxu1 %v4835_v40  ;;  %2846 = vperm.xlu1 %4670, %v2544_v50  }
 0x109   : > { %v4107_v44 = vpop.f32.mrb[0].mxu0  ;;  %2861 = vperm.xlu0 %4669, %v2547_v55  }
 0x10a   : > { %v4195_v47 = vpop.f32.mrb[0].mxu1  ;;  %v4108_v48 = vpop.f32.mrb[1].mxu0 }
 0x10b   : > { %v4109_v51 = vadd.f32 %v4108_v48, %v4107_v44  ;;  %v4196_v52 = vpop.f32.mrb[1].mxu1  ;;  %v4110_v53 = vpop.f32.mrb[2].mxu0 }
 0x10c   : > { %v4197_v56 = vadd.f32 %v4196_v52, %v4195_v47  ;;  %v4198_v57 = vpop.f32.mrb[2].mxu1  ;;  %v4111_v58 = vpop.f32.mrb[3].mxu0  ;;  %2856 = vperm.xlu1 %4670, %v2546_v0  }
 0x10d   : > { %v1646_v60 = vadd.f32 %v4109_v51, %v774_v35  ;;  %v4112_v61 = vadd.f32 %v4111_v58, %v4110_v53  ;;  %v4199_v62 = vpop.f32.mrb[3].mxu1  ;;  %v804_v48 = vpop.permute.xlu0 %803  ;;  %v4856_v58 = vld [vmem:[%s6654_s1 + $0x268] ss:$48 sps:$4 sm:$0xff]  }
 0x10e   : > { %v4200_v63 = vadd.f32 %v4199_v62, %v4198_v57  ;;  %2184 = vmatmul.mubr.bf16.gmra.mrb[108].mxu0 %v4837_v45  ;;  %v809_v51 = vpop.permute.xlu1 %808 }
 0x10f   : > { %v5868_v2 = vadd.f32 %v4197_v56, %v1646_v60  ;;  %v1649_v3 = vadd.f32 %v4112_v61, %v779_v43  ;;  %2313 = vmatmul.mubr.bf16.gmra.mrb[108].mxu1 %v4838_v49  ;;  %2191 = vmatprep.mubr.bf16.mxu0 %v4839_v54  ;;  %v4855_v54 = vld [vmem:[%s6654_s1 + $0x260] ss:$48 sps:$4 sm:$0xff]  }
 0x110   : > { %2320 = vmatprep.mubr.bf16.mxu1 %v4841_v59  ;;  %2866 = vperm.xlu1 %4670, %v2548_v10   ;;  %v4857_v59 = vld [vmem:[%s6654_s1 + $0x2c4] ss:$48 sps:$4 sm:$0xff]  }
 0x111   : > { %v5870_v4 = vadd.f32 %v4200_v63, %v1649_v3  ;;  %v4113_v5 = vpop.f32.mrb[4].mxu0  ;;  %v4859_v63 = vld [vmem:[%s6654_s1 + $0x2cc] ss:$48 sps:$4 sm:$0xff]  }
 0x112   : > { %v4201_v7 = vpop.f32.mrb[4].mxu1  ;;  %v4114_v8 = vpop.f32.mrb[5].mxu0 }
 0x113   : > { %v4115_v11 = vadd.f32 %v4114_v8, %v4113_v5  ;;  %v4202_v12 = vpop.f32.mrb[5].mxu1  ;;  %v4116_v13 = vpop.f32.mrb[6].mxu0 }
 0x114   : > { %v4203_v16 = vadd.f32 %v4202_v12, %v4201_v7  ;;  %v4204_v17 = vpop.f32.mrb[6].mxu1  ;;  %v4117_v18 = vpop.f32.mrb[7].mxu0 }
 0x115   : > { %v1654_v20 = vadd.f32 %v4115_v11, %v784_v46  ;;  %v4118_v21 = vadd.f32 %v4117_v18, %v4116_v13  ;;  %v4205_v22 = vpop.f32.mrb[7].mxu1  ;;  %v819_v12 = vpop.permute.xlu1 %818 }
 0x116   : > { %v4206_v23 = vadd.f32 %v4205_v22, %v4204_v17  ;;  %2192 = vmatmul.mubr.bf16.gmra.mrb[112].mxu0 %v4843_v9  ;;  %v814_v9 = vpop.permute.xlu0 %813 }
 0x117   : > { %v5887_v24 = vadd.f32 %v4203_v16, %v1654_v20  ;;  %v1657_v25 = vadd.f32 %v4118_v21, %v789_v6  ;;  %2321 = vmatmul.mubr.bf16.gmra.mrb[112].mxu1 %v4844_v14  ;;  %2199 = vmatprep.mubr.bf16.mxu0 %v4845_v15  ;;  %v4861_v15 = vld [vmem:[%s6654_s1 + $0x2c0] ss:$48 sps:$4 sm:$0xff]   ;;  %v4863_v20 = vld [vmem:[%s6654_s1 + $0x324] ss:$48 sps:$4 sm:$0xff]  }
 0x118   : > { %2328 = vmatprep.mubr.bf16.mxu1 %v4847_v19  ;;  %v4862_v19 = vld [vmem:[%s6654_s1 + $0x2c8] ss:$48 sps:$4 sm:$0xff]  }
 0x119   : > { %v5889_v27 = vadd.f32 %v4206_v23, %v1657_v25  ;;  %v4119_v28 = vpop.f32.mrb[8].mxu0  ;;  %v4865_v25 = vld [vmem:[%s6654_s1 + $0x32c] ss:$48 sps:$4 sm:$0xff]  }
 0x11a   : > { %v4207_v30 = vpop.f32.mrb[8].mxu1  ;;  %v4120_v31 = vpop.f32.mrb[9].mxu0 }
 0x11b   : > { %v4121_v33 = vadd.f32 %v4120_v31, %v4119_v28  ;;  %v4208_v34 = vpop.f32.mrb[9].mxu1  ;;  %v4122_v35 = vpop.f32.mrb[10].mxu0 }
 0x11c   : > { %v4209_v38 = vadd.f32 %v4208_v34, %v4207_v30  ;;  %v4210_v39 = vpop.f32.mrb[10].mxu1  ;;  %v4123_v40 = vpop.f32.mrb[11].mxu0 }
 0x11d   : > { %v1662_v42 = vadd.f32 %v4121_v33, %v794_v26  ;;  %v4124_v43 = vadd.f32 %v4123_v40, %v4122_v35  ;;  %v4211_v44 = vpop.f32.mrb[11].mxu1  ;;  %v824_v33 = vpop.permute.xlu0 %823 }
 0x11e   : > { %v4212_v45 = vadd.f32 %v4211_v44, %v4210_v39  ;;  %2200 = vmatmul.mubr.bf16.gmra.mrb[116].mxu0 %v4849_v32  ;;  %v4867_v39 = vld [vmem:[%s6654_s1 + $0x320] ss:$48 sps:$4 sm:$0xff]   ;;  %v4869_v44 = vld [vmem:[%s6654_s1 + $0x384] ss:$48 sps:$4 sm:$0xff]  }
 0x11f   : > { %v5903_v46 = vadd.f32 %v4209_v38, %v1662_v42  ;;  %v1665_v47 = vadd.f32 %v4124_v43, %v799_v29  ;;  %2329 = vmatmul.mubr.bf16.gmra.mrb[116].mxu1 %v4850_v36  ;;  %2207 = vmatprep.mubr.bf16.mxu0 %v4851_v37  ;;  %v829_v36 = vpop.permute.xlu1 %828  ;;  %v4868_v43 = vld [vmem:[%s6654_s1 + $0x328] ss:$48 sps:$4 sm:$0xff]  }
 0x120   : > { %2336 = vmatprep.mubr.bf16.mxu1 %v4853_v41 }
 0x121   : > { %v5905_v49 = vadd.f32 %v4212_v45, %v1665_v47  ;;  %v4125_v50 = vpop.f32.mrb[12].mxu0 }
 0x122   : > { %v4213_v52 = vpop.f32.mrb[12].mxu1  ;;  %v4126_v53 = vpop.f32.mrb[13].mxu0 }
 0x123   : > { %v4127_v55 = vadd.f32 %v4126_v53, %v4125_v50  ;;  %v4214_v56 = vpop.f32.mrb[13].mxu1  ;;  %v4128_v57 = vpop.f32.mrb[14].mxu0  ;;  %v4871_v50 = vld [vmem:[%s6654_s1 + $0x38c] ss:$48 sps:$4 sm:$0xff]  }
 0x124   : > { %v4215_v60 = vadd.f32 %v4214_v56, %v4213_v52  ;;  %v4216_v61 = vpop.f32.mrb[14].mxu1  ;;  %v4129_v62 = vpop.f32.mrb[15].mxu0 }
 0x125   : > { %v1670_v0 = vadd.f32 %v4127_v55, %v804_v48  ;;  %v4130_v3 = vadd.f32 %v4129_v62, %v4128_v57  ;;  %v4217_v5 = vpop.f32.mrb[15].mxu1  ;;  %v834_v57 = vpop.permute.xlu0 %833 }
 0x126   : > { %v4218_v6 = vadd.f32 %v4217_v5, %v4216_v61  ;;  %2208 = vmatmul.mubr.bf16.gmra.mrb[120].mxu0 %v4855_v54 }
 0x127   : > { %v5919_v7 = vadd.f32 %v4215_v60, %v1670_v0  ;;  %v1673_v8 = vadd.f32 %v4130_v3, %v809_v51  ;;  %2337 = vmatmul.mubr.bf16.gmra.mrb[120].mxu1 %v4856_v58  ;;  %2215 = vmatprep.mubr.bf16.mxu0 %v4857_v59  ;;  %v839_v59 = vpop.permute.xlu1 %838 }
 0x128   : > { %2344 = vmatprep.mubr.bf16.mxu1 %v4859_v63  ;;  %v4873_v63 = vld [vmem:[%s6654_s1 + $0x380] ss:$48 sps:$4 sm:$0xff]  }
 0x129   : > { %v5921_v10 = vadd.f32 %v4218_v6, %v1673_v8  ;;  %v4131_v11 = vpop.f32.mrb[16].mxu0  ;;  %v4874_v6 = vld [vmem:[%s6654_s1 + $0x388] ss:$48 sps:$4 sm:$0xff]   ;;  %v4875_v8 = vld [vmem:[%s6654_s1 + $0x3e4] ss:$48 sps:$4 sm:$0xff]  }
 0x12a   : > { %v4219_v13 = vpop.f32.mrb[16].mxu1  ;;  %v4132_v14 = vpop.f32.mrb[17].mxu0 }
 0x12b   : > { %v4133_v16 = vadd.f32 %v4132_v14, %v4131_v11  ;;  %v4220_v17 = vpop.f32.mrb[17].mxu1  ;;  %v4134_v18 = vpop.f32.mrb[18].mxu0 }
 0x12c   : > { %v4221_v21 = vadd.f32 %v4220_v17, %v4219_v13  ;;  %v4222_v22 = vpop.f32.mrb[18].mxu1  ;;  %v4135_v23 = vpop.f32.mrb[19].mxu0  ;;  %v4877_v13 = vld [vmem:[%s6654_s1 + $0x3ec] ss:$48 sps:$4 sm:$0xff]  }
 0x12d   : > { %v1678_v26 = vadd.f32 %v4133_v16, %v814_v9  ;;  %v4136_v28 = vadd.f32 %v4135_v23, %v4134_v18  ;;  %v4223_v29 = vpop.f32.mrb[19].mxu1 }
 0x12e   : > { %v4224_v30 = vadd.f32 %v4223_v29, %v4222_v22  ;;  %2216 = vmatmul.mubr.bf16.gmra.mrb[124].mxu0 %v4861_v15 }
 0x12f   : > { %v5935_v31 = vadd.f32 %v4221_v21, %v1678_v26  ;;  %v1681_v32 = vadd.f32 %v4136_v28, %v819_v12  ;;  %2345 = vmatmul.mubr.bf16.gmra.mrb[124].mxu1 %v4862_v19  ;;  %2223 = vmatprep.mubr.bf16.mxu0 %v4863_v20  ;;  %v844_v20 = vpop.permute.xlu0 %843  ;;  %v849_v21 = vpop.permute.xlu1 %848  ;;  %v4879_v28 = vld [vmem:[%s6654_s1 + $0x3e0] ss:$48 sps:$4 sm:$0xff]  }
 0x130   : > { %2352 = vmatprep.mubr.bf16.mxu1 %v4865_v25 }
 0x131   : > { %v5937_v34 = vadd.f32 %v4224_v30, %v1681_v32  ;;  %v4137_v35 = vpop.f32.mrb[20].mxu0 }
 0x132   : > { %v4225_v37 = vpop.f32.mrb[20].mxu1  ;;  %v4138_v38 = vpop.f32.mrb[21].mxu0 }
 0x133   : > { %v4139_v40 = vadd.f32 %v4138_v38, %v4137_v35  ;;  %v4226_v41 = vpop.f32.mrb[21].mxu1  ;;  %v4140_v42 = vpop.f32.mrb[22].mxu0  ;;  %v4881_v35 = vld [vmem:[%s6654_s1 + $0x444] ss:$48 sps:$4 sm:$0xff]  }
 0x134   : > { %v4227_v45 = vadd.f32 %v4226_v41, %v4225_v37  ;;  %v4228_v47 = vpop.f32.mrb[22].mxu1  ;;  %v4141_v48 = vpop.f32.mrb[23].mxu0 }
 0x135   : > { %v1686_v51 = vadd.f32 %v4139_v40, %v824_v33  ;;  %v4142_v52 = vadd.f32 %v4141_v48, %v4140_v42  ;;  %v4229_v53 = vpop.f32.mrb[23].mxu1  ;;  %v4880_v33 = vld [vmem:[%s6654_s1 + $0x3e8] ss:$48 sps:$4 sm:$0xff]   ;;  %v859_v48 = vpop.permute.xlu1 %858 }
 0x136   : > { %v4230_v54 = vadd.f32 %v4229_v53, %v4228_v47  ;;  %2224 = vmatmul.mubr.bf16.gmra.mrb[128].mxu0 %v4867_v39  ;;  %v4883_v39 = vld [vmem:[%s6654_s1 + $0x44c] ss:$48 sps:$4 sm:$0xff]   ;;  %v854_v47 = vpop.permute.xlu0 %853 }
 0x137   : > { %v5951_v55 = vadd.f32 %v4227_v45, %v1686_v51  ;;  %v1689_v56 = vadd.f32 %v4142_v52, %v829_v36  ;;  %2353 = vmatmul.mubr.bf16.gmra.mrb[128].mxu1 %v4868_v43  ;;  %2231 = vmatprep.mubr.bf16.mxu0 %v4869_v44 }
 0x138   : > { %2360 = vmatprep.mubr.bf16.mxu1 %v4871_v50 }
 0x139   : > { %v5953_v58 = vadd.f32 %v4230_v54, %v1689_v56  ;;  %v4143_v60 = vpop.f32.mrb[24].mxu0  ;;  %v4885_v54 = vld [vmem:[%s6654_s1 + $0x440] ss:$48 sps:$4 sm:$0xff]  }
 0x13a   : > { %v4231_v61 = vpop.f32.mrb[24].mxu1  ;;  %v4144_v62 = vpop.f32.mrb[25].mxu0 }
 0x13b   : > { %v4145_v0 = vadd.f32 %v4144_v62, %v4143_v60  ;;  %v4232_v3 = vpop.f32.mrb[25].mxu1  ;;  %v4146_v5 = vpop.f32.mrb[26].mxu0  ;;  %v4886_v60 = vld [vmem:[%s6654_s1 + $0x448] ss:$48 sps:$4 sm:$0xff]  }
 0x13c   : > { %v4233_v9 = vadd.f32 %v4232_v3, %v4231_v61  ;;  %v4234_v11 = vpop.f32.mrb[26].mxu1  ;;  %v4147_v12 = vpop.f32.mrb[27].mxu0 }
 0x13d   : > { %v1694_v14 = vadd.f32 %v4145_v0, %v834_v57  ;;  %v4148_v15 = vadd.f32 %v4147_v12, %v4146_v5  ;;  %v4235_v16 = vpop.f32.mrb[27].mxu1  ;;  %v869_v12 = vpop.permute.xlu1 %868 }
 0x13e   : > { %v4236_v17 = vadd.f32 %v4235_v16, %v4234_v11  ;;  %2232 = vmatmul.mubr.bf16.gmra.mrb[132].mxu0 %v4873_v63  ;;  %v864_v11 = vpop.permute.xlu0 %863 }
 0x13f   : > { %v5967_v18 = vadd.f32 %v4233_v9, %v1694_v14  ;;  %v1697_v19 = vadd.f32 %v4148_v15, %v839_v59  ;;  %2361 = vmatmul.mubr.bf16.gmra.mrb[132].mxu1 %v4874_v6  ;;  %2239 = vmatprep.mubr.bf16.mxu0 %v4875_v8 }
 0x140   : > { %2368 = vmatprep.mubr.bf16.mxu1 %v4877_v13 }
 0x141   : > { %v5969_v22 = vadd.f32 %v4236_v17, %v1697_v19  ;;  %v4149_v23 = vpop.f32.mrb[28].mxu0 }
 0x142   : > { %v4237_v25 = vpop.f32.mrb[28].mxu1  ;;  %v4150_v26 = vpop.f32.mrb[29].mxu0 }
 0x143   : > { %v4151_v29 = vadd.f32 %v4150_v26, %v4149_v23  ;;  %v4238_v30 = vpop.f32.mrb[29].mxu1  ;;  %v4152_v32 = vpop.f32.mrb[30].mxu0 }
 0x144   : > { %v4239_v36 = vadd.f32 %v4238_v30, %v4237_v25  ;;  %v4240_v37 = vpop.f32.mrb[30].mxu1  ;;  %v4153_v38 = vpop.f32.mrb[31].mxu0 }
 0x145   : > { %v1702_v40 = vadd.f32 %v4151_v29, %v844_v20  ;;  %v4154_v41 = vadd.f32 %v4153_v38, %v4152_v32  ;;  %v4241_v42 = vpop.f32.mrb[31].mxu1 }
 0x146   : > { %v4242_v43 = vadd.f32 %v4241_v42, %v4240_v37  ;;  %2240 = vmatmul.mubr.bf16.gmra.mrb[136].mxu0 %v4879_v28 }
 0x147   : > { %v5983_v44 = vadd.f32 %v4239_v36, %v1702_v40  ;;  %v1705_v45 = vadd.f32 %v4154_v41, %v849_v21  ;;  %2369 = vmatmul.mubr.bf16.gmra.mrb[136].mxu1 %v4880_v33  ;;  %2247 = vmatprep.mubr.bf16.mxu0 %v4881_v35  ;;  %v874_v35 = vpop.permute.xlu0 %873  ;;  %v879_v36 = vpop.permute.xlu1 %878 }
 0x148   : > { %2376 = vmatprep.mubr.bf16.mxu1 %v4883_v39 }
 0x149   : > { %v5985_v50 = vadd.f32 %v4242_v43, %v1705_v45  ;;  %v4155_v51 = vpop.f32.mrb[32].mxu0 }
 0x14a   : > { %v4243_v52 = vpop.f32.mrb[32].mxu1  ;;  %v4156_v53 = vpop.f32.mrb[33].mxu0 }
 0x14b   : > { %v4157_v56 = vadd.f32 %v4156_v53, %v4155_v51  ;;  %v4244_v57 = vpop.f32.mrb[33].mxu1  ;;  %v4158_v59 = vpop.f32.mrb[34].mxu0 }
 0x14c   : > { %v4245_v61 = vadd.f32 %v4244_v57, %v4243_v52  ;;  %v4246_v62 = vpop.f32.mrb[34].mxu1  ;;  %v4159_v63 = vpop.f32.mrb[35].mxu0 }
 0x14d   : > { %v1710_v0 = vadd.f32 %v4157_v56, %v854_v47  ;;  %v4160_v3 = vadd.f32 %v4159_v63, %v4158_v59  ;;  %v4247_v5 = vpop.f32.mrb[35].mxu1  ;;  %v884_v59 = vpop.permute.xlu0 %883 }
 0x14e   : > { %v4248_v6 = vadd.f32 %v4247_v5, %v4246_v62  ;;  %2248 = vmatmul.mubr.bf16.gmra.mrb[140].mxu0 %v4885_v54 }
 0x14f   : > { %v5993_v8 = vadd.f32 %v4245_v61, %v1710_v0  ;;  %v1713_v9 = vadd.f32 %v4160_v3, %v859_v48  ;;  %2377 = vmatmul.mubr.bf16.gmra.mrb[140].mxu1 %v4886_v60  ;;  %v889_v60 = vpop.permute.xlu1 %888 }
 0x151   : > { %v5995_v13 = vadd.f32 %v4248_v6, %v1713_v9  ;;  %v4161_v14 = vpop.f32.mrb[36].mxu0 }
 0x152   : > { %v4249_v15 = vpop.f32.mrb[36].mxu1  ;;  %v4162_v16 = vpop.f32.mrb[37].mxu0 }
 0x153   : > { %v4163_v17 = vadd.f32 %v4162_v16, %v4161_v14  ;;  %v4250_v19 = vpop.f32.mrb[37].mxu1  ;;  %v4164_v20 = vpop.f32.mrb[38].mxu0 }
 0x154   : > { %v4251_v21 = vadd.f32 %v4250_v19, %v4249_v15  ;;  %v4252_v23 = vpop.f32.mrb[38].mxu1  ;;  %v4165_v25 = vpop.f32.mrb[39].mxu0 }
 0x155   : > { %v1718_v26 = vadd.f32 %v4163_v17, %v864_v11  ;;  %v4166_v28 = vadd.f32 %v4165_v25, %v4164_v20  ;;  %v4253_v29 = vpop.f32.mrb[39].mxu1 }
 0x156   : > { %v4254_v30 = vadd.f32 %v4253_v29, %v4252_v23 }
 0x157   : > { %v5997_v32 = vadd.f32 %v4251_v21, %v1718_v26  ;;  %v1721_v33 = vadd.f32 %v4166_v28, %v869_v12 }
 0x159   : > { %v5999_v37 = vadd.f32 %v4254_v30, %v1721_v33  ;;  %v4167_v38 = vpop.f32.mrb[40].mxu0 }
 0x15a   : > { %v4255_v39 = vpop.f32.mrb[40].mxu1  ;;  %v4168_v40 = vpop.f32.mrb[41].mxu0 }
 0x15b   : > { %v4169_v41 = vadd.f32 %v4168_v40, %v4167_v38  ;;  %v4256_v42 = vpop.f32.mrb[41].mxu1  ;;  %v4170_v43 = vpop.f32.mrb[42].mxu0 }
 0x15c   : > { %v4257_v45 = vadd.f32 %v4256_v42, %v4255_v39  ;;  %v4258_v47 = vpop.f32.mrb[42].mxu1  ;;  %v4171_v48 = vpop.f32.mrb[43].mxu0 }
 0x15d   : > { %v1726_v51 = vadd.f32 %v4169_v41, %v874_v35  ;;  %v4172_v52 = vadd.f32 %v4171_v48, %v4170_v43  ;;  %v4259_v53 = vpop.f32.mrb[43].mxu1 }
 0x15e   : > { %v4260_v54 = vadd.f32 %v4259_v53, %v4258_v47 }
 0x15f   : > { %v6001_v56 = vadd.f32 %v4257_v45, %v1726_v51  ;;  %v1729_v57 = vadd.f32 %v4172_v52, %v879_v36 }
 0x161   : > { %v6003_v61 = vadd.f32 %v4260_v54, %v1729_v57  ;;  %v4173_v62 = vpop.f32.mrb[44].mxu0 }
 0x162   : > { %v4261_v63 = vpop.f32.mrb[44].mxu1  ;;  %v4174_v0 = vpop.f32.mrb[45].mxu0 }
 0x163   : > { %v4175_v3 = vadd.f32 %v4174_v0, %v4173_v62  ;;  %v4262_v5 = vpop.f32.mrb[45].mxu1  ;;  %v4176_v6 = vpop.f32.mrb[46].mxu0 }
 0x164   : > { %v4263_v9 = vadd.f32 %v4262_v5, %v4261_v63  ;;  %v4264_v11 = vpop.f32.mrb[46].mxu1  ;;  %v4177_v12 = vpop.f32.mrb[47].mxu0 }
 0x165   : > { %v1734_v14 = vadd.f32 %v4175_v3, %v884_v59  ;;  %v4178_v15 = vadd.f32 %v4177_v12, %v4176_v6  ;;  %v4265_v16 = vpop.f32.mrb[47].mxu1 }
 0x166   : > { %v4266_v17 = vadd.f32 %v4265_v16, %v4264_v11 }
 0x167   : > { %v6005_v19 = vadd.f32 %v4263_v9, %v1734_v14  ;;  %v1737_v20 = vadd.f32 %v4178_v15, %v889_v60 }
 0x169   : > { %v6007_v21 = vadd.f32 %v4266_v17, %v1737_v20  ;;  %v4283_v23 = vpop.f32.mrb[48].mxu0 }
 0x16a   : > { %v4371_v25 = vpop.f32.mrb[48].mxu1  ;;  %v4284_v26 = vpop.f32.mrb[49].mxu0 }
 0x16b   : > { %v4285_v28 = vadd.f32 %v4284_v26, %v4283_v23  ;;  %v4372_v29 = vpop.f32.mrb[49].mxu1  ;;  %v4286_v30 = vpop.f32.mrb[50].mxu0 }
 0x16c   : > { %v4373_v33 = vadd.f32 %v4372_v29, %v4371_v25  ;;  %v4374_v35 = vpop.f32.mrb[50].mxu1  ;;  %v4287_v36 = vpop.f32.mrb[51].mxu0 }
 0x16d   : > { %v1904_v38 = vadd.f32 %v4285_v28, %v5868_v2  ;;  %v4288_v39 = vadd.f32 %v4287_v36, %v4286_v30  ;;  %v4375_v40 = vpop.f32.mrb[51].mxu1 }
 0x16e   : > { %v4376_v41 = vadd.f32 %v4375_v40, %v4374_v35 }
 0x16f   : > { %v6010_v42 = vadd.f32 %v4373_v33, %v1904_v38  ;;  %v1907_v43 = vadd.f32 %v4288_v39, %v5870_v4 }
 0x171   : > { %v6013_v45 = vadd.f32 %v4376_v41, %v1907_v43  ;;  %v4289_v47 = vpop.f32.mrb[52].mxu0 }
 0x172   : > { %v4377_v48 = vpop.f32.mrb[52].mxu1  ;;  %v4290_v51 = vpop.f32.mrb[53].mxu0 }
 0x173   : > { %v4291_v52 = vadd.f32 %v4290_v51, %v4289_v47  ;;  %v4378_v53 = vpop.f32.mrb[53].mxu1  ;;  %v4292_v54 = vpop.f32.mrb[54].mxu0 }
 0x174   : > { %v4379_v57 = vadd.f32 %v4378_v53, %v4377_v48  ;;  %v4380_v59 = vpop.f32.mrb[54].mxu1  ;;  %v4293_v60 = vpop.f32.mrb[55].mxu0 }
 0x175   : > { %v1912_v2 = vadd.f32 %v4291_v52, %v5887_v24  ;;  %v4294_v62 = vadd.f32 %v4293_v60, %v4292_v54  ;;  %v4381_v63 = vpop.f32.mrb[55].mxu1 }
 0x176   : > { %v4382_v0 = vadd.f32 %v4381_v63, %v4380_v59 }
 0x177   : > { %v6016_v3 = vadd.f32 %v4379_v57, %v1912_v2  ;;  %v1915_v4 = vadd.f32 %v4294_v62, %v5889_v27 }
 0x179   : > { %v6019_v5 = vadd.f32 %v4382_v0, %v1915_v4  ;;  %v4295_v6 = vpop.f32.mrb[56].mxu0 }
 0x17a   : > { %v4383_v9 = vpop.f32.mrb[56].mxu1  ;;  %v4296_v11 = vpop.f32.mrb[57].mxu0 }
 0x17b   : > { %v4297_v12 = vadd.f32 %v4296_v11, %v4295_v6  ;;  %v4384_v14 = vpop.f32.mrb[57].mxu1  ;;  %v4298_v15 = vpop.f32.mrb[58].mxu0 }
 0x17c   : > { %v4385_v16 = vadd.f32 %v4384_v14, %v4383_v9  ;;  %v4386_v17 = vpop.f32.mrb[58].mxu1  ;;  %v4299_v20 = vpop.f32.mrb[59].mxu0 }
 0x17d   : > { %v1920_v24 = vadd.f32 %v4297_v12, %v5903_v46  ;;  %v4300_v23 = vadd.f32 %v4299_v20, %v4298_v15  ;;  %v4387_v25 = vpop.f32.mrb[59].mxu1 }
 0x17e   : > { %v4388_v26 = vadd.f32 %v4387_v25, %v4386_v17 }
 0x17f   : > { %v6022_v28 = vadd.f32 %v4385_v16, %v1920_v24  ;;  %v1923_v27 = vadd.f32 %v4300_v23, %v5905_v49 }
 0x181   : > { %v6025_v29 = vadd.f32 %v4388_v26, %v1923_v27  ;;  %v4301_v30 = vpop.f32.mrb[60].mxu0 }
 0x182   : > { %v4389_v33 = vpop.f32.mrb[60].mxu1  ;;  %v4302_v35 = vpop.f32.mrb[61].mxu0 }
 0x183   : > { %v4303_v36 = vadd.f32 %v4302_v35, %v4301_v30  ;;  %v4390_v38 = vpop.f32.mrb[61].mxu1  ;;  %v4304_v39 = vpop.f32.mrb[62].mxu0 }
 0x184   : > { %v4391_v40 = vadd.f32 %v4390_v38, %v4389_v33  ;;  %v4392_v41 = vpop.f32.mrb[62].mxu1  ;;  %v4305_v43 = vpop.f32.mrb[63].mxu0 }
 0x185   : > { %v1928_v46 = vadd.f32 %v4303_v36, %v5919_v7  ;;  %v4306_v47 = vadd.f32 %v4305_v43, %v4304_v39  ;;  %v4393_v48 = vpop.f32.mrb[63].mxu1 }
 0x186   : > { %v4394_v51 = vadd.f32 %v4393_v48, %v4392_v41 }
 0x187   : > { %v6028_v52 = vadd.f32 %v4391_v40, %v1928_v46  ;;  %v1931_v49 = vadd.f32 %v4306_v47, %v5921_v10 }
 0x189   : > { %v6031_v53 = vadd.f32 %v4394_v51, %v1931_v49  ;;  %v4307_v54 = vpop.f32.mrb[64].mxu0 }
 0x18a   : > { %v4395_v57 = vpop.f32.mrb[64].mxu1  ;;  %v4308_v59 = vpop.f32.mrb[65].mxu0 }
 0x18b   : > { %v4309_v60 = vadd.f32 %v4308_v59, %v4307_v54  ;;  %v4396_v2 = vpop.f32.mrb[65].mxu1  ;;  %v4310_v62 = vpop.f32.mrb[66].mxu0 }
 0x18c   : > { %v4397_v63 = vadd.f32 %v4396_v2, %v4395_v57  ;;  %v4398_v0 = vpop.f32.mrb[66].mxu1  ;;  %v4311_v4 = vpop.f32.mrb[67].mxu0 }
 0x18d   : > { %v1936_v7 = vadd.f32 %v4309_v60, %v5935_v31  ;;  %v4312_v6 = vadd.f32 %v4311_v4, %v4310_v62  ;;  %v4399_v9 = vpop.f32.mrb[67].mxu1 }
 0x18e   : > { %v4400_v11 = vadd.f32 %v4399_v9, %v4398_v0 }
 0x18f   : > { %v6034_v12 = vadd.f32 %v4397_v63, %v1936_v7  ;;  %v1939_v10 = vadd.f32 %v4312_v6, %v5937_v34 }
 0x191   : > { %v6037_v14 = vadd.f32 %v4400_v11, %v1939_v10  ;;  %v4313_v15 = vpop.f32.mrb[68].mxu0 }
 0x192   : > { %v4401_v16 = vpop.f32.mrb[68].mxu1  ;;  %v4314_v17 = vpop.f32.mrb[69].mxu0 }
 0x193   : > { %v4315_v20 = vadd.f32 %v4314_v17, %v4313_v15  ;;  %v4402_v24 = vpop.f32.mrb[69].mxu1  ;;  %v4316_v23 = vpop.f32.mrb[70].mxu0 }
 0x194   : > { %v4403_v25 = vadd.f32 %v4402_v24, %v4401_v16  ;;  %v4404_v26 = vpop.f32.mrb[70].mxu1  ;;  %v4317_v27 = vpop.f32.mrb[71].mxu0 }
 0x195   : > { %v1944_v31 = vadd.f32 %v4315_v20, %v5951_v55  ;;  %v4318_v30 = vadd.f32 %v4317_v27, %v4316_v23  ;;  %v4405_v33 = vpop.f32.mrb[71].mxu1 }
 0x196   : > { %v4406_v35 = vadd.f32 %v4405_v33, %v4404_v26 }
 0x197   : > { %v6040_v36 = vadd.f32 %v4403_v25, %v1944_v31  ;;  %v1947_v34 = vadd.f32 %v4318_v30, %v5953_v58 }
 0x199   : > { %v6043_v38 = vadd.f32 %v4406_v35, %v1947_v34  ;;  %v4319_v39 = vpop.f32.mrb[72].mxu0 }
 0x19a   : > { %v4407_v40 = vpop.f32.mrb[72].mxu1  ;;  %v4320_v41 = vpop.f32.mrb[73].mxu0 }
 0x19b   : > { %v4321_v43 = vadd.f32 %v4320_v41, %v4319_v39  ;;  %v4408_v46 = vpop.f32.mrb[73].mxu1  ;;  %v4322_v47 = vpop.f32.mrb[74].mxu0 }
 0x19c   : > { %v4409_v48 = vadd.f32 %v4408_v46, %v4407_v40  ;;  %v4410_v51 = vpop.f32.mrb[74].mxu1  ;;  %v4323_v49 = vpop.f32.mrb[75].mxu0  ;;  %v4889_v46 = vld [vmem:[%s6656_s3 + $0x4] ss:$8 sps:$4 sm:$0xff]  }
 0x19d   : > { %v1952_v55 = vadd.f32 %v4321_v43, %v5967_v18  ;;  %v4324_v54 = vadd.f32 %v4323_v49, %v4322_v47  ;;  %v4411_v57 = vpop.f32.mrb[75].mxu1  ;;  %v4892_v47 = vld [vmem:[%s6656_s3 + $0x104] ss:$8 sps:$4 sm:$0xff]   ;;  %4055 = vmatprep.mubr.msk.bf16.mxu0 %vm3157_vm0, %v4889_v46 }
 0x19e   : > { %v4412_v59 = vadd.f32 %v4411_v57, %v4410_v51  ;;  %4071 = vmatprep.mubr.msk.bf16.mxu1 %vm3157_vm0, %v4892_v47 }
 0x19f   : > { %v6046_v60 = vadd.f32 %v4409_v48, %v1952_v55  ;;  %v1955_v58 = vadd.f32 %v4324_v54, %v5969_v22 }
 0x1a1   : > { %v6049_v2 = vadd.f32 %v4412_v59, %v1955_v58  ;;  %v4325_v62 = vpop.f32.mrb[76].mxu0 }
 0x1a2   : > { %v4413_v63 = vpop.f32.mrb[76].mxu1  ;;  %v4326_v0 = vpop.f32.mrb[77].mxu0 }
 0x1a3   : > { %v4327_v4 = vadd.f32 %v4326_v0, %v4325_v62  ;;  %v4414_v7 = vpop.f32.mrb[77].mxu1  ;;  %v4328_v6 = vpop.f32.mrb[78].mxu0 }
 0x1a4   : > { %v4415_v9 = vadd.f32 %v4414_v7, %v4413_v63  ;;  %v4416_v11 = vpop.f32.mrb[78].mxu1  ;;  %v4329_v10 = vpop.f32.mrb[79].mxu0 }
 0x1a5   : > { %v1960_v18 = vadd.f32 %v4327_v4, %v5983_v44  ;;  %v4330_v15 = vadd.f32 %v4329_v10, %v4328_v6  ;;  %v4417_v16 = vpop.f32.mrb[79].mxu1 }
 0x1a6   : > { %v4418_v17 = vadd.f32 %v4417_v16, %v4416_v11 }
 0x1a7   : > { %v6052_v20 = vadd.f32 %v4415_v9, %v1960_v18  ;;  %v1963_v22 = vadd.f32 %v4330_v15, %v5985_v50 }
 0x1a9   : > { %v6055_v24 = vadd.f32 %v4418_v17, %v1963_v22  ;;  %v4331_v23 = vpop.f32.mrb[80].mxu0 }
 0x1aa   : > { %v4419_v25 = vpop.f32.mrb[80].mxu1  ;;  %v4332_v26 = vpop.f32.mrb[81].mxu0 }
 0x1ab   : > { %v4333_v27 = vadd.f32 %v4332_v26, %v4331_v23  ;;  %v4420_v31 = vpop.f32.mrb[81].mxu1  ;;  %v4334_v30 = vpop.f32.mrb[82].mxu0 }
 0x1ac   : > { %v4421_v33 = vadd.f32 %v4420_v31, %v4419_v25  ;;  %v4422_v35 = vpop.f32.mrb[82].mxu1  ;;  %v4335_v34 = vpop.f32.mrb[83].mxu0 }
 0x1ad   : > { %v1968_v44 = vadd.f32 %v4333_v27, %v5993_v8  ;;  %v4336_v39 = vadd.f32 %v4335_v34, %v4334_v30  ;;  %v4423_v40 = vpop.f32.mrb[83].mxu1 }
 0x1ae   : > { %v4424_v41 = vadd.f32 %v4423_v40, %v4422_v35 }
 0x1af   : > { %v6058_v43 = vadd.f32 %v4421_v33, %v1968_v44  ;;  %v1971_v50 = vadd.f32 %v4336_v39, %v5995_v13 }
 0x1b1   : > { %v6067_v48 = vadd.f32 %v4424_v41, %v1971_v50  ;;  %v4337_v51 = vpop.f32.mrb[84].mxu0 }
 0x1b2   : > { %v4425_v8 = vpop.f32.mrb[84].mxu1  ;;  %v4338_v49 = vpop.f32.mrb[85].mxu0 }
 0x1b3   : > { %v4339_v55 = vadd.f32 %v4338_v49, %v4337_v51  ;;  %v4426_v13 = vpop.f32.mrb[85].mxu1  ;;  %v4340_v54 = vpop.f32.mrb[86].mxu0 }
 0x1b4   : > { %v4427_v57 = vadd.f32 %v4426_v13, %v4425_v8  ;;  %v4428_v59 = vpop.f32.mrb[86].mxu1  ;;  %v4341_v58 = vpop.f32.mrb[87].mxu0 }
 0x1b5   : > { %v1976_v62 = vadd.f32 %v4339_v55, %v5997_v32  ;;  %v4342_v63 = vadd.f32 %v4341_v58, %v4340_v54  ;;  %v4429_v0 = vpop.f32.mrb[87].mxu1 }
 0x1b6   : > { %v4430_v4 = vadd.f32 %v4429_v0, %v4428_v59 }
 0x1b7   : > { %v6072_v7 = vadd.f32 %v4427_v57, %v1976_v62  ;;  %v1979_v6 = vadd.f32 %v4342_v63, %v5999_v37 }
 0x1b9   : > { %v6075_v9 = vadd.f32 %v4430_v4, %v1979_v6  ;;  %v4343_v11 = vpop.f32.mrb[88].mxu0 }
 0x1ba   : > { %v4431_v10 = vpop.f32.mrb[88].mxu1  ;;  %v4344_v18 = vpop.f32.mrb[89].mxu0 }
 0x1bb   : > { %v4345_v15 = vadd.f32 %v4344_v18, %v4343_v11  ;;  %v4432_v16 = vpop.f32.mrb[89].mxu1  ;;  %v4346_v17 = vpop.f32.mrb[90].mxu0 }
 0x1bc   : > { %v4433_v22 = vadd.f32 %v4432_v16, %v4431_v10  ;;  %v4434_v23 = vpop.f32.mrb[90].mxu1  ;;  %v4347_v25 = vpop.f32.mrb[91].mxu0 }
 0x1bd   : > { %v1984_v32 = vadd.f32 %v4345_v15, %v6001_v56  ;;  %v4348_v26 = vadd.f32 %v4347_v25, %v4346_v17  ;;  %v4435_v27 = vpop.f32.mrb[91].mxu1 }
 0x1be   : > { %v4436_v31 = vadd.f32 %v4435_v27, %v4434_v23 }
 0x1bf   : > { %v6078_v30 = vadd.f32 %v4433_v22, %v1984_v32  ;;  %v1987_v37 = vadd.f32 %v4348_v26, %v6003_v61 }
 0x1c1   : > { %v6081_v33 = vadd.f32 %v4436_v31, %v1987_v37  ;;  %v4349_v35 = vpop.f32.mrb[92].mxu0 }
 0x1c2   : > { %v4437_v34 = vpop.f32.mrb[92].mxu1  ;;  %v4350_v44 = vpop.f32.mrb[93].mxu0 }
 0x1c3   : > { %v4351_v39 = vadd.f32 %v4350_v44, %v4349_v35  ;;  %v4438_v40 = vpop.f32.mrb[93].mxu1  ;;  %v4352_v41 = vpop.f32.mrb[94].mxu0 }
 0x1c4   : > { %v4439_v50 = vadd.f32 %v4438_v40, %v4437_v34  ;;  %v4440_v46 = vpop.f32.mrb[94].mxu1  ;;  %v4353_v47 = vpop.f32.mrb[95].mxu0 }
 0x1c5   : > { %v1992_v56 = vadd.f32 %v4351_v39, %v6005_v19  ;;  %v4354_v51 = vadd.f32 %v4353_v47, %v4352_v41  ;;  %v4441_v8 = vpop.f32.mrb[95].mxu1 }
 0x1c6   : > { %v4442_v49 = vadd.f32 %v4441_v8, %v4440_v46 }
 0x1c7   : > { %v6084_v55 = vadd.f32 %v4439_v50, %v1992_v56  ;;  %v1995_v61 = vadd.f32 %v4354_v51, %v6007_v21 }
 0x1c9   : > { %v6087_v13 = vadd.f32 %v4442_v49, %v1995_v61  ;;  %v4459_v54 = vpop.f32.mrb[96].mxu0 }
 0x1ca   : > { %v4547_v57 = vpop.f32.mrb[96].mxu1  ;;  %v4460_v59 = vpop.f32.mrb[97].mxu0 }
 0x1cb   : > { %v4461_v58 = vadd.f32 %v4460_v59, %v4459_v54  ;;  %v4548_v62 = vpop.f32.mrb[97].mxu1  ;;  %v4462_v63 = vpop.f32.mrb[98].mxu0 }
 0x1cc   : > { %v4549_v0 = vadd.f32 %v4548_v62, %v4547_v57  ;;  %v4550_v4 = vpop.f32.mrb[98].mxu1  ;;  %v4463_v6 = vpop.f32.mrb[99].mxu0 }
 0x1cd   : > { %v2162_v19 = vadd.f32 %v4461_v58, %v6010_v42  ;;  %v4464_v11 = vadd.f32 %v4463_v6, %v4462_v63  ;;  %v4551_v10 = vpop.f32.mrb[99].mxu1 }
 0x1ce   : > { %v4552_v18 = vadd.f32 %v4551_v10, %v4550_v4 }
 0x1cf   : > { %v2291_v15 = vadd.f32 %v4549_v0, %v2162_v19  ;;  %v2165_v16 = vadd.f32 %v4464_v11, %v6013_v45 }
 0x1d1   : > { %v2294_v21 = vadd.f32 %v4552_v18, %v2165_v16  ;;  %v4465_v17 = vpop.f32.mrb[100].mxu0  ;;  %v2385_v25 = vmax.f32 %v2291_v15, 0.0 }
 0x1d2   : > { %v4553_v22 = vpop.f32.mrb[100].mxu1  ;;  %v4466_v23 = vpop.f32.mrb[101].mxu0 }
 0x1d3   : > { %v2386_v32 = vmax.f32 %v2294_v21, 0.0  ;;  %v4467_v26 = vadd.f32 %v4466_v23, %v4465_v17  ;;  %v4554_v27 = vpop.f32.mrb[101].mxu1  ;;  %v4468_v31 = vpop.f32.mrb[102].mxu0 }
 0x1d4   : > { %v4555_v37 = vadd.f32 %v4554_v27, %v4553_v22  ;;  %v4556_v35 = vpop.f32.mrb[102].mxu1  ;;  %v4469_v34 = vpop.f32.mrb[103].mxu0 }
 0x1d5   : > { %v2473_v44 = vpack.c.bf16 %v2386_v32, %v2385_v25  ;;  %v2170_v42 = vadd.f32 %v4467_v26, %v6016_v3  ;;  %v4470_v39 = vadd.f32 %v4469_v34, %v4468_v31  ;;  %v4557_v40 = vpop.f32.mrb[103].mxu1 }
 0x1d6   : > { %v4558_v41 = vadd.f32 %v4557_v40, %v4556_v35 }
 0x1d7   : > { %v2299_v50 = vadd.f32 %v4555_v37, %v2170_v42  ;;  %v2173_v45 = vadd.f32 %v4470_v39, %v6019_v5  ;;  %3255 = vmatpush1.bf16.msra.mxu0 %v2473_v44  ;;  %4631 = vmatpush1.bf16.msra.mxu1 %v2473_v44 }
 0x1d8   : > { %3256 = vmatprep.subr.bf16.mxu0 %v5007_v1  ;;  %4620 = vmatprep.subr.bf16.mxu1 %v5007_v1 }
 0x1d9   : > { %v2302_v46 = vadd.f32 %v4558_v41, %v2173_v45  ;;  %v4471_v47 = vpop.f32.mrb[104].mxu0  ;;  %v2387_v8 = vmax.f32 %v2299_v50, 0.0 }
 0x1da   : > { %v4559_v56 = vpop.f32.mrb[104].mxu1  ;;  %v4472_v51 = vpop.f32.mrb[105].mxu0 }
 0x1db   : > { %v2388_v49 = vmax.f32 %v2302_v46, 0.0  ;;  %v4473_v61 = vadd.f32 %v4472_v51, %v4471_v47  ;;  %v4560_v3 = vpop.f32.mrb[105].mxu1  ;;  %v4474_v54 = vpop.f32.mrb[106].mxu0 }
 0x1dc   : > { %v4561_v57 = vadd.f32 %v4560_v3, %v4559_v56  ;;  %v4562_v59 = vpop.f32.mrb[106].mxu1  ;;  %v4475_v58 = vpop.f32.mrb[107].mxu0 }
 0x1dd   : > { %v2474_v62 = vpack.c.bf16 %v2388_v49, %v2387_v8  ;;  %v2178_v5 = vadd.f32 %v4473_v61, %v6022_v28  ;;  %v4476_v63 = vadd.f32 %v4475_v58, %v4474_v54  ;;  %v4563_v0 = vpop.f32.mrb[107].mxu1 }
 0x1de   : > { %v4564_v4 = vadd.f32 %v4563_v0, %v4562_v59 }
 0x1df   : > { %v2307_v6 = vadd.f32 %v4561_v57, %v2178_v5  ;;  %v2181_v19 = vadd.f32 %v4476_v63, %v6025_v29  ;;  %3257 = vmatpush1.bf16.msra.mxu0 %v2474_v62  ;;  %4632 = vmatpush1.bf16.msra.mxu1 %v2474_v62 }
 0x1e0   : > { %3258 = vmatprep.subr.bf16.mxu0 %v5007_v1  ;;  %4621 = vmatprep.subr.bf16.mxu1 %v5007_v1 }
 0x1e1   : > { %v2310_v11 = vadd.f32 %v4564_v4, %v2181_v19  ;;  %v4477_v10 = vpop.f32.mrb[108].mxu0  ;;  %v2389_v16 = vmax.f32 %v2307_v6, 0.0 }
 0x1e2   : > { %v4565_v18 = vpop.f32.mrb[108].mxu1  ;;  %v4478_v15 = vpop.f32.mrb[109].mxu0 }
 0x1e3   : > { %v2390_v21 = vmax.f32 %v2310_v11, 0.0  ;;  %v4479_v17 = vadd.f32 %v4478_v15, %v4477_v10  ;;  %v4566_v28 = vpop.f32.mrb[109].mxu1  ;;  %v4480_v22 = vpop.f32.mrb[110].mxu0 }
 0x1e4   : > { %v4567_v23 = vadd.f32 %v4566_v28, %v4565_v18  ;;  %v4568_v25 = vpop.f32.mrb[110].mxu1  ;;  %v4481_v32 = vpop.f32.mrb[111].mxu0 }
 0x1e5   : > { %v2475_v26 = vpack.c.bf16 %v2390_v21, %v2389_v16  ;;  %v2186_v29 = vadd.f32 %v4479_v17, %v6028_v52  ;;  %v4482_v27 = vadd.f32 %v4481_v32, %v4480_v22  ;;  %v4569_v31 = vpop.f32.mrb[111].mxu1 }
 0x1e6   : > { %v4570_v37 = vadd.f32 %v4569_v31, %v4568_v25 }
 0x1e7   : > { %v2315_v35 = vadd.f32 %v4567_v23, %v2186_v29  ;;  %v2189_v34 = vadd.f32 %v4482_v27, %v6031_v53  ;;  %3259 = vmatpush1.bf16.msra.mxu0 %v2475_v26  ;;  %4633 = vmatpush1.bf16.msra.mxu1 %v2475_v26 }
 0x1e8   : > { %3260 = vmatprep.subr.bf16.mxu0 %v5007_v1  ;;  %4622 = vmatprep.subr.bf16.mxu1 %v5007_v1 }
 0x1e9   : > { %v2318_v44 = vadd.f32 %v4570_v37, %v2189_v34  ;;  %v4483_v42 = vpop.f32.mrb[112].mxu0  ;;  %v2391_v41 = vmax.f32 %v2315_v35, 0.0 }
 0x1ea   : > { %v4571_v39 = vpop.f32.mrb[112].mxu1  ;;  %v4484_v40 = vpop.f32.mrb[113].mxu0 }
 0x1eb   : > { %v2392_v50 = vmax.f32 %v2318_v44, 0.0  ;;  %v4485_v45 = vadd.f32 %v4484_v40, %v4483_v42  ;;  %v4572_v52 = vpop.f32.mrb[113].mxu1  ;;  %v4486_v46 = vpop.f32.mrb[114].mxu0 }
 0x1ec   : > { %v4573_v47 = vadd.f32 %v4572_v52, %v4571_v39  ;;  %v4574_v56 = vpop.f32.mrb[114].mxu1  ;;  %v4487_v51 = vpop.f32.mrb[115].mxu0 }
 0x1ed   : > { %v2476_v8 = vpack.c.bf16 %v2392_v50, %v2391_v41  ;;  %v2194_v53 = vadd.f32 %v4485_v45, %v6034_v12  ;;  %v4488_v49 = vadd.f32 %v4487_v51, %v4486_v46  ;;  %v4575_v61 = vpop.f32.mrb[115].mxu1 }
 0x1ee   : > { %v4576_v3 = vadd.f32 %v4575_v61, %v4574_v56 }
 0x1ef   : > { %v2323_v54 = vadd.f32 %v4573_v47, %v2194_v53  ;;  %v2197_v57 = vadd.f32 %v4488_v49, %v6037_v14  ;;  %3261 = vmatpush1.bf16.msra.mxu0 %v2476_v8  ;;  %4634 = vmatpush1.bf16.msra.mxu1 %v2476_v8 }
 0x1f0   : > { %3262 = vmatprep.subr.bf16.mxu0 %v5007_v1  ;;  %4623 = vmatprep.subr.bf16.mxu1 %v5007_v1 }
 0x1f1   : > { %v2326_v59 = vadd.f32 %v4576_v3, %v2197_v57  ;;  %v4489_v58 = vpop.f32.mrb[116].mxu0  ;;  %v2393_v63 = vmax.f32 %v2323_v54, 0.0 }
 0x1f2   : > { %v4577_v62 = vpop.f32.mrb[116].mxu1  ;;  %v4490_v5 = vpop.f32.mrb[117].mxu0 }
 0x1f3   : > { %v2394_v0 = vmax.f32 %v2326_v59, 0.0  ;;  %v4491_v4 = vadd.f32 %v4490_v5, %v4489_v58  ;;  %v4578_v12 = vpop.f32.mrb[117].mxu1  ;;  %v4492_v6 = vpop.f32.mrb[118].mxu0 }
 0x1f4   : > { %v4579_v19 = vadd.f32 %v4578_v12, %v4577_v62  ;;  %v4580_v11 = vpop.f32.mrb[118].mxu1  ;;  %v4493_v10 = vpop.f32.mrb[119].mxu0 }
 0x1f5   : > { %v2477_v18 = vpack.c.bf16 %v2394_v0, %v2393_v63  ;;  %v2202_v14 = vadd.f32 %v4491_v4, %v6040_v36  ;;  %v4494_v15 = vadd.f32 %v4493_v10, %v4492_v6  ;;  %v4581_v16 = vpop.f32.mrb[119].mxu1 }
 0x1f6   : > { %v4582_v21 = vadd.f32 %v4581_v16, %v4580_v11 }
 0x1f7   : > { %v2331_v17 = vadd.f32 %v4579_v19, %v2202_v14  ;;  %v2205_v28 = vadd.f32 %v4494_v15, %v6043_v38  ;;  %3263 = vmatpush1.bf16.msra.mxu0 %v2477_v18  ;;  %4635 = vmatpush1.bf16.msra.mxu1 %v2477_v18 }
 0x1f8   : > { %3264 = vmatprep.subr.bf16.mxu0 %v5007_v1  ;;  %4624 = vmatprep.subr.bf16.mxu1 %v5007_v1 }
 0x1f9   : > { %v2334_v22 = vadd.f32 %v4582_v21, %v2205_v28  ;;  %v4495_v23 = vpop.f32.mrb[120].mxu0  ;;  %v2395_v26 = vmax.f32 %v2331_v17, 0.0 }
 0x1fa   : > { %v4583_v25 = vpop.f32.mrb[120].mxu1  ;;  %v4496_v32 = vpop.f32.mrb[121].mxu0 }
 0x1fb   : > { %v2396_v29 = vmax.f32 %v2334_v22, 0.0  ;;  %v4497_v27 = vadd.f32 %v4496_v32, %v4495_v23  ;;  %v4584_v36 = vpop.f32.mrb[121].mxu1  ;;  %v4498_v31 = vpop.f32.mrb[122].mxu0 }
 0x1fc   : > { %v4585_v37 = vadd.f32 %v4584_v36, %v4583_v25  ;;  %v4586_v35 = vpop.f32.mrb[122].mxu1  ;;  %v4499_v34 = vpop.f32.mrb[123].mxu0 }
 0x1fd   : > { %v2478_v44 = vpack.c.bf16 %v2396_v29, %v2395_v26  ;;  %v2210_v38 = vadd.f32 %v4497_v27, %v6046_v60  ;;  %v4500_v42 = vadd.f32 %v4499_v34, %v4498_v31  ;;  %v4587_v39 = vpop.f32.mrb[123].mxu1 }
 0x1fe   : > { %v4588_v40 = vadd.f32 %v4587_v39, %v4586_v35 }
 0x1ff   : > { %v2339_v41 = vadd.f32 %v4585_v37, %v2210_v38  ;;  %v2213_v50 = vadd.f32 %v4500_v42, %v6049_v2  ;;  %3265 = vmatpush1.bf16.msra.mxu0 %v2478_v44  ;;  %4636 = vmatpush1.bf16.msra.mxu1 %v2478_v44 }
 0x200   : > { %3266 = vmatprep.subr.bf16.mxu0 %v5007_v1  ;;  %4625 = vmatprep.subr.bf16.mxu1 %v5007_v1 }
 0x201   : > { %v2342_v45 = vadd.f32 %v4588_v40, %v2213_v50  ;;  %v4501_v52 = vpop.f32.mrb[124].mxu0  ;;  %v2397_v56 = vmax.f32 %v2339_v41, 0.0 }
 0x202   : > { %v4589_v46 = vpop.f32.mrb[124].mxu1  ;;  %v4502_v47 = vpop.f32.mrb[125].mxu0 }
 0x203   : > { %v2398_v51 = vmax.f32 %v2342_v45, 0.0  ;;  %v4503_v8 = vadd.f32 %v4502_v47, %v4501_v52  ;;  %v4590_v60 = vpop.f32.mrb[125].mxu1  ;;  %v4504_v53 = vpop.f32.mrb[126].mxu0 }
 0x204   : > { %v4591_v49 = vadd.f32 %v4590_v60, %v4589_v46  ;;  %v4592_v61 = vpop.f32.mrb[126].mxu1  ;;  %v4505_v3 = vpop.f32.mrb[127].mxu0 }
 0x205   : > { %v2479_v54 = vpack.c.bf16 %v2398_v51, %v2397_v56  ;;  %v2218_v2 = vadd.f32 %v4503_v8, %v6052_v20  ;;  %v4506_v57 = vadd.f32 %v4505_v3, %v4504_v53  ;;  %v4593_v59 = vpop.f32.mrb[127].mxu1 }
 0x206   : > { %v4594_v58 = vadd.f32 %v4593_v59, %v4592_v61 }
 0x207   : > { %v2347_v62 = vadd.f32 %v4591_v49, %v2218_v2  ;;  %v2221_v5 = vadd.f32 %v4506_v57, %v6055_v24  ;;  %3267 = vmatpush1.bf16.msra.mxu0 %v2479_v54  ;;  %4637 = vmatpush1.bf16.msra.mxu1 %v2479_v54 }
 0x208   : > { %3268 = vmatprep.subr.bf16.mxu0 %v5007_v1  ;;  %4626 = vmatprep.subr.bf16.mxu1 %v5007_v1 }
 0x209   : > { %v2350_v63 = vadd.f32 %v4594_v58, %v2221_v5  ;;  %v4507_v0 = vpop.f32.mrb[128].mxu0  ;;  %v2399_v6 = vmax.f32 %v2347_v62, 0.0 }
 0x20a   : > { %v4595_v4 = vpop.f32.mrb[128].mxu1  ;;  %v4508_v12 = vpop.f32.mrb[129].mxu0 }
 0x20b   : > { %v2400_v19 = vmax.f32 %v2350_v63, 0.0  ;;  %v4509_v11 = vadd.f32 %v4508_v12, %v4507_v0  ;;  %v4596_v20 = vpop.f32.mrb[129].mxu1  ;;  %v4510_v10 = vpop.f32.mrb[130].mxu0 }
 0x20c   : > { %v4597_v18 = vadd.f32 %v4596_v20, %v4595_v4  ;;  %v4598_v14 = vpop.f32.mrb[130].mxu1  ;;  %v4511_v15 = vpop.f32.mrb[131].mxu0 }
 0x20d   : > { %v2480_v16 = vpack.c.bf16 %v2400_v19, %v2399_v6  ;;  %v2226_v24 = vadd.f32 %v4509_v11, %v6058_v43  ;;  %v4512_v21 = vadd.f32 %v4511_v15, %v4510_v10  ;;  %v4599_v17 = vpop.f32.mrb[131].mxu1 }
 0x20e   : > { %v4600_v28 = vadd.f32 %v4599_v17, %v4598_v14 }
 0x20f   : > { %v2355_v22 = vadd.f32 %v4597_v18, %v2226_v24  ;;  %v2229_v23 = vadd.f32 %v4512_v21, %v6067_v48  ;;  %3269 = vmatpush1.bf16.msra.mxu0 %v2480_v16  ;;  %4638 = vmatpush1.bf16.msra.mxu1 %v2480_v16 }
 0x210   : > { %3270 = vmatprep.subr.bf16.mxu0 %v5007_v1  ;;  %4627 = vmatprep.subr.bf16.mxu1 %v5007_v1 }
 0x211   : > { %v2358_v25 = vadd.f32 %v4600_v28, %v2229_v23  ;;  %v4513_v32 = vpop.f32.mrb[132].mxu0  ;;  %v2401_v27 = vmax.f32 %v2355_v22, 0.0 }
 0x212   : > { %v4601_v26 = vpop.f32.mrb[132].mxu1  ;;  %v4514_v29 = vpop.f32.mrb[133].mxu0 }
 0x213   : > { %v2402_v36 = vmax.f32 %v2358_v25, 0.0  ;;  %v4515_v31 = vadd.f32 %v4514_v29, %v4513_v32  ;;  %v4602_v43 = vpop.f32.mrb[133].mxu1  ;;  %v4516_v37 = vpop.f32.mrb[134].mxu0  ;;  %v4890_v25 = vld [vmem:[%s6656_s3 + $0x100] ss:$8 sps:$4 sm:$0xff]  }
 0x214   : > { %v4603_v35 = vadd.f32 %v4602_v43, %v4601_v26  ;;  %v4604_v34 = vpop.f32.mrb[134].mxu1  ;;  %v4517_v44 = vpop.f32.mrb[135].mxu0  ;;  %v4897_v32 = vld [vmem:[%s6656_s3 + $0x10] ss:$8 sps:$4 sm:$0xff]   ;;  %v4899_v29 = vld [vmem:[%s6656_s3 + $0x24] ss:$8 sps:$4 sm:$0xff]  }
 0x215   : > { %v2481_v38 = vpack.c.bf16 %v2402_v36, %v2401_v27  ;;  %v2234_v48 = vadd.f32 %v4515_v31, %v6072_v7  ;;  %v4518_v42 = vadd.f32 %v4517_v44, %v4516_v37  ;;  %v4605_v39 = vpop.f32.mrb[135].mxu1  ;;  %v4898_v26 = vld [vmem:[%s6656_s3 + $0x110] ss:$8 sps:$4 sm:$0xff]   ;;  %v4901_v27 = vld [vmem:[%s6656_s3 + $0x124] ss:$8 sps:$4 sm:$0xff]  }
 0x216   : > { %v4606_v40 = vadd.f32 %v4605_v39, %v4604_v34  ;;  %v4903_v36 = vld [vmem:[%s6656_s3 + $0x20] ss:$8 sps:$4 sm:$0xff]   ;;  %v4905_v43 = vld [vmem:[%s6656_s3 + $0x34] ss:$8 sps:$4 sm:$0xff]   ;;  %v4910_v34 = vld [vmem:[%s6656_s3 + $0x130] ss:$8 sps:$4 sm:$0xff]  }
 0x217   : > { %v2363_v41 = vadd.f32 %v4603_v35, %v2234_v48  ;;  %v2237_v50 = vadd.f32 %v4518_v42, %v6075_v9  ;;  %3271 = vmatpush1.bf16.msra.mxu0 %v2481_v38  ;;  %4639 = vmatpush1.bf16.msra.mxu1 %v2481_v38  ;;  %v4904_v31 = vld [vmem:[%s6656_s3 + $0x120] ss:$8 sps:$4 sm:$0xff]   ;;  %v4907_v37 = vld [vmem:[%s6656_s3 + $0x134] ss:$8 sps:$4 sm:$0xff]   ;;  %v4909_v35 = vld [vmem:[%s6656_s3 + $0x30] ss:$8 sps:$4 sm:$0xff]  }
 0x218   : > { %3272 = vmatprep.subr.bf16.mxu0 %v5007_v1  ;;  %4628 = vmatprep.subr.bf16.mxu1 %v5007_v1  ;;  %v4911_v44 = vld [vmem:[%s6656_s3 + $0x44] ss:$8 sps:$4 sm:$0xff]   ;;  %v4915_v48 = vld [vmem:[%s6656_s3 + $0x40] ss:$8 sps:$4 sm:$0xff]   ;;  %v4917_v39 = vld [vmem:[%s6656_s3 + $0x54] ss:$8 sps:$4 sm:$0xff]  }
 0x219   : > { %v2366_v45 = vadd.f32 %v4606_v40, %v2237_v50  ;;  %v4519_v52 = vpop.f32.mrb[136].mxu0  ;;  %v2403_v56 = vmax.f32 %v2363_v41, 0.0  ;;  %v4913_v38 = vld [vmem:[%s6656_s3 + $0x144] ss:$8 sps:$4 sm:$0xff]   ;;  %v4916_v42 = vld [vmem:[%s6656_s3 + $0x140] ss:$8 sps:$4 sm:$0xff]  }
 0x21a   : > { %v4607_v46 = vpop.f32.mrb[136].mxu1  ;;  %v4520_v47 = vpop.f32.mrb[137].mxu0  ;;  %v4919_v40 = vld [vmem:[%s6656_s3 + $0x154] ss:$8 sps:$4 sm:$0xff]   ;;  %v4921_v41 = vld [vmem:[%s6656_s3 + $0x50] ss:$8 sps:$4 sm:$0xff]  }
 0x21b   : > { %v2404_v51 = vmax.f32 %v2366_v45, 0.0  ;;  %v4521_v8 = vadd.f32 %v4520_v47, %v4519_v52  ;;  %v4608_v7 = vpop.f32.mrb[137].mxu1  ;;  %v4522_v60 = vpop.f32.mrb[138].mxu0  ;;  %v4922_v50 = vld [vmem:[%s6656_s3 + $0x150] ss:$8 sps:$4 sm:$0xff]  }
 0x21c   : > { %v4609_v53 = vadd.f32 %v4608_v7, %v4607_v46  ;;  %v4610_v49 = vpop.f32.mrb[138].mxu1  ;;  %v4523_v61 = vpop.f32.mrb[139].mxu0  ;;  %v4923_v45 = vld [vmem:[%s6656_s3 + $0x64] ss:$8 sps:$4 sm:$0xff]   ;;  %v4927_v46 = vld [vmem:[%s6656_s3 + $0x60] ss:$8 sps:$4 sm:$0xff]  }
 0x21d   : > { %v2482_v3 = vpack.c.bf16 %v2404_v51, %v2403_v56  ;;  %v2242_v9 = vadd.f32 %v4521_v8, %v6078_v30  ;;  %v4524_v54 = vadd.f32 %v4523_v61, %v4522_v60  ;;  %v4611_v2 = vpop.f32.mrb[139].mxu1  ;;  %v4925_v52 = vld [vmem:[%s6656_s3 + $0x164] ss:$8 sps:$4 sm:$0xff]   ;;  %v4928_v47 = vld [vmem:[%s6656_s3 + $0x160] ss:$8 sps:$4 sm:$0xff]  }
 0x21e   : > { %v4612_v57 = vadd.f32 %v4611_v2, %v4610_v49  ;;  %v4929_v56 = vld [vmem:[%s6656_s3 + $0x74] ss:$8 sps:$4 sm:$0xff]   ;;  %v4933_v8 = vld [vmem:[%s6656_s3 + $0x70] ss:$8 sps:$4 sm:$0xff]   ;;  %v4935_v60 = vld [vmem:[%s6656_s3 + $0x84] ss:$8 sps:$4 sm:$0xff]  }
 0x21f   : > { %v2371_v59 = vadd.f32 %v4609_v53, %v2242_v9  ;;  %v2245_v58 = vadd.f32 %v4524_v54, %v6081_v33  ;;  %3273 = vmatpush1.bf16.msra.mxu0 %v2482_v3  ;;  %4640 = vmatpush1.bf16.msra.mxu1 %v2482_v3  ;;  %v4931_v51 = vld [vmem:[%s6656_s3 + $0x174] ss:$8 sps:$4 sm:$0xff]   ;;  %v4934_v7 = vld [vmem:[%s6656_s3 + $0x170] ss:$8 sps:$4 sm:$0xff]   ;;  %v4937_v53 = vld [vmem:[%s6656_s3 + $0x184] ss:$8 sps:$4 sm:$0xff]  }
 0x220   : > { %3274 = vmatprep.subr.bf16.mxu0 %v5007_v1  ;;  %4629 = vmatprep.subr.bf16.mxu1 %v5007_v1  ;;  %v4939_v49 = vld [vmem:[%s6656_s3 + $0x80] ss:$8 sps:$4 sm:$0xff]   ;;  %v4941_v3 = vld [vmem:[%s6656_s3 + $0x94] ss:$8 sps:$4 sm:$0xff]   ;;  %v4945_v54 = vld [vmem:[%s6656_s3 + $0x90] ss:$8 sps:$4 sm:$0xff]  }
 0x221   : > { %v2374_v62 = vadd.f32 %v4612_v57, %v2245_v58  ;;  %v4525_v5 = vpop.f32.mrb[140].mxu0  ;;  %v2405_v4 = vmax.f32 %v2371_v59, 0.0  ;;  %v4940_v61 = vld [vmem:[%s6656_s3 + $0x180] ss:$8 sps:$4 sm:$0xff]   ;;  %v4943_v9 = vld [vmem:[%s6656_s3 + $0x194] ss:$8 sps:$4 sm:$0xff]  }
 0x222   : > { %v4613_v63 = vpop.f32.mrb[140].mxu1  ;;  %v4526_v0 = vpop.f32.mrb[141].mxu0  ;;  %v4946_v2 = vld [vmem:[%s6656_s3 + $0x190] ss:$8 sps:$4 sm:$0xff]   ;;  %v4947_v57 = vld [vmem:[%s6656_s3 + $0xa4] ss:$8 sps:$4 sm:$0xff]  }
 0x223   : > { %v2406_v12 = vmax.f32 %v2374_v62, 0.0  ;;  %v4527_v6 = vadd.f32 %v4526_v0, %v4525_v5  ;;  %v4614_v30 = vpop.f32.mrb[141].mxu1  ;;  %v4528_v19 = vpop.f32.mrb[142].mxu0  ;;  %v4949_v59 = vld [vmem:[%s6656_s3 + $0x1a4] ss:$8 sps:$4 sm:$0xff]  }
 0x224   : > { %v4615_v11 = vadd.f32 %v4614_v30, %v4613_v63  ;;  %v4616_v20 = vpop.f32.mrb[142].mxu1  ;;  %v4529_v10 = vpop.f32.mrb[143].mxu0  ;;  %v4951_v58 = vld [vmem:[%s6656_s3 + $0xa0] ss:$8 sps:$4 sm:$0xff]   ;;  %v4953_v5 = vld [vmem:[%s6656_s3 + $0xb4] ss:$8 sps:$4 sm:$0xff]  }
 0x225   : > { %v2483_v18 = vpack.c.bf16 %v2406_v12, %v2405_v4  ;;  %v2250_v33 = vadd.f32 %v4527_v6, %v6084_v55  ;;  %v4530_v14 = vadd.f32 %v4529_v10, %v4528_v19  ;;  %v4617_v15 = vpop.f32.mrb[143].mxu1  ;;  %v4887_v55 = vld [vmem:[%s6656_s3] ss:$8 sps:$4 sm:$0xff]   ;;  %v4955_v63 = vld [vmem:[%s6656_s3 + $0x1b4] ss:$8 sps:$4 sm:$0xff]  }
 0x226   : > { %v4618_v16 = vadd.f32 %v4617_v15, %v4616_v20  ;;  %v4952_v62 = vld [vmem:[%s6656_s3 + $0x1a0] ss:$8 sps:$4 sm:$0xff]   ;;  %v4957_v0 = vld [vmem:[%s6656_s3 + $0xb0] ss:$8 sps:$4 sm:$0xff]   ;;  %v4959_v12 = vld [vmem:[%s6656_s3 + $0xc4] ss:$8 sps:$4 sm:$0xff]  }
 0x227   : > { %v2379_v24 = vadd.f32 %v4615_v11, %v2250_v33  ;;  %v2253_v21 = vadd.f32 %v4530_v14, %v6087_v13  ;;  %3275 = vmatpush1.bf16.msra.mxu0 %v2483_v18  ;;  %4641 = vmatpush1.bf16.msra.mxu1 %v2483_v18  ;;  %v4893_v13 = vld [vmem:[%s6656_s3 + $0x14] ss:$8 sps:$4 sm:$0xff]   ;;  %v4958_v4 = vld [vmem:[%s6656_s3 + $0x1b0] ss:$8 sps:$4 sm:$0xff]   ;;  %v4961_v6 = vld [vmem:[%s6656_s3 + $0x1c4] ss:$8 sps:$4 sm:$0xff]  }
 0x228   : > { %3276 = vmatprep.subr.bf16.mxu0 %v5007_v1  ;;  %4630 = vmatprep.subr.bf16.mxu1 %v5007_v1  ;;  %v4895_v1 = vld [vmem:[%s6656_s3 + $0x114] ss:$8 sps:$4 sm:$0xff]   ;;  %v4963_v30 = vld [vmem:[%s6656_s3 + $0xc0] ss:$8 sps:$4 sm:$0xff]   ;;  %v4969_v10 = vld [vmem:[%s6656_s3 + $0xd0] ss:$8 sps:$4 sm:$0xff]  }
 0x229   : > { %v2382_v17 = vadd.f32 %v4618_v16, %v2253_v21  ;;  %v2407_v28 = vmax.f32 %v2379_v24, 0.0  ;;  %v4964_v19 = vld [vmem:[%s6656_s3 + $0x1c0] ss:$8 sps:$4 sm:$0xff]   ;;  %v4965_v11 = vld [vmem:[%s6656_s3 + $0xd4] ss:$8 sps:$4 sm:$0xff]  }
 0x22a   : > { %v4967_v20 = vld [vmem:[%s6656_s3 + $0x1d4] ss:$8 sps:$4 sm:$0xff]   ;;  %v4970_v18 = vld [vmem:[%s6656_s3 + $0x1d0] ss:$8 sps:$4 sm:$0xff]   ;;  %v4971_v33 = vld [vmem:[%s6656_s3 + $0xe4] ss:$8 sps:$4 sm:$0xff]  }
 0x22b   : > { %v2408_v22 = vmax.f32 %v2382_v17, 0.0  ;;  %v4973_v14 = vld [vmem:[%s6656_s3 + $0x1e4] ss:$8 sps:$4 sm:$0xff]   ;;  %v4975_v15 = vld [vmem:[%s6656_s3 + $0xe0] ss:$8 sps:$4 sm:$0xff]   ;;  %v2552_v17 = vpop.permute.xlu0 %2551 }
 0x22c   : > { %v4976_v16 = vld [vmem:[%s6656_s3 + $0x1e0] ss:$8 sps:$4 sm:$0xff]   ;;  %v4977_v24 = vld [vmem:[%s6656_s3 + $0xf4] ss:$8 sps:$4 sm:$0xff]  }
 0x22d   : > { %v2484_v23 = vpack.c.bf16 %v2408_v22, %v2407_v28  ;;  %v4979_v21 = vld [vmem:[%s6656_s3 + $0x1f4] ss:$8 sps:$4 sm:$0xff]   ;;  %v2557_v28 = vpop.permute.xlu1 %2556  ;;  %v4981_v22 = vld [vmem:[%s6656_s3 + $0xf0] ss:$8 sps:$4 sm:$0xff]  }
 0x22f   : > { %3277 = vmatpush1.bf16.msra.mxu0 %v2484_v23  ;;  %4642 = vmatpush1.bf16.msra.mxu1 %v2484_v23  ;;  %v4982_v23 = vld [vmem:[%s6656_s3 + $0x1f0] ss:$8 sps:$4 sm:$0xff]  }
 0x232   : > { %3287 = vmatmul.mubr.bf16.vlgmr.msra.gmra.mrb[144].mxu0 %v4887_v55  ;;  %3415 = vmatmul.mubr.bf16.vlgmr.msra.gmra.mrb[144].mxu1 %v4890_v25  ;;  %v6351_v55 = vpop.permute.xlu0 %2561  ;;  %v6353_v25 = vpop.permute.xlu1 %2566 }
 0x233   : > { %4056 = vmatprep.mubr.msk.bf16.mxu0 %vm3157_vm0, %v4893_v13  ;;  %4072 = vmatprep.mubr.msk.bf16.mxu1 %vm3157_vm0, %v4895_v1 }
 0x236   : > { %v6355_v13 = vpop.permute.xlu0 %2571  ;;  %v6357_v1 = vpop.permute.xlu1 %2576 }
 0x23a   : > { %3295 = vmatmul.mubr.bf16.gmra.mrb[148].mxu0 %v4897_v32  ;;  %3423 = vmatmul.mubr.bf16.gmra.mrb[148].mxu1 %v4898_v26  ;;  %v6359_v32 = vpop.permute.xlu0 %2581  ;;  %v6361_v26 = vpop.permute.xlu1 %2586 }
 0x23b   : > { %4057 = vmatprep.mubr.msk.bf16.mxu0 %vm3157_vm0, %v4899_v29  ;;  %4073 = vmatprep.mubr.msk.bf16.mxu1 %vm3157_vm0, %v4901_v27 }
 0x23e   : > { %v6363_v29 = vpop.permute.xlu0 %2591  ;;  %v6365_v27 = vpop.permute.xlu1 %2596 }
 0x242   : > { %3303 = vmatmul.mubr.bf16.gmra.mrb[152].mxu0 %v4903_v36  ;;  %3431 = vmatmul.mubr.bf16.gmra.mrb[152].mxu1 %v4904_v31  ;;  %v6367_v36 = vpop.permute.xlu0 %2601  ;;  %v6369_v31 = vpop.permute.xlu1 %2606 }
 0x243   : > { %4058 = vmatprep.mubr.msk.bf16.mxu0 %vm3157_vm0, %v4905_v43  ;;  %4074 = vmatprep.mubr.msk.bf16.mxu1 %vm3157_vm0, %v4907_v37 }
 0x246   : > { %v6371_v43 = vpop.permute.xlu0 %2611  ;;  %v6373_v37 = vpop.permute.xlu1 %2616 }
 0x24a   : > { %3311 = vmatmul.mubr.bf16.gmra.mrb[156].mxu0 %v4909_v35  ;;  %3439 = vmatmul.mubr.bf16.gmra.mrb[156].mxu1 %v4910_v34  ;;  %v6375_v35 = vpop.permute.xlu0 %2621  ;;  %v6377_v34 = vpop.permute.xlu1 %2626 }
 0x24b   : > { %4059 = vmatprep.mubr.msk.bf16.mxu0 %vm3157_vm0, %v4911_v44  ;;  %4075 = vmatprep.mubr.msk.bf16.mxu1 %vm3157_vm0, %v4913_v38 }
 0x24e   : > { %v6379_v44 = vpop.permute.xlu0 %2631  ;;  %v6381_v38 = vpop.permute.xlu1 %2636 }
 0x252   : > { %3319 = vmatmul.mubr.bf16.gmra.mrb[160].mxu0 %v4915_v48  ;;  %3447 = vmatmul.mubr.bf16.gmra.mrb[160].mxu1 %v4916_v42  ;;  %v6383_v48 = vpop.permute.xlu0 %2641  ;;  %v6385_v42 = vpop.permute.xlu1 %2646 }
 0x253   : > { %4060 = vmatprep.mubr.msk.bf16.mxu0 %vm3157_vm0, %v4917_v39  ;;  %4076 = vmatprep.mubr.msk.bf16.mxu1 %vm3157_vm0, %v4919_v40 }
 0x256   : > { %v6387_v39 = vpop.permute.xlu0 %2651  ;;  %v6389_v40 = vpop.permute.xlu1 %2656 }
 0x25a   : > { %3327 = vmatmul.mubr.bf16.gmra.mrb[164].mxu0 %v4921_v41  ;;  %3455 = vmatmul.mubr.bf16.gmra.mrb[164].mxu1 %v4922_v50  ;;  %v6391_v41 = vpop.permute.xlu0 %2661  ;;  %v6393_v50 = vpop.permute.xlu1 %2666 }
 0x25b   : > { %4061 = vmatprep.mubr.msk.bf16.mxu0 %vm3157_vm0, %v4923_v45  ;;  %4077 = vmatprep.mubr.msk.bf16.mxu1 %vm3157_vm0, %v4925_v52 }
 0x25e   : > { %v6395_v45 = vpop.permute.xlu0 %2671  ;;  %v6397_v52 = vpop.permute.xlu1 %2676 }
 0x262   : > { %3335 = vmatmul.mubr.bf16.gmra.mrb[168].mxu0 %v4927_v46  ;;  %3463 = vmatmul.mubr.bf16.gmra.mrb[168].mxu1 %v4928_v47  ;;  %v6399_v46 = vpop.permute.xlu0 %2681  ;;  %v6401_v47 = vpop.permute.xlu1 %2686 }
 0x263   : > { %4062 = vmatprep.mubr.msk.bf16.mxu0 %vm3157_vm0, %v4929_v56  ;;  %4078 = vmatprep.mubr.msk.bf16.mxu1 %vm3157_vm0, %v4931_v51 }
 0x266   : > { %v6403_v56 = vpop.permute.xlu0 %2691  ;;  %v6405_v51 = vpop.permute.xlu1 %2696 }
 0x26a   : > { %3343 = vmatmul.mubr.bf16.gmra.mrb[172].mxu0 %v4933_v8  ;;  %3471 = vmatmul.mubr.bf16.gmra.mrb[172].mxu1 %v4934_v7  ;;  %v6407_v8 = vpop.permute.xlu0 %2701  ;;  %v6409_v7 = vpop.permute.xlu1 %2706 }
 0x26b   : > { %4063 = vmatprep.mubr.msk.bf16.mxu0 %vm3157_vm0, %v4935_v60  ;;  %4079 = vmatprep.mubr.msk.bf16.mxu1 %vm3157_vm0, %v4937_v53 }
 0x26e   : > { %v2712_v60 = vpop.permute.xlu0 %2711  ;;  %v2717_v53 = vpop.permute.xlu1 %2716 }
 0x272   : > { %3351 = vmatmul.mubr.bf16.gmra.mrb[176].mxu0 %v4939_v49  ;;  %3479 = vmatmul.mubr.bf16.gmra.mrb[176].mxu1 %v4940_v61  ;;  %v3543_v61 = vld [vmem:[%s6415_s11] sm:$0xff] }
 0x273   : > { %4064 = vmatprep.mubr.msk.bf16.mxu0 %vm3157_vm0, %v4941_v3  ;;  %4080 = vmatprep.mubr.msk.bf16.mxu1 %vm3157_vm0, %v4943_v9  ;;  %v3575_v9 = vld [vmem:[%s6415_s11 + $0x100] sm:$0xff] }
 0x27a   : > { %3359 = vmatmul.mubr.bf16.gmra.mrb[180].mxu0 %v4945_v54  ;;  %3487 = vmatmul.mubr.bf16.gmra.mrb[180].mxu1 %v4946_v2 }
 0x27b   : > { %4065 = vmatprep.mubr.msk.bf16.mxu0 %vm3157_vm0, %v4947_v57  ;;  %4081 = vmatprep.mubr.msk.bf16.mxu1 %vm3157_vm0, %v4949_v59 }
 0x282   : > { %3367 = vmatmul.mubr.bf16.gmra.mrb[184].mxu0 %v4951_v58  ;;  %3495 = vmatmul.mubr.bf16.gmra.mrb[184].mxu1 %v4952_v62  ;;  %v3544_v62 = vld [vmem:[%s6415_s11 + $0x8] sm:$0xff] }
 0x283   : > { %4066 = vmatprep.mubr.msk.bf16.mxu0 %vm3157_vm0, %v4953_v5  ;;  %4082 = vmatprep.mubr.msk.bf16.mxu1 %vm3157_vm0, %v4955_v63  ;;  %v3576_v63 = vld [vmem:[%s6415_s11 + $0x108] sm:$0xff] }
 0x28a   : > { %3375 = vmatmul.mubr.bf16.gmra.mrb[188].mxu0 %v4957_v0  ;;  %3503 = vmatmul.mubr.bf16.gmra.mrb[188].mxu1 %v4958_v4 }
 0x28b   : > { %4067 = vmatprep.mubr.msk.bf16.mxu0 %vm3157_vm0, %v4959_v12  ;;  %4083 = vmatprep.mubr.msk.bf16.mxu1 %vm3157_vm0, %v4961_v6 }
 0x292   : > { %3383 = vmatmul.mubr.bf16.gmra.mrb[192].mxu0 %v4963_v30  ;;  %3511 = vmatmul.mubr.bf16.gmra.mrb[192].mxu1 %v4964_v19 }
 0x293   : > { %4068 = vmatprep.mubr.msk.bf16.mxu0 %vm3157_vm0, %v4965_v11  ;;  %4084 = vmatprep.mubr.msk.bf16.mxu1 %vm3157_vm0, %v4967_v20 }
 0x29a   : > { %3391 = vmatmul.mubr.bf16.gmra.mrb[196].mxu0 %v4969_v10  ;;  %3519 = vmatmul.mubr.bf16.gmra.mrb[196].mxu1 %v4970_v18  ;;  %v2722_v10 = vpop.permute.xlu0 %2721  ;;  %v2727_v18 = vpop.permute.xlu1 %2726 }
 0x29b   : > { %4069 = vmatprep.mubr.msk.bf16.mxu0 %vm3157_vm0, %v4971_v33  ;;  %4085 = vmatprep.mubr.msk.bf16.mxu1 %vm3157_vm0, %v4973_v14  ;;  %v3545_v14 = vld [vmem:[%s6415_s11 + $0x10] sm:$0xff] }
 0x2a2   : > { %3399 = vmatmul.mubr.bf16.gmra.mrb[200].mxu0 %v4975_v15  ;;  %3527 = vmatmul.mubr.bf16.gmra.mrb[200].mxu1 %v4976_v16  ;;  %v3577_v16 = vld [vmem:[%s6415_s11 + $0x110] sm:$0xff] }
 0x2a3   : > { %4070 = vmatprep.mubr.msk.bf16.mxu0 %vm3157_vm0, %v4977_v24  ;;  %4086 = vmatprep.mubr.msk.bf16.mxu1 %vm3157_vm0, %v4979_v21 }
 0x2aa   : > { %3407 = vmatmul.mubr.bf16.gmra.mrb[204].mxu0 %v4981_v22  ;;  %3535 = vmatmul.mubr.bf16.gmra.mrb[204].mxu1 %v4982_v23  ;;  %v3546_v23 = vld [vmem:[%s6415_s11 + $0x18] sm:$0xff] }
 0x305   : > { %v3288_v49 = vpop.f32.mrb[144].mxu0  ;;  %v3416_v3 = vpop.f32.mrb[144].mxu1 }
 0x306   : > { %v3289_v54 = vadd.f32 %v3288_v49, %v2552_v17  ;;  %v3417_v2 = vadd.f32 %v3416_v3, %v2712_v60  ;;  %v3290_v57 = vpop.f32.mrb[145].mxu0  ;;  %v3418_v59 = vpop.f32.mrb[145].mxu1 }
 0x307   : > { %v3291_v58 = vpop.f32.mrb[146].mxu0  ;;  %v3419_v5 = vpop.f32.mrb[146].mxu1 }
 0x308   : > { %v3607_v0 = vadd.f32 %v3543_v61, %v3289_v54  ;;  %v3639_v4 = vadd.f32 %v3575_v9, %v3417_v2  ;;  %v3292_v12 = vadd.f32 %v3291_v58, %v2557_v28  ;;  %v3420_v6 = vadd.f32 %v3419_v5, %v2717_v53  ;;  %v3293_v30 = vpop.f32.mrb[147].mxu0  ;;  %v3421_v19 = vpop.f32.mrb[147].mxu1  ;;  %v3578_v53 = vld [vmem:[%s6415_s11 + $0x118] sm:$0xff]  ;;  %v3547_v5 = vld [vmem:[%s6415_s11 + $0x20] sm:$0xff] }
 0x309   : > { %v2732_v59 = vpop.permute.xlu0 %2731  ;;  %v2737_v58 = vpop.permute.xlu1 %2736  ;;  %v3548_v19 = vld [vmem:[%s6415_s11 + $0x28] sm:$0xff] }
 0x30a   : > { %3672 = vst.msk [vmem:[%s6422_s12] sm:$0xff] %vm3671_vm1, %v3607_v0  ;;  %3704 = vst.msk [vmem:[%s6422_s12 + $0x100] sm:$0xff] %vm3671_vm1, %v3639_v4  ;;  %v3608_v11 = vadd.f32 %v3544_v62, %v3292_v12  ;;  %v3640_v20 = vadd.f32 %v3576_v63, %v3420_v6  ;;  %v3579_v63 = vld [vmem:[%s6415_s11 + $0x120] sm:$0xff] }
 0x30c   : > { %3673 = vst.msk [vmem:[%s6422_s12 + $0x8] sm:$0xff] %vm3671_vm1, %v3608_v11  ;;  %3705 = vst.msk [vmem:[%s6422_s12 + $0x108] sm:$0xff] %vm3671_vm1, %v3640_v20  ;;  %v3580_v20 = vld [vmem:[%s6415_s11 + $0x128] sm:$0xff] }
 0x30d   : > { %v3296_v33 = vpop.f32.mrb[148].mxu0  ;;  %v3424_v15 = vpop.f32.mrb[148].mxu1 }
 0x30e   : > { %v3297_v24 = vadd.f32 %v3296_v33, %v6351_v55  ;;  %v3425_v21 = vadd.f32 %v3424_v15, %v2722_v10  ;;  %v3298_v17 = vpop.f32.mrb[149].mxu0  ;;  %v3426_v28 = vpop.f32.mrb[149].mxu1 }
 0x30f   : > { %v3299_v22 = vpop.f32.mrb[150].mxu0  ;;  %v3427_v60 = vpop.f32.mrb[150].mxu1 }
 0x310   : > { %v3609_v49 = vadd.f32 %v3545_v14, %v3297_v24  ;;  %v3641_v61 = vadd.f32 %v3577_v16, %v3425_v21  ;;  %v3300_v3 = vadd.f32 %v3299_v22, %v6353_v25  ;;  %v3428_v9 = vadd.f32 %v3427_v60, %v2727_v18  ;;  %v3301_v54 = vpop.f32.mrb[151].mxu0  ;;  %v3429_v2 = vpop.f32.mrb[151].mxu1  ;;  %v3549_v22 = vld [vmem:[%s6415_s11 + $0x30] sm:$0xff] }
 0x311   : > { %v2742_v21 = vpop.permute.xlu0 %2741  ;;  %v2747_v17 = vpop.permute.xlu1 %2746  ;;  %v3582_v2 = vld [vmem:[%s6415_s11 + $0x138] sm:$0xff] }
 0x312   : > { %3674 = vst.msk [vmem:[%s6422_s12 + $0x10] sm:$0xff] %vm3671_vm1, %v3609_v49  ;;  %3706 = vst.msk [vmem:[%s6422_s12 + $0x110] sm:$0xff] %vm3671_vm1, %v3641_v61  ;;  %v3610_v55 = vadd.f32 %v3546_v23, %v3300_v3  ;;  %v3642_v57 = vadd.f32 %v3578_v53, %v3428_v9  ;;  %v3581_v23 = vld [vmem:[%s6415_s11 + $0x130] sm:$0xff]  ;;  %v3550_v9 = vld [vmem:[%s6415_s11 + $0x38] sm:$0xff] }
 0x314   : > { %3675 = vst.msk [vmem:[%s6422_s12 + $0x18] sm:$0xff] %vm3671_vm1, %v3610_v55  ;;  %3707 = vst.msk [vmem:[%s6422_s12 + $0x118] sm:$0xff] %vm3671_vm1, %v3642_v57 }
 0x315   : > { %v3304_v62 = vpop.f32.mrb[152].mxu0  ;;  %v3432_v25 = vpop.f32.mrb[152].mxu1 }
 0x316   : > { %v3305_v0 = vadd.f32 %v3304_v62, %v6355_v13  ;;  %v3433_v4 = vadd.f32 %v3432_v25, %v2732_v59  ;;  %v3306_v12 = vpop.f32.mrb[153].mxu0  ;;  %v3434_v6 = vpop.f32.mrb[153].mxu1 }
 0x317   : > { %v3307_v30 = vpop.f32.mrb[154].mxu0  ;;  %v3435_v11 = vpop.f32.mrb[154].mxu1  ;;  %v3551_v12 = vld [vmem:[%s6415_s11 + $0x40] sm:$0xff] }
 0x318   : > { %v3611_v10 = vadd.f32 %v3547_v5, %v3305_v0  ;;  %v3643_v18 = vadd.f32 %v3579_v63, %v3433_v4  ;;  %v3308_v33 = vadd.f32 %v3307_v30, %v6357_v1  ;;  %v3436_v14 = vadd.f32 %v3435_v11, %v2737_v58  ;;  %v3309_v15 = vpop.f32.mrb[155].mxu0  ;;  %v3437_v16 = vpop.f32.mrb[155].mxu1  ;;  %v3583_v6 = vld [vmem:[%s6415_s11 + $0x140] sm:$0xff] }
 0x319   : > { %v2752_v63 = vpop.permute.xlu0 %2751  ;;  %v2757_v0 = vpop.permute.xlu1 %2756 }
 0x31a   : > { %3676 = vst.msk [vmem:[%s6422_s12 + $0x20] sm:$0xff] %vm3671_vm1, %v3611_v10  ;;  %3708 = vst.msk [vmem:[%s6422_s12 + $0x120] sm:$0xff] %vm3671_vm1, %v3643_v18  ;;  %v3612_v13 = vadd.f32 %v3548_v19, %v3308_v33  ;;  %v3644_v24 = vadd.f32 %v3580_v20, %v3436_v14  ;;  %v3552_v18 = vld [vmem:[%s6415_s11 + $0x48] sm:$0xff] }
 0x31b   : > { %v3584_v14 = vld [vmem:[%s6415_s11 + $0x148] sm:$0xff] }
 0x31c   : > { %3677 = vst.msk [vmem:[%s6422_s12 + $0x28] sm:$0xff] %vm3671_vm1, %v3612_v13  ;;  %3709 = vst.msk [vmem:[%s6422_s12 + $0x128] sm:$0xff] %vm3671_vm1, %v3644_v24 }
 0x31d   : > { %v3312_v28 = vpop.f32.mrb[156].mxu0  ;;  %v3440_v1 = vpop.f32.mrb[156].mxu1 }
 0x31e   : > { %v3313_v60 = vadd.f32 %v3312_v28, %v6359_v32  ;;  %v3441_v53 = vadd.f32 %v3440_v1, %v2742_v21  ;;  %v3314_v49 = vpop.f32.mrb[157].mxu0  ;;  %v3442_v61 = vpop.f32.mrb[157].mxu1 }
 0x31f   : > { %v3315_v3 = vpop.f32.mrb[158].mxu0  ;;  %v3443_v54 = vpop.f32.mrb[158].mxu1 }
 0x320   : > { %v3613_v55 = vadd.f32 %v3549_v22, %v3313_v60  ;;  %v3645_v57 = vadd.f32 %v3581_v23, %v3441_v53  ;;  %v3316_v59 = vadd.f32 %v3315_v3, %v6361_v26  ;;  %v3444_v58 = vadd.f32 %v3443_v54, %v2747_v17  ;;  %v3317_v62 = vpop.f32.mrb[159].mxu0  ;;  %v3445_v5 = vpop.f32.mrb[159].mxu1  ;;  %v3553_v60 = vld [vmem:[%s6415_s11 + $0x50] sm:$0xff] }
 0x321   : > { %v2762_v22 = vpop.permute.xlu0 %2761  ;;  %v2767_v1 = vpop.permute.xlu1 %2766  ;;  %v3585_v53 = vld [vmem:[%s6415_s11 + $0x150] sm:$0xff] }
 0x322   : > { %3678 = vst.msk [vmem:[%s6422_s12 + $0x30] sm:$0xff] %vm3671_vm1, %v3613_v55  ;;  %3710 = vst.msk [vmem:[%s6422_s12 + $0x130] sm:$0xff] %vm3671_vm1, %v3645_v57  ;;  %v3614_v32 = vadd.f32 %v3550_v9, %v3316_v59  ;;  %v3646_v25 = vadd.f32 %v3582_v2, %v3444_v58  ;;  %v3554_v2 = vld [vmem:[%s6415_s11 + $0x58] sm:$0xff] }
 0x323   : > { %v3586_v57 = vld [vmem:[%s6415_s11 + $0x158] sm:$0xff] }
 0x324   : > { %3679 = vst.msk [vmem:[%s6422_s12 + $0x38] sm:$0xff] %vm3671_vm1, %v3614_v32  ;;  %3711 = vst.msk [vmem:[%s6422_s12 + $0x138] sm:$0xff] %vm3671_vm1, %v3646_v25 }
 0x325   : > { %v3320_v4 = vpop.f32.mrb[160].mxu0  ;;  %v3448_v26 = vpop.f32.mrb[160].mxu1 }
 0x326   : > { %v3321_v30 = vadd.f32 %v3320_v4, %v6363_v29  ;;  %v3449_v19 = vadd.f32 %v3448_v26, %v2752_v63  ;;  %v3322_v11 = vpop.f32.mrb[161].mxu0  ;;  %v3450_v20 = vpop.f32.mrb[161].mxu1  ;;  %v3555_v26 = vld [vmem:[%s6415_s11 + $0x60] sm:$0xff] }
 0x327   : > { %v3323_v10 = vpop.f32.mrb[162].mxu0  ;;  %v3451_v33 = vpop.f32.mrb[162].mxu1 }
 0x328   : > { %v3615_v15 = vadd.f32 %v3551_v12, %v3321_v30  ;;  %v3647_v16 = vadd.f32 %v3583_v6, %v3449_v19  ;;  %v3324_v13 = vadd.f32 %v3323_v10, %v6365_v27  ;;  %v3452_v24 = vadd.f32 %v3451_v33, %v2757_v0  ;;  %v3325_v21 = vpop.f32.mrb[163].mxu0  ;;  %v3453_v17 = vpop.f32.mrb[163].mxu1  ;;  %v3587_v6 = vld [vmem:[%s6415_s11 + $0x160] sm:$0xff] }
 0x329   : > { %v2772_v0 = vpop.permute.xlu0 %2771  ;;  %v2777_v4 = vpop.permute.xlu1 %2776 }
 0x32a   : > { %3680 = vst.msk [vmem:[%s6422_s12 + $0x40] sm:$0xff] %vm3671_vm1, %v3615_v15  ;;  %3712 = vst.msk [vmem:[%s6422_s12 + $0x140] sm:$0xff] %vm3671_vm1, %v3647_v16  ;;  %v3616_v29 = vadd.f32 %v3552_v18, %v3324_v13  ;;  %v3648_v28 = vadd.f32 %v3584_v14, %v3452_v24  ;;  %v3556_v18 = vld [vmem:[%s6415_s11 + $0x68] sm:$0xff] }
 0x32b   : > { %v3588_v14 = vld [vmem:[%s6415_s11 + $0x168] sm:$0xff] }
 0x32c   : > { %3681 = vst.msk [vmem:[%s6422_s12 + $0x48] sm:$0xff] %vm3671_vm1, %v3616_v29  ;;  %3713 = vst.msk [vmem:[%s6422_s12 + $0x148] sm:$0xff] %vm3671_vm1, %v3648_v28 }
 0x32d   : > { %v3328_v23 = vpop.f32.mrb[164].mxu0  ;;  %v3456_v27 = vpop.f32.mrb[164].mxu1 }
 0x32e   : > { %v3329_v49 = vadd.f32 %v3328_v23, %v6367_v36  ;;  %v3457_v61 = vadd.f32 %v3456_v27, %v2762_v22  ;;  %v3330_v3 = vpop.f32.mrb[165].mxu0  ;;  %v3458_v9 = vpop.f32.mrb[165].mxu1  ;;  %v3557_v23 = vld [vmem:[%s6415_s11 + $0x70] sm:$0xff] }
 0x32f   : > { %v3331_v54 = vpop.f32.mrb[166].mxu0  ;;  %v3459_v55 = vpop.f32.mrb[166].mxu1  ;;  %v3558_v9 = vld [vmem:[%s6415_s11 + $0x78] sm:$0xff] }
 0x330   : > { %v3617_v59 = vadd.f32 %v3553_v60, %v3329_v49  ;;  %v3649_v58 = vadd.f32 %v3585_v53, %v3457_v61  ;;  %v3332_v62 = vadd.f32 %v3331_v54, %v6369_v31  ;;  %v3460_v5 = vadd.f32 %v3459_v55, %v2767_v1  ;;  %v3333_v32 = vpop.f32.mrb[167].mxu0  ;;  %v3461_v25 = vpop.f32.mrb[167].mxu1  ;;  %v3589_v60 = vld [vmem:[%s6415_s11 + $0x170] sm:$0xff] }
 0x331   : > { %v2782_v28 = vpop.permute.xlu0 %2781  ;;  %v2787_v22 = vpop.permute.xlu1 %2786 }
 0x332   : > { %3682 = vst.msk [vmem:[%s6422_s12 + $0x50] sm:$0xff] %vm3671_vm1, %v3617_v59  ;;  %3714 = vst.msk [vmem:[%s6422_s12 + $0x150] sm:$0xff] %vm3671_vm1, %v3649_v58  ;;  %v3618_v36 = vadd.f32 %v3554_v2, %v3332_v62  ;;  %v3650_v63 = vadd.f32 %v3586_v57, %v3460_v5  ;;  %v3590_v2 = vld [vmem:[%s6415_s11 + $0x178] sm:$0xff] }
 0x334   : > { %3683 = vst.msk [vmem:[%s6422_s12 + $0x58] sm:$0xff] %vm3671_vm1, %v3618_v36  ;;  %3715 = vst.msk [vmem:[%s6422_s12 + $0x158] sm:$0xff] %vm3671_vm1, %v3650_v63 }
 0x335   : > { %v3336_v12 = vpop.f32.mrb[168].mxu0  ;;  %v3464_v31 = vpop.f32.mrb[168].mxu1 }
 0x336   : > { %v3337_v30 = vadd.f32 %v3336_v12, %v6371_v43  ;;  %v3465_v19 = vadd.f32 %v3464_v31, %v2772_v0  ;;  %v3338_v11 = vpop.f32.mrb[169].mxu0  ;;  %v3466_v20 = vpop.f32.mrb[169].mxu1  ;;  %v3559_v0 = vld [vmem:[%s6415_s11 + $0x80] sm:$0xff] }
 0x337   : > { %v3339_v10 = vpop.f32.mrb[170].mxu0  ;;  %v3467_v33 = vpop.f32.mrb[170].mxu1  ;;  %v3592_v20 = vld [vmem:[%s6415_s11 + $0x188] sm:$0xff] }
 0x338   : > { %v3619_v15 = vadd.f32 %v3555_v26, %v3337_v30  ;;  %v3651_v16 = vadd.f32 %v3587_v6, %v3465_v19  ;;  %v3340_v13 = vadd.f32 %v3339_v10, %v6373_v37  ;;  %v3468_v24 = vadd.f32 %v3467_v33, %v2777_v4  ;;  %v3341_v21 = vpop.f32.mrb[171].mxu0  ;;  %v3469_v17 = vpop.f32.mrb[171].mxu1  ;;  %v3591_v4 = vld [vmem:[%s6415_s11 + $0x180] sm:$0xff]  ;;  %v3560_v19 = vld [vmem:[%s6415_s11 + $0x88] sm:$0xff] }
 0x339   : > { %v2792_v25 = vpop.permute.xlu0 %2791  ;;  %v2797_v36 = vpop.permute.xlu1 %2796 }
 0x33a   : > { %3684 = vst.msk [vmem:[%s6422_s12 + $0x60] sm:$0xff] %vm3671_vm1, %v3619_v15  ;;  %3716 = vst.msk [vmem:[%s6422_s12 + $0x160] sm:$0xff] %vm3671_vm1, %v3651_v16  ;;  %v3620_v43 = vadd.f32 %v3556_v18, %v3340_v13  ;;  %v3652_v29 = vadd.f32 %v3588_v14, %v3468_v24 }
 0x33c   : > { %3685 = vst.msk [vmem:[%s6422_s12 + $0x68] sm:$0xff] %vm3671_vm1, %v3620_v43  ;;  %3717 = vst.msk [vmem:[%s6422_s12 + $0x168] sm:$0xff] %vm3671_vm1, %v3652_v29  ;;  %v3561_v43 = vld [vmem:[%s6415_s11 + $0x90] sm:$0xff] }
 0x33d   : > { %v3344_v1 = vpop.f32.mrb[172].mxu0  ;;  %v3472_v37 = vpop.f32.mrb[172].mxu1  ;;  %v3593_v29 = vld [vmem:[%s6415_s11 + $0x190] sm:$0xff] }
 0x33e   : > { %v3345_v27 = vadd.f32 %v3344_v1, %v6375_v35  ;;  %v3473_v53 = vadd.f32 %v3472_v37, %v2782_v28  ;;  %v3346_v49 = vpop.f32.mrb[173].mxu0  ;;  %v3474_v61 = vpop.f32.mrb[173].mxu1 }
 0x33f   : > { %v3347_v3 = vpop.f32.mrb[174].mxu0  ;;  %v3475_v54 = vpop.f32.mrb[174].mxu1 }
 0x340   : > { %v3621_v55 = vadd.f32 %v3557_v23, %v3345_v27  ;;  %v3653_v57 = vadd.f32 %v3589_v60, %v3473_v53  ;;  %v3348_v59 = vadd.f32 %v3347_v3, %v6377_v34  ;;  %v3476_v58 = vadd.f32 %v3475_v54, %v2787_v22  ;;  %v3349_v62 = vpop.f32.mrb[175].mxu0  ;;  %v3477_v5 = vpop.f32.mrb[175].mxu1  ;;  %v3562_v60 = vld [vmem:[%s6415_s11 + $0x98] sm:$0xff] }
 0x341   : > { %v2802_v24 = vpop.permute.xlu0 %2801  ;;  %v2807_v21 = vpop.permute.xlu1 %2806  ;;  %v3594_v53 = vld [vmem:[%s6415_s11 + $0x198] sm:$0xff]  ;;  %v3563_v62 = vld [vmem:[%s6415_s11 + $0xa0] sm:$0xff] }
 0x342   : > { %3686 = vst.msk [vmem:[%s6422_s12 + $0x70] sm:$0xff] %vm3671_vm1, %v3621_v55  ;;  %3718 = vst.msk [vmem:[%s6422_s12 + $0x170] sm:$0xff] %vm3671_vm1, %v3653_v57  ;;  %v3622_v35 = vadd.f32 %v3558_v9, %v3348_v59  ;;  %v3654_v32 = vadd.f32 %v3590_v2, %v3476_v58  ;;  %v3595_v5 = vld [vmem:[%s6415_s11 + $0x1a0] sm:$0xff] }
 0x344   : > { %3687 = vst.msk [vmem:[%s6422_s12 + $0x78] sm:$0xff] %vm3671_vm1, %v3622_v35  ;;  %3719 = vst.msk [vmem:[%s6422_s12 + $0x178] sm:$0xff] %vm3671_vm1, %v3654_v32 }
 0x345   : > { %v3352_v63 = vpop.f32.mrb[176].mxu0  ;;  %v3480_v34 = vpop.f32.mrb[176].mxu1 }
 0x346   : > { %v3353_v12 = vadd.f32 %v3352_v63, %v6379_v44  ;;  %v3481_v26 = vadd.f32 %v3480_v34, %v2792_v25  ;;  %v3354_v31 = vpop.f32.mrb[177].mxu0  ;;  %v3482_v6 = vpop.f32.mrb[177].mxu1 }
 0x347   : > { %v3355_v30 = vpop.f32.mrb[178].mxu0  ;;  %v3483_v11 = vpop.f32.mrb[178].mxu1 }
 0x348   : > { %v3623_v10 = vadd.f32 %v3559_v0, %v3353_v12  ;;  %v3655_v18 = vadd.f32 %v3591_v4, %v3481_v26  ;;  %v3356_v33 = vadd.f32 %v3355_v30, %v6381_v38  ;;  %v3484_v14 = vadd.f32 %v3483_v11, %v2797_v36  ;;  %v3357_v15 = vpop.f32.mrb[179].mxu0  ;;  %v3485_v16 = vpop.f32.mrb[179].mxu1  ;;  %v3564_v0 = vld [vmem:[%s6415_s11 + $0xa8] sm:$0xff] }
 0x349   : > { %v2812_v57 = vpop.permute.xlu0 %2811  ;;  %v2817_v59 = vpop.permute.xlu1 %2816  ;;  %v3596_v4 = vld [vmem:[%s6415_s11 + $0x1a8] sm:$0xff] }
 0x34a   : > { %3688 = vst.msk [vmem:[%s6422_s12 + $0x80] sm:$0xff] %vm3671_vm1, %v3623_v10  ;;  %3720 = vst.msk [vmem:[%s6422_s12 + $0x180] sm:$0xff] %vm3671_vm1, %v3655_v18  ;;  %v3624_v44 = vadd.f32 %v3560_v19, %v3356_v33  ;;  %v3656_v13 = vadd.f32 %v3592_v20, %v3484_v14  ;;  %v3565_v33 = vld [vmem:[%s6415_s11 + $0xb0] sm:$0xff] }
 0x34b   : > { %v3597_v14 = vld [vmem:[%s6415_s11 + $0x1b0] sm:$0xff] }
 0x34c   : > { %3689 = vst.msk [vmem:[%s6422_s12 + $0x88] sm:$0xff] %vm3671_vm1, %v3624_v44  ;;  %3721 = vst.msk [vmem:[%s6422_s12 + $0x188] sm:$0xff] %vm3671_vm1, %v3656_v13 }
 0x34d   : > { %v3360_v17 = vpop.f32.mrb[180].mxu0  ;;  %v3488_v38 = vpop.f32.mrb[180].mxu1 }
 0x34e   : > { %v3361_v28 = vadd.f32 %v3360_v17, %v6383_v48  ;;  %v3489_v22 = vadd.f32 %v3488_v38, %v2802_v24  ;;  %v3362_v1 = vpop.f32.mrb[181].mxu0  ;;  %v3490_v23 = vpop.f32.mrb[181].mxu1 }
 0x34f   : > { %v3363_v37 = vpop.f32.mrb[182].mxu0  ;;  %v3491_v27 = vpop.f32.mrb[182].mxu1 }
 0x350   : > { %v3625_v49 = vadd.f32 %v3561_v43, %v3361_v28  ;;  %v3657_v61 = vadd.f32 %v3593_v29, %v3489_v22  ;;  %v3364_v3 = vadd.f32 %v3363_v37, %v6385_v42  ;;  %v3492_v9 = vadd.f32 %v3491_v27, %v2807_v21  ;;  %v3365_v54 = vpop.f32.mrb[183].mxu0  ;;  %v3493_v2 = vpop.f32.mrb[183].mxu1  ;;  %v3566_v21 = vld [vmem:[%s6415_s11 + $0xb8] sm:$0xff] }
 0x351   : > { %v2822_v20 = vpop.permute.xlu0 %2821  ;;  %v2827_v10 = vpop.permute.xlu1 %2826  ;;  %v3598_v43 = vld [vmem:[%s6415_s11 + $0x1b8] sm:$0xff] }
 0x352   : > { %3690 = vst.msk [vmem:[%s6422_s12 + $0x90] sm:$0xff] %vm3671_vm1, %v3625_v49  ;;  %3722 = vst.msk [vmem:[%s6422_s12 + $0x190] sm:$0xff] %vm3671_vm1, %v3657_v61  ;;  %v3626_v48 = vadd.f32 %v3562_v60, %v3364_v3  ;;  %v3658_v55 = vadd.f32 %v3594_v53, %v3492_v9  ;;  %v3567_v49 = vld [vmem:[%s6415_s11 + $0xc0] sm:$0xff] }
 0x353   : > { %v3599_v61 = vld [vmem:[%s6415_s11 + $0x1c0] sm:$0xff] }
 0x354   : > { %3691 = vst.msk [vmem:[%s6422_s12 + $0x98] sm:$0xff] %vm3671_vm1, %v3626_v48  ;;  %3723 = vst.msk [vmem:[%s6422_s12 + $0x198] sm:$0xff] %vm3671_vm1, %v3658_v55  ;;  %v3568_v55 = vld [vmem:[%s6415_s11 + $0xc8] sm:$0xff] }
 0x355   : > { %v3368_v58 = vpop.f32.mrb[184].mxu0  ;;  %v3496_v42 = vpop.f32.mrb[184].mxu1 }
 0x356   : > { %v3369_v35 = vadd.f32 %v3368_v58, %v6387_v39  ;;  %v3497_v32 = vadd.f32 %v3496_v42, %v2812_v57  ;;  %v3370_v25 = vpop.f32.mrb[185].mxu0  ;;  %v3498_v36 = vpop.f32.mrb[185].mxu1 }
 0x357   : > { %v3371_v63 = vpop.f32.mrb[186].mxu0  ;;  %v3499_v34 = vpop.f32.mrb[186].mxu1 }
 0x358   : > { %v3627_v12 = vadd.f32 %v3563_v62, %v3369_v35  ;;  %v3659_v26 = vadd.f32 %v3595_v5, %v3497_v32  ;;  %v3372_v31 = vadd.f32 %v3371_v63, %v6389_v40  ;;  %v3500_v6 = vadd.f32 %v3499_v34, %v2817_v59  ;;  %v3373_v30 = vpop.f32.mrb[187].mxu0  ;;  %v3501_v19 = vpop.f32.mrb[187].mxu1  ;;  %v3600_v59 = vld [vmem:[%s6415_s11 + $0x1c8] sm:$0xff]  ;;  %v3569_v34 = vld [vmem:[%s6415_s11 + $0xd0] sm:$0xff] }
 0x359   : > { %v2832_v60 = vpop.permute.xlu0 %2831  ;;  %v2837_v27 = vpop.permute.xlu1 %2836  ;;  %v3570_v19 = vld [vmem:[%s6415_s11 + $0xd8] sm:$0xff] }
 0x35a   : > { %3692 = vst.msk [vmem:[%s6422_s12 + $0xa0] sm:$0xff] %vm3671_vm1, %v3627_v12  ;;  %3724 = vst.msk [vmem:[%s6422_s12 + $0x1a0] sm:$0xff] %vm3671_vm1, %v3659_v26  ;;  %v3628_v39 = vadd.f32 %v3564_v0, %v3372_v31  ;;  %v3660_v11 = vadd.f32 %v3596_v4, %v3500_v6  ;;  %v3601_v4 = vld [vmem:[%s6415_s11 + $0x1d0] sm:$0xff] }
 0x35c   : > { %3693 = vst.msk [vmem:[%s6422_s12 + $0xa8] sm:$0xff] %vm3671_vm1, %v3628_v39  ;;  %3725 = vst.msk [vmem:[%s6422_s12 + $0x1a8] sm:$0xff] %vm3671_vm1, %v3660_v11  ;;  %v3602_v11 = vld [vmem:[%s6415_s11 + $0x1d8] sm:$0xff] }
 0x35d   : > { %v3376_v18 = vpop.f32.mrb[188].mxu0  ;;  %v3504_v40 = vpop.f32.mrb[188].mxu1 }
 0x35e   : > { %v3377_v15 = vadd.f32 %v3376_v18, %v6391_v41  ;;  %v3505_v16 = vadd.f32 %v3504_v40, %v2822_v20  ;;  %v3378_v44 = vpop.f32.mrb[189].mxu0  ;;  %v3506_v13 = vpop.f32.mrb[189].mxu1 }
 0x35f   : > { %v3379_v24 = vpop.f32.mrb[190].mxu0  ;;  %v3507_v17 = vpop.f32.mrb[190].mxu1 }
 0x360   : > { %v3629_v38 = vadd.f32 %v3565_v33, %v3377_v15  ;;  %v3661_v29 = vadd.f32 %v3597_v14, %v3505_v16  ;;  %v3380_v28 = vadd.f32 %v3379_v24, %v6393_v50  ;;  %v3508_v22 = vadd.f32 %v3507_v17, %v2827_v10  ;;  %v3381_v1 = vpop.f32.mrb[191].mxu0  ;;  %v3509_v23 = vpop.f32.mrb[191].mxu1  ;;  %v3571_v24 = vld [vmem:[%s6415_s11 + $0xe0] sm:$0xff] }
 0x361   : > { %v2842_v36 = vpop.permute.xlu0 %2841  ;;  %v2847_v63 = vpop.permute.xlu1 %2846  ;;  %v3604_v23 = vld [vmem:[%s6415_s11 + $0x1e8] sm:$0xff] }
 0x362   : > { %3694 = vst.msk [vmem:[%s6422_s12 + $0xb0] sm:$0xff] %vm3671_vm1, %v3629_v38  ;;  %3726 = vst.msk [vmem:[%s6422_s12 + $0x1b0] sm:$0xff] %vm3671_vm1, %v3661_v29  ;;  %v3630_v41 = vadd.f32 %v3566_v21, %v3380_v28  ;;  %v3662_v37 = vadd.f32 %v3598_v43, %v3508_v22  ;;  %v3603_v21 = vld [vmem:[%s6415_s11 + $0x1e0] sm:$0xff]  ;;  %v3572_v22 = vld [vmem:[%s6415_s11 + $0xe8] sm:$0xff] }
 0x364   : > { %3695 = vst.msk [vmem:[%s6422_s12 + $0xb8] sm:$0xff] %vm3671_vm1, %v3630_v41  ;;  %3727 = vst.msk [vmem:[%s6422_s12 + $0x1b8] sm:$0xff] %vm3671_vm1, %v3662_v37 }
 0x365   : > { %v3384_v53 = vpop.f32.mrb[192].mxu0  ;;  %v3512_v50 = vpop.f32.mrb[192].mxu1 }
 0x366   : > { %v3385_v3 = vadd.f32 %v3384_v53, %v6395_v45  ;;  %v3513_v9 = vadd.f32 %v3512_v50, %v2832_v60  ;;  %v3386_v54 = vpop.f32.mrb[193].mxu0  ;;  %v3514_v2 = vpop.f32.mrb[193].mxu1 }
 0x367   : > { %v3387_v48 = vpop.f32.mrb[194].mxu0  ;;  %v3515_v57 = vpop.f32.mrb[194].mxu1  ;;  %v3573_v54 = vld [vmem:[%s6415_s11 + $0xf0] sm:$0xff] }
 0x368   : > { %v3631_v58 = vadd.f32 %v3567_v49, %v3385_v3  ;;  %v3663_v62 = vadd.f32 %v3599_v61, %v3513_v9  ;;  %v3388_v42 = vadd.f32 %v3387_v48, %v6397_v52  ;;  %v3516_v5 = vadd.f32 %v3515_v57, %v2837_v27  ;;  %v3389_v35 = vpop.f32.mrb[195].mxu0  ;;  %v3517_v32 = vpop.f32.mrb[195].mxu1  ;;  %v3605_v2 = vld [vmem:[%s6415_s11 + $0x1f0] sm:$0xff] }
 0x369   : > { %v2852_v16 = vpop.permute.xlu0 %2851  ;;  %v2857_v44 = vpop.permute.xlu1 %2856 }
 0x36a   : > { %3696 = vst.msk [vmem:[%s6422_s12 + $0xc0] sm:$0xff] %vm3671_vm1, %v3631_v58  ;;  %3728 = vst.msk [vmem:[%s6422_s12 + $0x1c0] sm:$0xff] %vm3671_vm1, %v3663_v62  ;;  %v3632_v45 = vadd.f32 %v3568_v55, %v3388_v42  ;;  %v3664_v25 = vadd.f32 %v3600_v59, %v3516_v5  ;;  %v3574_v62 = vld [vmem:[%s6415_s11 + $0xf8] sm:$0xff] }
 0x36b   : > { %v3606_v5 = vld [vmem:[%s6415_s11 + $0x1f8] sm:$0xff] }
 0x36c   : > { %3697 = vst.msk [vmem:[%s6422_s12 + $0xc8] sm:$0xff] %vm3671_vm1, %v3632_v45  ;;  %3729 = vst.msk [vmem:[%s6422_s12 + $0x1c8] sm:$0xff] %vm3671_vm1, %v3664_v25 }
 0x36d   : > { %v3392_v0 = vpop.f32.mrb[196].mxu0  ;;  %v3520_v52 = vpop.f32.mrb[196].mxu1 }
 0x36e   : > { %v3393_v12 = vadd.f32 %v3392_v0, %v6399_v46  ;;  %v3521_v26 = vadd.f32 %v3520_v52, %v2842_v36  ;;  %v3394_v31 = vpop.f32.mrb[197].mxu0  ;;  %v3522_v6 = vpop.f32.mrb[197].mxu1 }
 0x36f   : > { %v3395_v30 = vpop.f32.mrb[198].mxu0  ;;  %v3523_v39 = vpop.f32.mrb[198].mxu1 }
 0x370   : > { %v3633_v20 = vadd.f32 %v3569_v34, %v3393_v12  ;;  %v3665_v10 = vadd.f32 %v3601_v4, %v3521_v26  ;;  %v3396_v18 = vadd.f32 %v3395_v30, %v6401_v47  ;;  %v3524_v33 = vadd.f32 %v3523_v39, %v2847_v63  ;;  %v3397_v40 = vpop.f32.mrb[199].mxu0  ;;  %v3525_v14 = vpop.f32.mrb[199].mxu1 }
 0x371   : > { %v2862_v61 = vpop.permute.xlu0 %2861  ;;  %v2867_v3 = vpop.permute.xlu1 %2866 }
 0x372   : > { %3698 = vst.msk [vmem:[%s6422_s12 + $0xd0] sm:$0xff] %vm3671_vm1, %v3633_v20  ;;  %3730 = vst.msk [vmem:[%s6422_s12 + $0x1d0] sm:$0xff] %vm3671_vm1, %v3665_v10  ;;  %v3634_v46 = vadd.f32 %v3570_v19, %v3396_v18  ;;  %v3666_v15 = vadd.f32 %v3602_v11, %v3524_v33 }
 0x374   : > { %3699 = vst.msk [vmem:[%s6422_s12 + $0xd8] sm:$0xff] %vm3671_vm1, %v3634_v46  ;;  %3731 = vst.msk [vmem:[%s6422_s12 + $0x1d8] sm:$0xff] %vm3671_vm1, %v3666_v15 }
 0x375   : > { %v3400_v13 = vpop.f32.mrb[200].mxu0  ;;  %v3528_v47 = vpop.f32.mrb[200].mxu1 }
 0x376   : > { %v3401_v17 = vadd.f32 %v3400_v13, %v6403_v56  ;;  %v3529_v43 = vadd.f32 %v3528_v47, %v2852_v16  ;;  %v3402_v38 = vpop.f32.mrb[201].mxu0  ;;  %v3530_v29 = vpop.f32.mrb[201].mxu1 }
 0x377   : > { %v3403_v28 = vpop.f32.mrb[202].mxu0  ;;  %v3531_v1 = vpop.f32.mrb[202].mxu1 }
 0x378   : > { %v3635_v41 = vadd.f32 %v3571_v24, %v3401_v17  ;;  %v3667_v37 = vadd.f32 %v3603_v21, %v3529_v43  ;;  %v3404_v60 = vadd.f32 %v3403_v28, %v6405_v51  ;;  %v3532_v27 = vadd.f32 %v3531_v1, %v2857_v44  ;;  %v3405_v53 = vpop.f32.mrb[203].mxu0  ;;  %v3533_v49 = vpop.f32.mrb[203].mxu1 }
 0x37a   : > { %3700 = vst.msk [vmem:[%s6422_s12 + $0xe0] sm:$0xff] %vm3671_vm1, %v3635_v41  ;;  %3732 = vst.msk [vmem:[%s6422_s12 + $0x1e0] sm:$0xff] %vm3671_vm1, %v3667_v37  ;;  %v3636_v56 = vadd.f32 %v3572_v22, %v3404_v60  ;;  %v3668_v50 = vadd.f32 %v3604_v23, %v3532_v27 }
 0x37c   : > { %3701 = vst.msk [vmem:[%s6422_s12 + $0xe8] sm:$0xff] %vm3671_vm1, %v3636_v56  ;;  %3733 = vst.msk [vmem:[%s6422_s12 + $0x1e8] sm:$0xff] %vm3671_vm1, %v3668_v50 }
 0x37d   : > { %v3408_v9 = vpop.f32.mrb[204].mxu0  ;;  %v3536_v51 = vpop.f32.mrb[204].mxu1 }
 0x37e   : > { %v3409_v48 = vadd.f32 %v3408_v9, %v6407_v8  ;;  %v3537_v55 = vadd.f32 %v3536_v51, %v2862_v61  ;;  %v3410_v57 = vpop.f32.mrb[205].mxu0  ;;  %v3538_v59 = vpop.f32.mrb[205].mxu1 }
 0x37f   : > { %v3411_v58 = vpop.f32.mrb[206].mxu0  ;;  %v3539_v42 = vpop.f32.mrb[206].mxu1 }
 0x380   : > { %v3637_v35 = vadd.f32 %v3573_v54, %v3409_v48  ;;  %v3669_v32 = vadd.f32 %v3605_v2, %v3537_v55  ;;  %v3412_v45 = vadd.f32 %v3411_v58, %v6409_v7  ;;  %v3540_v25 = vadd.f32 %v3539_v42, %v2867_v3  ;;  %v3413_v36 = vpop.f32.mrb[207].mxu0  ;;  %v3541_v63 = vpop.f32.mrb[207].mxu1 }
 0x382   : > { %3702 = vst.msk [vmem:[%s6422_s12 + $0xf0] sm:$0xff] %vm3671_vm1, %v3637_v35  ;;  %3734 = vst.msk [vmem:[%s6422_s12 + $0x1f0] sm:$0xff] %vm3671_vm1, %v3669_v32  ;;  %v3638_v8 = vadd.f32 %v3574_v62, %v3412_v45  ;;  %v3670_v0 = vadd.f32 %v3606_v5, %v3540_v25 }
 0x384   : > { %3703 = vst.msk [vmem:[%s6422_s12 + $0xf8] sm:$0xff] %vm3671_vm1, %v3638_v8  ;;  %3735 = vst.msk [vmem:[%s6422_s12 + $0x1f8] sm:$0xff] %vm3671_vm1, %v3670_v0 }
 0x385 PF: > { %s16_s23 = sadd.s32 1, %s5005_s23   ;;  %s6660_s21 = smov %s5001_s22 }
 0x386   : > { %p13_p5 = scmp.ge.s32.totalorder %s16_s23, 4   ;;  %s6661_s22 = smov %s6663_s24 }
 0x388   :  { %15 = sbr.rel (!%p13_p5) target bundleno = 2 (0x2), region = 77 }

</bundles_post_ra>
